<compile_context>
chip_gen: v6e
topology: v6e:2x2x1
jax: 0.10.0
libtpu: 0.0.40
codegen_flags: <defaults>
</compile_context>

<pallas_src>
import functools

import jax
import jax.numpy as jnp
from jax.experimental import pallas as pl
from jax.experimental.pallas import tpu as pltpu

BN_EPS = 1e-5


# ------------------------------ in-kernel helpers --------------------------- #

def _conv3x3_vmem(zref, colref, x, w_packed, W, mask_l, mask_r):
    """3x3 conv (zero padding=1) on a flat (Cin, H*W) VMEM value.

    zref    : VMEM scratch >= (Cin, H*W + 2*W + 2): flat zero-padded copy of x.
    colref  : VMEM scratch >= (9*Cin, H*W): packed im2col so the conv is a single
              MXU dot of contraction depth 9*Cin.
    w_packed: (Cout, 9*Cin), column order (dy, dx, ci).
    mask_l / mask_r: (1, H*W) lane masks, valid when reading column w-1 / w+1.
    """
    cin, hw = x.shape
    pad = W + 1
    zero_pad = jnp.zeros((cin, pad), jnp.float32)
    zref[0:cin, 0:pad] = zero_pad                       # left (top-row) pad
    zref[0:cin, pad + hw:pad + hw + pad] = zero_pad     # right (bottom-row) pad
    zref[0:cin, pad:pad + hw] = x                       # interior
    k = 0
    for dy in (-1, 0, 1):
        for dx in (-1, 0, 1):
            s = dy * W + dx
            sh = zref[0:cin, pad + s:pad + s + hw]
            if dx == -1:
                sh = jnp.where(mask_l, sh, 0.0)
            elif dx == 1:
                sh = jnp.where(mask_r, sh, 0.0)
            colref[k * cin:(k + 1) * cin, :] = sh
            k += 1
    return jnp.dot(w_packed, colref[0:9 * cin, :],
                   preferred_element_type=jnp.float32)


# --------------------------------- kernels ---------------------------------- #

def _stem_kernel(x_ref, wc_ref, bc_ref, wh_ref, bh_ref, xc_ref, heads_ref):
    # xc = channel(x);  heads = [channel1; channel2; channel3](xc) as one slab.
    xc = (jnp.dot(wc_ref[...], x_ref[...], preferred_element_type=jnp.float32)
          + bc_ref[...])
    xc_ref[...] = xc
    heads_ref[...] = (jnp.dot(wh_ref[...], xc,
                              preferred_element_type=jnp.float32) + bh_ref[...])


def _branch_kernel(a_ref, b_ref, wb_ref, sdb_ref, wca_ref, wcb_ref, sdc_ref,
                   sda_ref, k1_ref, sdb1_ref, k2_ref, b2_ref,
                   out_ref, zref, colref, *, H, W):
    hw = H * W
    lane = jax.lax.broadcasted_iota(jnp.int32, (1, hw), 1)
    if W & (W - 1) == 0:
        wpos = lane & (W - 1)
    else:
        wpos = lane % W
    mask_l = wpos >= 1          # valid when the tap reads column w-1
    mask_r = wpos <= W - 2      # valid when the tap reads column w+1

    ca = wca_ref.shape[1]
    a = a_ref[0:ca, :]

    # side branch (channel11/22/33): 1x1 conv + BN + ReLU (bias folded into BN)
    tb = jnp.dot(wb_ref[...], b_ref[...], preferred_element_type=jnp.float32)
    tb = jnp.maximum(tb * sdb_ref[:, 0:1] + sdb_ref[:, 1:2], 0.0)

    # concat([a, tb]) + 1x1 conv (channel111/222/333) as a 2-tap matmul + BN + ReLU
    c = (jnp.dot(wca_ref[...], a, preferred_element_type=jnp.float32)
         + jnp.dot(wcb_ref[...], tb, preferred_element_type=jnp.float32))
    c = jnp.maximum(c * sdc_ref[:, 0:1] + sdc_ref[:, 1:2], 0.0)

    # double_conv1: BN+ReLU -> conv3x3 -> BN+ReLU -> conv3x3 (+ bias)
    t = jnp.maximum(c * sda_ref[:, 0:1] + sda_ref[:, 1:2], 0.0)
    t = _conv3x3_vmem(zref, colref, t, k1_ref[...], W, mask_l, mask_r)
    t = jnp.maximum(t * sdb1_ref[:, 0:1] + sdb1_ref[:, 1:2], 0.0)
    t = _conv3x3_vmem(zref, colref, t, k2_ref[...], W, mask_l, mask_r)
    out_ref[...] = t + b2_ref[...]


def _combine_kernel(x1_ref, x2_ref, x3_ref, xc_ref, o_ref, *, c1, c2, c3):
    # final concat along channels (sublane offsets) + residual add
    o_ref[0:c1, :] = x1_ref[...] + xc_ref[0:c1, :]
    o_ref[c1:c1 + c2, :] = x2_ref[...] + xc_ref[c1:c1 + c2, :]
    o_ref[c1 + c2:c1 + c2 + c3, :] = x3_ref[...] + xc_ref[c1 + c2:c1 + c2 + c3, :]


# ------------------------------ pallas_call wrappers ------------------------ #

def _img_spec(c, hw):
    return pl.BlockSpec((None, c, hw), lambda b: (b, 0, 0))


def _const_spec(arr):
    nd = arr.ndim
    return pl.BlockSpec(arr.shape, lambda b: (0,) * nd)


def stem_call(x_flat, sp):
    wc, bc, wh, bh = sp
    B, cin, hw = x_flat.shape
    co, ch = wc.shape[0], wh.shape[0]
    return pl.pallas_call(
        _stem_kernel,
        out_shape=(jax.ShapeDtypeStruct((B, co, hw), jnp.float32),
                   jax.ShapeDtypeStruct((B, ch, hw), jnp.float32)),
        grid=(B,),
        in_specs=[_img_spec(cin, hw), _const_spec(wc), _const_spec(bc),
                  _const_spec(wh), _const_spec(bh)],
        out_specs=[_img_spec(co, hw), _img_spec(ch, hw)],
        compiler_params=pltpu.CompilerParams(
            dimension_semantics=("parallel",)),
    )(x_flat, wc, bc, wh, bh)


def branch_call(a_flat, b_flat, bp, H, W):
    wb, sdb, wca, wcb, sdc, sda, k1, sdb1, k2, b2 = bp
    B = a_flat.shape[0]
    hw = H * W
    ca_blk = a_flat.shape[1]
    cb = b_flat.shape[1]
    cc = wca.shape[0]
    kernel = functools.partial(_branch_kernel, H=H, W=W)
    return pl.pallas_call(
        kernel,
        out_shape=jax.ShapeDtypeStruct((B, cc, hw), jnp.float32),
        grid=(B,),
        in_specs=[_img_spec(ca_blk, hw), _img_spec(cb, hw)]
                 + [_const_spec(w) for w in
                    (wb, sdb, wca, wcb, sdc, sda, k1, sdb1, k2, b2)],
        out_specs=_img_spec(cc, hw),
        scratch_shapes=[
            pltpu.VMEM((cc, hw + 2 * W + 2), jnp.float32),   # zero-padded image
            pltpu.VMEM((9 * cc, hw), jnp.float32),           # packed im2col
        ],
        compiler_params=pltpu.CompilerParams(
            dimension_semantics=("parallel",)),
    )(a_flat, b_flat, wb, sdb, wca, wcb, sdc, sda, k1, sdb1, k2, b2)


def combine_call(xx1, xx2, xx3, xc):
    B, c1, hw = xx1.shape
    c2, c3 = xx2.shape[1], xx3.shape[1]
    cout = xc.shape[1]
    kernel = functools.partial(_combine_kernel, c1=c1, c2=c2, c3=c3)
    return pl.pallas_call(
        kernel,
        out_shape=jax.ShapeDtypeStruct((B, cout, hw), jnp.float32),
        grid=(B,),
        in_specs=[_img_spec(c1, hw), _img_spec(c2, hw), _img_spec(c3, hw),
                  _img_spec(cout, hw)],
        out_specs=_img_spec(cout, hw),
        compiler_params=pltpu.CompilerParams(
            dimension_semantics=("parallel",)),
    )(xx1, xx2, xx3, xc)


# ------------------------------- plain-JAX glue ------------------------------ #

def _upsample2(a):   # NCHW, nearest x2 (nn.Upsample(scale_factor=2))
    return jnp.repeat(jnp.repeat(a, 2, axis=2), 2, axis=3)


def _maxpool2(a):    # NCHW, nn.MaxPool2d(2)
    B, C, H, W = a.shape
    return a.reshape(B, C, H // 2, 2, W // 2, 2).max(axis=(3, 5))


def _flat(a):        # (B, C, H, W) -> (B, C, H*W), free reshape
    B, C, H, W = a.shape
    return a.reshape(B, C, H * W)


# --------------------------------- parameters -------------------------------- #

def init_params(key, in_ch, out_ch, ch1, ch2, ch3):
    """PyTorch-convention params: Conv2d weight (Cout, Cin, k, k) / bias (Cout,),
    BatchNorm2d gamma/beta plus synthetic running stats (inference mode)."""
    keys = iter(jax.random.split(key, 128))

    def conv(cin, cout, k=1):
        bound = 1.0 / float(cin * k * k) ** 0.5
        w = jax.random.uniform(next(keys), (cout, cin, k, k), jnp.float32,
                               -bound, bound)
        b = jax.random.uniform(next(keys), (cout,), jnp.float32, -bound, bound)
        return {"w": w, "b": b}

    def bn(c):
        return {
            "gamma": jax.random.uniform(next(keys), (c,), jnp.float32, 0.5, 1.5),
            "beta": 0.1 * jax.random.normal(next(keys), (c,), jnp.float32),
            "mean": 0.1 * jax.random.normal(next(keys), (c,), jnp.float32),
            "var": jax.random.uniform(next(keys), (c,), jnp.float32, 0.5, 1.5),
        }

    def dc(c):   # double_conv1(c, c)
        return {"bn_a": bn(c), "conv1": conv(c, c // 2, 3),
                "bn_b": bn(c // 2), "conv2": conv(c // 2, c, 3)}

    oc2, oc4 = out_ch // 2, out_ch // 4
    return {
        "channel": conv(in_ch, out_ch),
        "channel1": conv(out_ch, oc2),
        "channel2": conv(out_ch, oc4),
        "channel3": conv(out_ch, oc4),
        "channel11": {"conv": conv(ch2, oc2), "bn": bn(oc2)},
        "channel22": {"conv": conv(ch1, oc4), "bn": bn(oc4)},
        "channel33": {"conv": conv(ch3, oc4), "bn": bn(oc4)},
        "channel111": {"conv": conv(out_ch, oc2), "bn": bn(oc2)},
        "channel222": {"conv": conv(oc2, oc4), "bn": bn(oc4)},
        "channel333": {"conv": conv(oc2, oc4), "bn": bn(oc4)},
        "conv": dc(oc2),
        "convup": dc(oc4),
        "convdown": dc(oc4),
    }


def prepare_params(p):
    """Host-side prep: fold BN (inference) + conv biases, convert PyTorch weight
    layouts to the channel-first kernel layouts, concatenate channel1/2/3 heads."""

    def w1x1(q):                       # (Cout, Cin, 1, 1) -> (Cout, Cin)
        return q["w"][:, :, 0, 0]

    def pack3x3(w):                    # (Cout, Cin, 3, 3) -> (Cout, 9*Cin)
        cout, cin = w.shape[0], w.shape[1]
        return jnp.transpose(w, (0, 2, 3, 1)).reshape(cout, 9 * cin)

    def bn_fold(b):
        s = b["gamma"] / jnp.sqrt(b["var"] + BN_EPS)
        return s, b["beta"] - b["mean"] * s

    def sd(s, t):                      # (C, 2): column 0 = scale, column 1 = shift
        return jnp.stack([s, t], axis=1)

    # stem: `channel` conv + fused channel1/2/3 heads
    wc = w1x1(p["channel"])
    bc = p["channel"]["b"][:, None]
    wh = jnp.concatenate([w1x1(p["channel1"]), w1x1(p["channel2"]),
                          w1x1(p["channel3"])], axis=0)
    bh = jnp.concatenate([p["channel1"]["b"], p["channel2"]["b"],
                          p["channel3"]["b"]])[:, None]

    def mk_branch(side, catc, dcp, ca):
        wb = w1x1(side["conv"])
        s, t = bn_fold(side["bn"])
        sdb = sd(s, s * side["conv"]["b"] + t)
        wcat = w1x1(catc["conv"])
        s, t = bn_fold(catc["bn"])
        sdc = sd(s, s * catc["conv"]["b"] + t)
        s, t = bn_fold(dcp["bn_a"])
        sda = sd(s, t)
        k1 = pack3x3(dcp["conv1"]["w"])
        s, t = bn_fold(dcp["bn_b"])
        sdb1 = sd(s, s * dcp["conv1"]["b"] + t)
        k2 = pack3x3(dcp["conv2"]["w"])
        b2 = dcp["conv2"]["b"][:, None]
        return (wb, sdb, wcat[:, :ca], wcat[:, ca:], sdc, sda, k1, sdb1, k2, b2)

    oc2 = p["channel1"]["w"].shape[0]
    oc4 = p["channel2"]["w"].shape[0]
    return {
        "stem": (wc, bc, wh, bh),
        "b1": mk_branch(p["channel11"], p["channel111"], p["conv"], oc2),
        "b2": mk_branch(p["channel22"], p["channel222"], p["convup"], oc4),
        "b3": mk_branch(p["channel33"], p["channel333"], p["convdown"], oc4),
    }


# ---------------------------------- forward ---------------------------------- #

def pyramid_forward(kp, x, xxxx1, xxxx2, xxxx3):
    B, _, H, W = x.shape

    # stem: x = channel(x); heads = [channel1|channel2|channel3](x) as one slab
    xc, heads = stem_call(_flat(x), kp["stem"])
    out_ch = xc.shape[1]
    oc2, oc4 = out_ch // 2, out_ch // 4

    heads4 = heads.reshape(B, out_ch, H, W)
    x2 = _upsample2(heads4[:, oc2:oc2 + oc4])            # up(channel2(x))
    x3 = _maxpool2(heads4[:, oc2 + oc4:oc2 + 2 * oc4])   # down(channel3(x))

    # fused branches: [1x1+BN+ReLU on xxxx_i] + [concat->1x1+BN+ReLU] + double_conv1
    xx1 = branch_call(heads, _flat(xxxx2), kp["b1"], H, W)            # uses heads[:, :oc2]
    xx2 = branch_call(_flat(x2), _flat(xxxx1), kp["b2"], 2 * H, 2 * W)
    xx3 = branch_call(_flat(x3), _flat(xxxx3), kp["b3"], H // 2, W // 2)

    xx2 = _flat(_maxpool2(xx2.reshape(B, oc4, 2 * H, 2 * W)))
    xx3 = _flat(_upsample2(xx3.reshape(B, oc4, H // 2, W // 2)))

    out = combine_call(xx1, xx2, xx3, xc)                # concat + residual add
    return out.reshape(B, out_ch, H, W)


# ------------------------------------ main ------------------------------------ #

if __name__ == "__main__":
    B, in_ch, out_ch = 2, 4, 16
    ch1, ch2, ch3 = 6, 8, 4
    H = W = 16

    key = jax.random.PRNGKey(0)
    kparams, k1, k2, k3, k4 = jax.random.split(key, 5)
    raw = init_params(kparams, in_ch, out_ch, ch1, ch2, ch3)
    params = prepare_params(raw)

    # PyTorch-convention NCHW inputs; spatial sizes dictated by forward():
    # xxxx1 matches up(x2) -> (2H, 2W); xxxx2 matches x1 -> (H, W);
    # xxxx3 matches down(x3) -> (H/2, W/2).
    x = jax.random.normal(k1, (B, in_ch, H, W), jnp.float32)
    xxxx1 = jax.random.normal(k2, (B, ch1, 2 * H, 2 * W), jnp.float32)
    xxxx2 = jax.random.normal(k3, (B, ch2, H, W), jnp.float32)
    xxxx3 = jax.random.normal(k4, (B, ch3, H // 2, W // 2), jnp.float32)

    out = jax.jit(pyramid_forward)(params, x, xxxx1, xxxx2, xxxx3)
    out = jax.block_until_ready(out)
    assert out.shape == (B, out_ch, H, W), out.shape
    assert bool(jnp.all(jnp.isfinite(out)))
    print("KERNEL_OK")
</pallas_src>

<mosaic_0001>
module attributes {stable_mosaic.version = 11 : i64} {
  func.func @_stem_kernel(%arg0: i32, %arg1: memref<1x4x256xf32, #tpu.memory_space<vmem>>, %arg2: memref<16x4xf32, #tpu.memory_space<vmem>>, %arg3: memref<16x1xf32, #tpu.memory_space<vmem>>, %arg4: memref<16x16xf32, #tpu.memory_space<vmem>>, %arg5: memref<16x1xf32, #tpu.memory_space<vmem>>, %arg6: memref<1x16x256xf32, #tpu.memory_space<vmem>>, %arg7: memref<1x16x256xf32, #tpu.memory_space<vmem>>) attributes {dimension_semantics = [#tpu.dimension_semantics<parallel>], iteration_bounds = array<i64: 2>, scalar_prefetch = 0 : i64, scratch_operands = 0 : i64, tpu.core_type = #tpu.core_type<tc>, window_params = [{transform_indices = @transform_0, window_bounds = array<i64: 1, 4, 256>}, {pipeline_mode = #tpu.pipeline_mode<synchronous>, transform_indices = @transform_1, window_bounds = array<i64: 16, 4>}, {pipeline_mode = #tpu.pipeline_mode<synchronous>, transform_indices = @transform_2, window_bounds = array<i64: 16, 1>}, {pipeline_mode = #tpu.pipeline_mode<synchronous>, transform_indices = @transform_3, window_bounds = array<i64: 16, 16>}, {pipeline_mode = #tpu.pipeline_mode<synchronous>, transform_indices = @transform_4, window_bounds = array<i64: 16, 1>}, {transform_indices = @transform_5, window_bounds = array<i64: 1, 16, 256>}, {transform_indices = @transform_6, window_bounds = array<i64: 1, 16, 256>}]} {
    %c0 = arith.constant 0 : index
    %c0_0 = arith.constant 0 : index
    %0 = vector.load %arg2[%c0, %c0_0] : memref<16x4xf32, #tpu.memory_space<vmem>>, vector<16x4xf32>
    %c0_1 = arith.constant 0 : index
    %c0_2 = arith.constant 0 : index
    %c0_3 = arith.constant 0 : index
    %1 = vector.load %arg1[%c0_1, %c0_2, %c0_3] : memref<1x4x256xf32, #tpu.memory_space<vmem>>, vector<1x4x256xf32>
    %2 = vector.shape_cast %1 : vector<1x4x256xf32> to vector<4x256xf32>
    %cst = arith.constant dense<0.000000e+00> : vector<16x256xf32>
    %3 = tpu.matmul %0, %2, %cst {dimension_numbers = #tpu.dot_dimension_numbers<[1], [0], [0], [1], [0, 0, 1, 1], [], []>} : vector<16x4xf32>, vector<4x256xf32>, vector<16x256xf32> -> vector<16x256xf32>
    %c0_4 = arith.constant 0 : index
    %c0_5 = arith.constant 0 : index
    %4 = vector.load %arg3[%c0_4, %c0_5] : memref<16x1xf32, #tpu.memory_space<vmem>>, vector<16x1xf32>
    %5 = vector.broadcast %4 : vector<16x1xf32> to vector<16x256xf32>
    %6 = arith.addf %3, %5 : vector<16x256xf32>
    %c0_6 = arith.constant 0 : index
    %c0_7 = arith.constant 0 : index
    %c0_8 = arith.constant 0 : index
    %7 = vector.load %arg6[%c0_6, %c0_7, %c0_8] : memref<1x16x256xf32, #tpu.memory_space<vmem>>, vector<1x16x256xf32>
    %8 = vector.shape_cast %7 : vector<1x16x256xf32> to vector<16x256xf32>
    %9 = vector.shape_cast %6 : vector<16x256xf32> to vector<1x16x256xf32>
    tpu.vector_store %arg6[%c0_6, %c0_7, %c0_8], %9 {strides = array<i32>} : memref<1x16x256xf32, #tpu.memory_space<vmem>>, vector<1x16x256xf32>,
    %c0_9 = arith.constant 0 : index
    %c0_10 = arith.constant 0 : index
    %10 = vector.load %arg4[%c0_9, %c0_10] : memref<16x16xf32, #tpu.memory_space<vmem>>, vector<16x16xf32>
    %cst_11 = arith.constant dense<0.000000e+00> : vector<16x256xf32>
    %11 = tpu.matmul %10, %6, %cst_11 {dimension_numbers = #tpu.dot_dimension_numbers<[1], [0], [0], [1], [0, 0, 1, 1], [], []>} : vector<16x16xf32>, vector<16x256xf32>, vector<16x256xf32> -> vector<16x256xf32>
    %c0_12 = arith.constant 0 : index
    %c0_13 = arith.constant 0 : index
    %12 = vector.load %arg5[%c0_12, %c0_13] : memref<16x1xf32, #tpu.memory_space<vmem>>, vector<16x1xf32>
    %13 = vector.broadcast %12 : vector<16x1xf32> to vector<16x256xf32>
    %14 = arith.addf %11, %13 : vector<16x256xf32>
    %c0_14 = arith.constant 0 : index
    %c0_15 = arith.constant 0 : index
    %c0_16 = arith.constant 0 : index
    %15 = vector.load %arg7[%c0_14, %c0_15, %c0_16] : memref<1x16x256xf32, #tpu.memory_space<vmem>>, vector<1x16x256xf32>
    %16 = vector.shape_cast %15 : vector<1x16x256xf32> to vector<16x256xf32>
    %17 = vector.shape_cast %14 : vector<16x256xf32> to vector<1x16x256xf32>
    tpu.vector_store %arg7[%c0_14, %c0_15, %c0_16], %17 {strides = array<i32>} : memref<1x16x256xf32, #tpu.memory_space<vmem>>, vector<1x16x256xf32>,
    return
  }
  func.func @transform_0(%arg0: i32) -> (i32, i32, i32) {
    %c0_i32 = arith.constant 0 : i32
    %c0_i32_0 = arith.constant 0 : i32
    %c0_i32_1 = arith.constant 0 : i32
    return %arg0, %c0_i32, %c0_i32_0 : i32, i32, i32
  }
  func.func @transform_1(%arg0: i32) -> (i32, i32) {
    %c0_i32 = arith.constant 0 : i32
    %c0_i32_0 = arith.constant 0 : i32
    %c0_i32_1 = arith.constant 0 : i32
    return %c0_i32, %c0_i32_0 : i32, i32
  }
  func.func @transform_2(%arg0: i32) -> (i32, i32) {
    %c0_i32 = arith.constant 0 : i32
    %c0_i32_0 = arith.constant 0 : i32
    %c0_i32_1 = arith.constant 0 : i32
    return %c0_i32, %c0_i32_0 : i32, i32
  }
  func.func @transform_3(%arg0: i32) -> (i32, i32) {
    %c0_i32 = arith.constant 0 : i32
    %c0_i32_0 = arith.constant 0 : i32
    %c0_i32_1 = arith.constant 0 : i32
    return %c0_i32, %c0_i32_0 : i32, i32
  }
  func.func @transform_4(%arg0: i32) -> (i32, i32) {
    %c0_i32 = arith.constant 0 : i32
    %c0_i32_0 = arith.constant 0 : i32
    %c0_i32_1 = arith.constant 0 : i32
    return %c0_i32, %c0_i32_0 : i32, i32
  }
  func.func @transform_5(%arg0: i32) -> (i32, i32, i32) {
    %c0_i32 = arith.constant 0 : i32
    %c0_i32_0 = arith.constant 0 : i32
    %c0_i32_1 = arith.constant 0 : i32
    return %arg0, %c0_i32, %c0_i32_0 : i32, i32, i32
  }
  func.func @transform_6(%arg0: i32) -> (i32, i32, i32) {
    %c0_i32 = arith.constant 0 : i32
    %c0_i32_0 = arith.constant 0 : i32
    %c0_i32_1 = arith.constant 0 : i32
    return %arg0, %c0_i32, %c0_i32_0 : i32, i32, i32
  }
}

module attributes {stable_mosaic.version = 11 : i64} {
  func.func @_branch_kernel(%arg0: i32, %arg1: memref<1x16x256xf32, #tpu.memory_space<vmem>>, %arg2: memref<1x8x256xf32, #tpu.memory_space<vmem>>, %arg3: memref<8x8xf32, #tpu.memory_space<vmem>>, %arg4: memref<8x2xf32, #tpu.memory_space<vmem>>, %arg5: memref<8x8xf32, #tpu.memory_space<vmem>>, %arg6: memref<8x8xf32, #tpu.memory_space<vmem>>, %arg7: memref<8x2xf32, #tpu.memory_space<vmem>>, %arg8: memref<8x2xf32, #tpu.memory_space<vmem>>, %arg9: memref<4x72xf32, #tpu.memory_space<vmem>>, %arg10: memref<4x2xf32, #tpu.memory_space<vmem>>, %arg11: memref<8x36xf32, #tpu.memory_space<vmem>>, %arg12: memref<8x1xf32, #tpu.memory_space<vmem>>, %arg13: memref<1x8x256xf32, #tpu.memory_space<vmem>>, %arg14: memref<8x290xf32, #tpu.memory_space<vmem>>, %arg15: memref<72x256xf32, #tpu.memory_space<vmem>>) attributes {dimension_semantics = [#tpu.dimension_semantics<parallel>], iteration_bounds = array<i64: 2>, scalar_prefetch = 0 : i64, scratch_operands = 2 : i64, tpu.core_type = #tpu.core_type<tc>, window_params = [{transform_indices = @transform_0, window_bounds = array<i64: 1, 16, 256>}, {transform_indices = @transform_1, window_bounds = array<i64: 1, 8, 256>}, {pipeline_mode = #tpu.pipeline_mode<synchronous>, transform_indices = @transform_2, window_bounds = array<i64: 8, 8>}, {pipeline_mode = #tpu.pipeline_mode<synchronous>, transform_indices = @transform_3, window_bounds = array<i64: 8, 2>}, {pipeline_mode = #tpu.pipeline_mode<synchronous>, transform_indices = @transform_4, window_bounds = array<i64: 8, 8>}, {pipeline_mode = #tpu.pipeline_mode<synchronous>, transform_indices = @transform_5, window_bounds = array<i64: 8, 8>}, {pipeline_mode = #tpu.pipeline_mode<synchronous>, transform_indices = @transform_6, window_bounds = array<i64: 8, 2>}, {pipeline_mode = #tpu.pipeline_mode<synchronous>, transform_indices = @transform_7, window_bounds = array<i64: 8, 2>}, {pipeline_mode = #tpu.pipeline_mode<synchronous>, transform_indices = @transform_8, window_bounds = array<i64: 4, 72>}, {pipeline_mode = #tpu.pipeline_mode<synchronous>, transform_indices = @transform_9, window_bounds = array<i64: 4, 2>}, {pipeline_mode = #tpu.pipeline_mode<synchronous>, transform_indices = @transform_10, window_bounds = array<i64: 8, 36>}, {pipeline_mode = #tpu.pipeline_mode<synchronous>, transform_indices = @transform_11, window_bounds = array<i64: 8, 1>}, {transform_indices = @transform_12, window_bounds = array<i64: 1, 8, 256>}]} {
    %0 = tpu.iota {dimensions = array<i32: 1>} : vector<1x256xi32>
    %c15_i32 = arith.constant 15 : i32
    %1 = vector.broadcast %c15_i32 : i32 to vector<1x256xi32>
    %2 = arith.andi %0, %1 : vector<1x256xi32>
    %c1_i32 = arith.constant 1 : i32
    %3 = vector.broadcast %c1_i32 : i32 to vector<1x256xi32>
    %4 = arith.cmpi sge, %2, %3 : vector<1x256xi32>
    %c14_i32 = arith.constant 14 : i32
    %5 = vector.broadcast %c14_i32 : i32 to vector<1x256xi32>
    %6 = arith.cmpi sle, %2, %5 : vector<1x256xi32>
    %c0 = arith.constant 0 : index
    %c0_0 = arith.constant 0 : index
    %c0_1 = arith.constant 0 : index
    %7 = vector.load %arg1[%c0, %c0_0, %c0_1] : memref<1x16x256xf32, #tpu.memory_space<vmem>>, vector<1x8x256xf32>
    %8 = vector.shape_cast %7 : vector<1x8x256xf32> to vector<8x256xf32>
    %c0_2 = arith.constant 0 : index
    %c0_3 = arith.constant 0 : index
    %9 = vector.load %arg3[%c0_2, %c0_3] : memref<8x8xf32, #tpu.memory_space<vmem>>, vector<8x8xf32>
    %c0_4 = arith.constant 0 : index
    %c0_5 = arith.constant 0 : index
    %c0_6 = arith.constant 0 : index
    %10 = vector.load %arg2[%c0_4, %c0_5, %c0_6] : memref<1x8x256xf32, #tpu.memory_space<vmem>>, vector<1x8x256xf32>
    %11 = vector.shape_cast %10 : vector<1x8x256xf32> to vector<8x256xf32>
    %cst = arith.constant dense<0.000000e+00> : vector<8x256xf32>
    %12 = tpu.matmul %9, %11, %cst {dimension_numbers = #tpu.dot_dimension_numbers<[1], [0], [0], [1], [0, 0, 1, 1], [], []>} : vector<8x8xf32>, vector<8x256xf32>, vector<8x256xf32> -> vector<8x256xf32>
    %c0_7 = arith.constant 0 : index
    %c0_8 = arith.constant 0 : index
    %13 = vector.load %arg4[%c0_7, %c0_8] : memref<8x2xf32, #tpu.memory_space<vmem>>, vector<8x1xf32>
    %14 = vector.broadcast %13 : vector<8x1xf32> to vector<8x256xf32>
    %15 = arith.mulf %12, %14 : vector<8x256xf32>
    %c0_9 = arith.constant 0 : index
    %c1 = arith.constant 1 : index
    %16 = vector.load %arg4[%c0_9, %c1] : memref<8x2xf32, #tpu.memory_space<vmem>>, vector<8x1xf32>
    %17 = vector.broadcast %16 : vector<8x1xf32> to vector<8x256xf32>
    %18 = arith.addf %15, %17 : vector<8x256xf32>
    %cst_10 = arith.constant 0.000000e+00 : f32
    %19 = vector.broadcast %cst_10 : f32 to vector<8x256xf32>
    %20 = arith.maximumf %18, %19 : vector<8x256xf32>
    %c0_11 = arith.constant 0 : index
    %c0_12 = arith.constant 0 : index
    %21 = vector.load %arg5[%c0_11, %c0_12] : memref<8x8xf32, #tpu.memory_space<vmem>>, vector<8x8xf32>
    %cst_13 = arith.constant dense<0.000000e+00> : vector<8x256xf32>
    %22 = tpu.matmul %21, %8, %cst_13 {dimension_numbers = #tpu.dot_dimension_numbers<[1], [0], [0], [1], [0, 0, 1, 1], [], []>} : vector<8x8xf32>, vector<8x256xf32>, vector<8x256xf32> -> vector<8x256xf32>
    %c0_14 = arith.constant 0 : index
    %c0_15 = arith.constant 0 : index
    %23 = vector.load %arg6[%c0_14, %c0_15] : memref<8x8xf32, #tpu.memory_space<vmem>>, vector<8x8xf32>
    %cst_16 = arith.constant dense<0.000000e+00> : vector<8x256xf32>
    %24 = tpu.matmul %23, %20, %cst_16 {dimension_numbers = #tpu.dot_dimension_numbers<[1], [0], [0], [1], [0, 0, 1, 1], [], []>} : vector<8x8xf32>, vector<8x256xf32>, vector<8x256xf32> -> vector<8x256xf32>
    %25 = arith.addf %22, %24 : vector<8x256xf32>
    %c0_17 = arith.constant 0 : index
    %c0_18 = arith.constant 0 : index
    %26 = vector.load %arg7[%c0_17, %c0_18] : memref<8x2xf32, #tpu.memory_space<vmem>>, vector<8x1xf32>
    %27 = vector.broadcast %26 : vector<8x1xf32> to vector<8x256xf32>
    %28 = arith.mulf %25, %27 : vector<8x256xf32>
    %c0_19 = arith.constant 0 : index
    %c1_20 = arith.constant 1 : index
    %29 = vector.load %arg7[%c0_19, %c1_20] : memref<8x2xf32, #tpu.memory_space<vmem>>, vector<8x1xf32>
    %30 = vector.broadcast %29 : vector<8x1xf32> to vector<8x256xf32>
    %31 = arith.addf %28, %30 : vector<8x256xf32>
    %cst_21 = arith.constant 0.000000e+00 : f32
    %32 = vector.broadcast %cst_21 : f32 to vector<8x256xf32>
    %33 = arith.maximumf %31, %32 : vector<8x256xf32>
    %c0_22 = arith.constant 0 : index
    %c0_23 = arith.constant 0 : index
    %34 = vector.load %arg8[%c0_22, %c0_23] : memref<8x2xf32, #tpu.memory_space<vmem>>, vector<8x1xf32>
    %35 = vector.broadcast %34 : vector<8x1xf32> to vector<8x256xf32>
    %36 = arith.mulf %33, %35 : vector<8x256xf32>
    %c0_24 = arith.constant 0 : index
    %c1_25 = arith.constant 1 : index
    %37 = vector.load %arg8[%c0_24, %c1_25] : memref<8x2xf32, #tpu.memory_space<vmem>>, vector<8x1xf32>
    %38 = vector.broadcast %37 : vector<8x1xf32> to vector<8x256xf32>
    %39 = arith.addf %36, %38 : vector<8x256xf32>
    %cst_26 = arith.constant 0.000000e+00 : f32
    %40 = vector.broadcast %cst_26 : f32 to vector<8x256xf32>
    %41 = arith.maximumf %39, %40 : vector<8x256xf32>
    %c0_27 = arith.constant 0 : index
    %c0_28 = arith.constant 0 : index
    %42 = vector.load %arg9[%c0_27, %c0_28] : memref<4x72xf32, #tpu.memory_space<vmem>>, vector<4x72xf32>
    %cst_29 = arith.constant 0.000000e+00 : f32
    %43 = vector.broadcast %cst_29 : f32 to vector<8x17xf32>
    %c0_30 = arith.constant 0 : index
    %c0_31 = arith.constant 0 : index
    %44 = vector.load %arg14[%c0_30, %c0_31] : memref<8x290xf32, #tpu.memory_space<vmem>>, vector<8x17xf32>
    tpu.vector_store %arg14[%c0_30, %c0_31], %43 {strides = array<i32>} : memref<8x290xf32, #tpu.memory_space<vmem>>, vector<8x17xf32>,
    %c0_32 = arith.constant 0 : index
    %c273 = arith.constant 273 : index
    %45 = vector.load %arg14[%c0_32, %c273] : memref<8x290xf32, #tpu.memory_space<vmem>>, vector<8x17xf32>
    tpu.vector_store %arg14[%c0_32, %c273], %43 {strides = array<i32>} : memref<8x290xf32, #tpu.memory_space<vmem>>, vector<8x17xf32>,
    %c0_33 = arith.constant 0 : index
    %c17 = arith.constant 17 : index
    %46 = vector.load %arg14[%c0_33, %c17] : memref<8x290xf32, #tpu.memory_space<vmem>>, vector<8x256xf32>
    tpu.vector_store %arg14[%c0_33, %c17], %41 {strides = array<i32>} : memref<8x290xf32, #tpu.memory_space<vmem>>, vector<8x256xf32>,
    %c0_34 = arith.constant 0 : index
    %c0_35 = arith.constant 0 : index
    %47 = vector.load %arg14[%c0_34, %c0_35] : memref<8x290xf32, #tpu.memory_space<vmem>>, vector<8x256xf32>
    %cst_36 = arith.constant 0.000000e+00 : f32
    %48 = vector.shape_cast %4 : vector<1x256xi1> to vector<1x256xi1>
    %49 = vector.broadcast %48 : vector<1x256xi1> to vector<8x256xi1>
    %50 = vector.broadcast %cst_36 : f32 to vector<8x256xf32>
    %51 = arith.select %49, %47, %50 : vector<8x256xi1>, vector<8x256xf32>
    %c0_37 = arith.constant 0 : index
    %c0_38 = arith.constant 0 : index
    %52 = vector.load %arg15[%c0_37, %c0_38] : memref<72x256xf32, #tpu.memory_space<vmem>>, vector<8x256xf32>
    tpu.vector_store %arg15[%c0_37, %c0_38], %51 {strides = array<i32>} : memref<72x256xf32, #tpu.memory_space<vmem>>, vector<8x256xf32>,
    %c0_39 = arith.constant 0 : index
    %c1_40 = arith.constant 1 : index
    %53 = vector.load %arg14[%c0_39, %c1_40] : memref<8x290xf32, #tpu.memory_space<vmem>>, vector<8x256xf32>
    %c8 = arith.constant 8 : index
    %c0_41 = arith.constant 0 : index
    %54 = vector.load %arg15[%c8, %c0_41] : memref<72x256xf32, #tpu.memory_space<vmem>>, vector<8x256xf32>
    tpu.vector_store %arg15[%c8, %c0_41], %53 {strides = array<i32>} : memref<72x256xf32, #tpu.memory_space<vmem>>, vector<8x256xf32>,
    %c0_42 = arith.constant 0 : index
    %c2 = arith.constant 2 : index
    %55 = vector.load %arg14[%c0_42, %c2] : memref<8x290xf32, #tpu.memory_space<vmem>>, vector<8x256xf32>
    %cst_43 = arith.constant 0.000000e+00 : f32
    %56 = vector.shape_cast %6 : vector<1x256xi1> to vector<1x256xi1>
    %57 = vector.broadcast %56 : vector<1x256xi1> to vector<8x256xi1>
    %58 = vector.broadcast %cst_43 : f32 to vector<8x256xf32>
    %59 = arith.select %57, %55, %58 : vector<8x256xi1>, vector<8x256xf32>
    %c16 = arith.constant 16 : index
    %c0_44 = arith.constant 0 : index
    %60 = vector.load %arg15[%c16, %c0_44] : memref<72x256xf32, #tpu.memory_space<vmem>>, vector<8x256xf32>
    tpu.vector_store %arg15[%c16, %c0_44], %59 {strides = array<i32>} : memref<72x256xf32, #tpu.memory_space<vmem>>, vector<8x256xf32>,
    %c0_45 = arith.constant 0 : index
    %c16_46 = arith.constant 16 : index
    %61 = vector.load %arg14[%c0_45, %c16_46] : memref<8x290xf32, #tpu.memory_space<vmem>>, vector<8x256xf32>
    %cst_47 = arith.constant 0.000000e+00 : f32
    %62 = vector.shape_cast %4 : vector<1x256xi1> to vector<1x256xi1>
    %63 = vector.broadcast %62 : vector<1x256xi1> to vector<8x256xi1>
    %64 = vector.broadcast %cst_47 : f32 to vector<8x256xf32>
    %65 = arith.select %63, %61, %64 : vector<8x256xi1>, vector<8x256xf32>
    %c24 = arith.constant 24 : index
    %c0_48 = arith.constant 0 : index
    %66 = vector.load %arg15[%c24, %c0_48] : memref<72x256xf32, #tpu.memory_space<vmem>>, vector<8x256xf32>
    tpu.vector_store %arg15[%c24, %c0_48], %65 {strides = array<i32>} : memref<72x256xf32, #tpu.memory_space<vmem>>, vector<8x256xf32>,
    %c0_49 = arith.constant 0 : index
    %c17_50 = arith.constant 17 : index
    %67 = vector.load %arg14[%c0_49, %c17_50] : memref<8x290xf32, #tpu.memory_space<vmem>>, vector<8x256xf32>
    %c32 = arith.constant 32 : index
    %c0_51 = arith.constant 0 : index
    %68 = vector.load %arg15[%c32, %c0_51] : memref<72x256xf32, #tpu.memory_space<vmem>>, vector<8x256xf32>
    tpu.vector_store %arg15[%c32, %c0_51], %67 {strides = array<i32>} : memref<72x256xf32, #tpu.memory_space<vmem>>, vector<8x256xf32>,
    %c0_52 = arith.constant 0 : index
    %c18 = arith.constant 18 : index
    %69 = vector.load %arg14[%c0_52, %c18] : memref<8x290xf32, #tpu.memory_space<vmem>>, vector<8x256xf32>
    %cst_53 = arith.constant 0.000000e+00 : f32
    %70 = vector.shape_cast %6 : vector<1x256xi1> to vector<1x256xi1>
    %71 = vector.broadcast %70 : vector<1x256xi1> to vector<8x256xi1>
    %72 = vector.broadcast %cst_53 : f32 to vector<8x256xf32>
    %73 = arith.select %71, %69, %72 : vector<8x256xi1>, vector<8x256xf32>
    %c40 = arith.constant 40 : index
    %c0_54 = arith.constant 0 : index
    %74 = vector.load %arg15[%c40, %c0_54] : memref<72x256xf32, #tpu.memory_space<vmem>>, vector<8x256xf32>
    tpu.vector_store %arg15[%c40, %c0_54], %73 {strides = array<i32>} : memref<72x256xf32, #tpu.memory_space<vmem>>, vector<8x256xf32>,
    %c0_55 = arith.constant 0 : index
    %c32_56 = arith.constant 32 : index
    %75 = vector.load %arg14[%c0_55, %c32_56] : memref<8x290xf32, #tpu.memory_space<vmem>>, vector<8x256xf32>
    %cst_57 = arith.constant 0.000000e+00 : f32
    %76 = vector.shape_cast %4 : vector<1x256xi1> to vector<1x256xi1>
    %77 = vector.broadcast %76 : vector<1x256xi1> to vector<8x256xi1>
    %78 = vector.broadcast %cst_57 : f32 to vector<8x256xf32>
    %79 = arith.select %77, %75, %78 : vector<8x256xi1>, vector<8x256xf32>
    %c48 = arith.constant 48 : index
    %c0_58 = arith.constant 0 : index
    %80 = vector.load %arg15[%c48, %c0_58] : memref<72x256xf32, #tpu.memory_space<vmem>>, vector<8x256xf32>
    tpu.vector_store %arg15[%c48, %c0_58], %79 {strides = array<i32>} : memref<72x256xf32, #tpu.memory_space<vmem>>, vector<8x256xf32>,
    %c0_59 = arith.constant 0 : index
    %c33 = arith.constant 33 : index
    %81 = vector.load %arg14[%c0_59, %c33] : memref<8x290xf32, #tpu.memory_space<vmem>>, vector<8x256xf32>
    %c56 = arith.constant 56 : index
    %c0_60 = arith.constant 0 : index
    %82 = vector.load %arg15[%c56, %c0_60] : memref<72x256xf32, #tpu.memory_space<vmem>>, vector<8x256xf32>
    tpu.vector_store %arg15[%c56, %c0_60], %81 {strides = array<i32>} : memref<72x256xf32, #tpu.memory_space<vmem>>, vector<8x256xf32>,
    %c0_61 = arith.constant 0 : index
    %c34 = arith.constant 34 : index
    %83 = vector.load %arg14[%c0_61, %c34] : memref<8x290xf32, #tpu.memory_space<vmem>>, vector<8x256xf32>
    %cst_62 = arith.constant 0.000000e+00 : f32
    %84 = vector.shape_cast %6 : vector<1x256xi1> to vector<1x256xi1>
    %85 = vector.broadcast %84 : vector<1x256xi1> to vector<8x256xi1>
    %86 = vector.broadcast %cst_62 : f32 to vector<8x256xf32>
    %87 = arith.select %85, %83, %86 : vector<8x256xi1>, vector<8x256xf32>
    %c64 = arith.constant 64 : index
    %c0_63 = arith.constant 0 : index
    %88 = vector.load %arg15[%c64, %c0_63] : memref<72x256xf32, #tpu.memory_space<vmem>>, vector<8x256xf32>
    tpu.vector_store %arg15[%c64, %c0_63], %87 {strides = array<i32>} : memref<72x256xf32, #tpu.memory_space<vmem>>, vector<8x256xf32>,
    %c0_64 = arith.constant 0 : index
    %c0_65 = arith.constant 0 : index
    %89 = vector.load %arg15[%c0_64, %c0_65] : memref<72x256xf32, #tpu.memory_space<vmem>>, vector<72x256xf32>
    %cst_66 = arith.constant dense<0.000000e+00> : vector<4x256xf32>
    %90 = tpu.matmul %42, %89, %cst_66 {dimension_numbers = #tpu.dot_dimension_numbers<[1], [0], [0], [1], [0, 0, 1, 1], [], []>} : vector<4x72xf32>, vector<72x256xf32>, vector<4x256xf32> -> vector<4x256xf32>
    %c0_67 = arith.constant 0 : index
    %c0_68 = arith.constant 0 : index
    %91 = vector.load %arg10[%c0_67, %c0_68] : memref<4x2xf32, #tpu.memory_space<vmem>>, vector<4x1xf32>
    %92 = vector.broadcast %91 : vector<4x1xf32> to vector<4x256xf32>
    %93 = arith.mulf %90, %92 : vector<4x256xf32>
    %c0_69 = arith.constant 0 : index
    %c1_70 = arith.constant 1 : index
    %94 = vector.load %arg10[%c0_69, %c1_70] : memref<4x2xf32, #tpu.memory_space<vmem>>, vector<4x1xf32>
    %95 = vector.broadcast %94 : vector<4x1xf32> to vector<4x256xf32>
    %96 = arith.addf %93, %95 : vector<4x256xf32>
    %cst_71 = arith.constant 0.000000e+00 : f32
    %97 = vector.broadcast %cst_71 : f32 to vector<4x256xf32>
    %98 = arith.maximumf %96, %97 : vector<4x256xf32>
    %c0_72 = arith.constant 0 : index
    %c0_73 = arith.constant 0 : index
    %99 = vector.load %arg11[%c0_72, %c0_73] : memref<8x36xf32, #tpu.memory_space<vmem>>, vector<8x36xf32>
    %cst_74 = arith.constant 0.000000e+00 : f32
    %100 = vector.broadcast %cst_74 : f32 to vector<4x17xf32>
    %c0_75 = arith.constant 0 : index
    %c0_76 = arith.constant 0 : index
    %101 = vector.load %arg14[%c0_75, %c0_76] : memref<8x290xf32, #tpu.memory_space<vmem>>, vector<4x17xf32>
    tpu.vector_store %arg14[%c0_75, %c0_76], %100 {strides = array<i32>} : memref<8x290xf32, #tpu.memory_space<vmem>>, vector<4x17xf32>,
    %c0_77 = arith.constant 0 : index
    %c273_78 = arith.constant 273 : index
    %102 = vector.load %arg14[%c0_77, %c273_78] : memref<8x290xf32, #tpu.memory_space<vmem>>, vector<4x17xf32>
    tpu.vector_store %arg14[%c0_77, %c273_78], %100 {strides = array<i32>} : memref<8x290xf32, #tpu.memory_space<vmem>>, vector<4x17xf32>,
    %c0_79 = arith.constant 0 : index
    %c17_80 = arith.constant 17 : index
    %103 = vector.load %arg14[%c0_79, %c17_80] : memref<8x290xf32, #tpu.memory_space<vmem>>, vector<4x256xf32>
    tpu.vector_store %arg14[%c0_79, %c17_80], %98 {strides = array<i32>} : memref<8x290xf32, #tpu.memory_space<vmem>>, vector<4x256xf32>,
    %c0_81 = arith.constant 0 : index
    %c0_82 = arith.constant 0 : index
    %104 = vector.load %arg14[%c0_81, %c0_82] : memref<8x290xf32, #tpu.memory_space<vmem>>, vector<4x256xf32>
    %cst_83 = arith.constant 0.000000e+00 : f32
    %105 = vector.shape_cast %4 : vector<1x256xi1> to vector<1x256xi1>
    %106 = vector.broadcast %105 : vector<1x256xi1> to vector<4x256xi1>
    %107 = vector.broadcast %cst_83 : f32 to vector<4x256xf32>
    %108 = arith.select %106, %104, %107 : vector<4x256xi1>, vector<4x256xf32>
    %c0_84 = arith.constant 0 : index
    %c0_85 = arith.constant 0 : index
    %109 = vector.load %arg15[%c0_84, %c0_85] : memref<72x256xf32, #tpu.memory_space<vmem>>, vector<4x256xf32>
    tpu.vector_store %arg15[%c0_84, %c0_85], %108 {strides = array<i32>} : memref<72x256xf32, #tpu.memory_space<vmem>>, vector<4x256xf32>,
    %c0_86 = arith.constant 0 : index
    %c1_87 = arith.constant 1 : index
    %110 = vector.load %arg14[%c0_86, %c1_87] : memref<8x290xf32, #tpu.memory_space<vmem>>, vector<4x256xf32>
    %c4 = arith.constant 4 : index
    %c0_88 = arith.constant 0 : index
    %111 = vector.load %arg15[%c4, %c0_88] : memref<72x256xf32, #tpu.memory_space<vmem>>, vector<4x256xf32>
    tpu.vector_store %arg15[%c4, %c0_88], %110 {strides = array<i32>} : memref<72x256xf32, #tpu.memory_space<vmem>>, vector<4x256xf32>,
    %c0_89 = arith.constant 0 : index
    %c2_90 = arith.constant 2 : index
    %112 = vector.load %arg14[%c0_89, %c2_90] : memref<8x290xf32, #tpu.memory_space<vmem>>, vector<4x256xf32>
    %cst_91 = arith.constant 0.000000e+00 : f32
    %113 = vector.shape_cast %6 : vector<1x256xi1> to vector<1x256xi1>
    %114 = vector.broadcast %113 : vector<1x256xi1> to vector<4x256xi1>
    %115 = vector.broadcast %cst_91 : f32 to vector<4x256xf32>
    %116 = arith.select %114, %112, %115 : vector<4x256xi1>, vector<4x256xf32>
    %c8_92 = arith.constant 8 : index
    %c0_93 = arith.constant 0 : index
    %117 = vector.load %arg15[%c8_92, %c0_93] : memref<72x256xf32, #tpu.memory_space<vmem>>, vector<4x256xf32>
    tpu.vector_store %arg15[%c8_92, %c0_93], %116 {strides = array<i32>} : memref<72x256xf32, #tpu.memory_space<vmem>>, vector<4x256xf32>,
    %c0_94 = arith.constant 0 : index
    %c16_95 = arith.constant 16 : index
    %118 = vector.load %arg14[%c0_94, %c16_95] : memref<8x290xf32, #tpu.memory_space<vmem>>, vector<4x256xf32>
    %cst_96 = arith.constant 0.000000e+00 : f32
    %119 = vector.shape_cast %4 : vector<1x256xi1> to vector<1x256xi1>
    %120 = vector.broadcast %119 : vector<1x256xi1> to vector<4x256xi1>
    %121 = vector.broadcast %cst_96 : f32 to vector<4x256xf32>
    %122 = arith.select %120, %118, %121 : vector<4x256xi1>, vector<4x256xf32>
    %c12 = arith.constant 12 : index
    %c0_97 = arith.constant 0 : index
    %123 = vector.load %arg15[%c12, %c0_97] : memref<72x256xf32, #tpu.memory_space<vmem>>, vector<4x256xf32>
    tpu.vector_store %arg15[%c12, %c0_97], %122 {strides = array<i32>} : memref<72x256xf32, #tpu.memory_space<vmem>>, vector<4x256xf32>,
    %c0_98 = arith.constant 0 : index
    %c17_99 = arith.constant 17 : index
    %124 = vector.load %arg14[%c0_98, %c17_99] : memref<8x290xf32, #tpu.memory_space<vmem>>, vector<4x256xf32>
    %c16_100 = arith.constant 16 : index
    %c0_101 = arith.constant 0 : index
    %125 = vector.load %arg15[%c16_100, %c0_101] : memref<72x256xf32, #tpu.memory_space<vmem>>, vector<4x256xf32>
    tpu.vector_store %arg15[%c16_100, %c0_101], %124 {strides = array<i32>} : memref<72x256xf32, #tpu.memory_space<vmem>>, vector<4x256xf32>,
    %c0_102 = arith.constant 0 : index
    %c18_103 = arith.constant 18 : index
    %126 = vector.load %arg14[%c0_102, %c18_103] : memref<8x290xf32, #tpu.memory_space<vmem>>, vector<4x256xf32>
    %cst_104 = arith.constant 0.000000e+00 : f32
    %127 = vector.shape_cast %6 : vector<1x256xi1> to vector<1x256xi1>
    %128 = vector.broadcast %127 : vector<1x256xi1> to vector<4x256xi1>
    %129 = vector.broadcast %cst_104 : f32 to vector<4x256xf32>
    %130 = arith.select %128, %126, %129 : vector<4x256xi1>, vector<4x256xf32>
    %c20 = arith.constant 20 : index
    %c0_105 = arith.constant 0 : index
    %131 = vector.load %arg15[%c20, %c0_105] : memref<72x256xf32, #tpu.memory_space<vmem>>, vector<4x256xf32>
    tpu.vector_store %arg15[%c20, %c0_105], %130 {strides = array<i32>} : memref<72x256xf32, #tpu.memory_space<vmem>>, vector<4x256xf32>,
    %c0_106 = arith.constant 0 : index
    %c32_107 = arith.constant 32 : index
    %132 = vector.load %arg14[%c0_106, %c32_107] : memref<8x290xf32, #tpu.memory_space<vmem>>, vector<4x256xf32>
    %cst_108 = arith.constant 0.000000e+00 : f32
    %133 = vector.shape_cast %4 : vector<1x256xi1> to vector<1x256xi1>
    %134 = vector.broadcast %133 : vector<1x256xi1> to vector<4x256xi1>
    %135 = vector.broadcast %cst_108 : f32 to vector<4x256xf32>
    %136 = arith.select %134, %132, %135 : vector<4x256xi1>, vector<4x256xf32>
    %c24_109 = arith.constant 24 : index
    %c0_110 = arith.constant 0 : index
    %137 = vector.load %arg15[%c24_109, %c0_110] : memref<72x256xf32, #tpu.memory_space<vmem>>, vector<4x256xf32>
    tpu.vector_store %arg15[%c24_109, %c0_110], %136 {strides = array<i32>} : memref<72x256xf32, #tpu.memory_space<vmem>>, vector<4x256xf32>,
    %c0_111 = arith.constant 0 : index
    %c33_112 = arith.constant 33 : index
    %138 = vector.load %arg14[%c0_111, %c33_112] : memref<8x290xf32, #tpu.memory_space<vmem>>, vector<4x256xf32>
    %c28 = arith.constant 28 : index
    %c0_113 = arith.constant 0 : index
    %139 = vector.load %arg15[%c28, %c0_113] : memref<72x256xf32, #tpu.memory_space<vmem>>, vector<4x256xf32>
    tpu.vector_store %arg15[%c28, %c0_113], %138 {strides = array<i32>} : memref<72x256xf32, #tpu.memory_space<vmem>>, vector<4x256xf32>,
    %c0_114 = arith.constant 0 : index
    %c34_115 = arith.constant 34 : index
    %140 = vector.load %arg14[%c0_114, %c34_115] : memref<8x290xf32, #tpu.memory_space<vmem>>, vector<4x256xf32>
    %cst_116 = arith.constant 0.000000e+00 : f32
    %141 = vector.shape_cast %6 : vector<1x256xi1> to vector<1x256xi1>
    %142 = vector.broadcast %141 : vector<1x256xi1> to vector<4x256xi1>
    %143 = vector.broadcast %cst_116 : f32 to vector<4x256xf32>
    %144 = arith.select %142, %140, %143 : vector<4x256xi1>, vector<4x256xf32>
    %c32_117 = arith.constant 32 : index
    %c0_118 = arith.constant 0 : index
    %145 = vector.load %arg15[%c32_117, %c0_118] : memref<72x256xf32, #tpu.memory_space<vmem>>, vector<4x256xf32>
    tpu.vector_store %arg15[%c32_117, %c0_118], %144 {strides = array<i32>} : memref<72x256xf32, #tpu.memory_space<vmem>>, vector<4x256xf32>,
    %c0_119 = arith.constant 0 : index
    %c0_120 = arith.constant 0 : index
    %146 = vector.load %arg15[%c0_119, %c0_120] : memref<72x256xf32, #tpu.memory_space<vmem>>, vector<36x256xf32>
    %cst_121 = arith.constant dense<0.000000e+00> : vector<8x256xf32>
    %147 = tpu.matmul %99, %146, %cst_121 {dimension_numbers = #tpu.dot_dimension_numbers<[1], [0], [0], [1], [0, 0, 1, 1], [], []>} : vector<8x36xf32>, vector<36x256xf32>, vector<8x256xf32> -> vector<8x256xf32>
    %c0_122 = arith.constant 0 : index
    %c0_123 = arith.constant 0 : index
    %148 = vector.load %arg12[%c0_122, %c0_123] : memref<8x1xf32, #tpu.memory_space<vmem>>, vector<8x1xf32>
    %149 = vector.broadcast %148 : vector<8x1xf32> to vector<8x256xf32>
    %150 = arith.addf %147, %149 : vector<8x256xf32>
    %c0_124 = arith.constant 0 : index
    %c0_125 = arith.constant 0 : index
    %c0_126 = arith.constant 0 : index
    %151 = vector.load %arg13[%c0_124, %c0_125, %c0_126] : memref<1x8x256xf32, #tpu.memory_space<vmem>>, vector<1x8x256xf32>
    %152 = vector.shape_cast %151 : vector<1x8x256xf32> to vector<8x256xf32>
    %153 = vector.shape_cast %150 : vector<8x256xf32> to vector<1x8x256xf32>
    tpu.vector_store %arg13[%c0_124, %c0_125, %c0_126], %153 {strides = array<i32>} : memref<1x8x256xf32, #tpu.memory_space<vmem>>, vector<1x8x256xf32>,
    return
  }
  func.func @transform_0(%arg0: i32) -> (i32, i32, i32) {
    %c0_i32 = arith.constant 0 : i32
    %c0_i32_0 = arith.constant 0 : i32
    %c0_i32_1 = arith.constant 0 : i32
    return %arg0, %c0_i32, %c0_i32_0 : i32, i32, i32
  }
  func.func @transform_1(%arg0: i32) -> (i32, i32, i32) {
    %c0_i32 = arith.constant 0 : i32
    %c0_i32_0 = arith.constant 0 : i32
    %c0_i32_1 = arith.constant 0 : i32
    return %arg0, %c0_i32, %c0_i32_0 : i32, i32, i32
  }
  func.func @transform_2(%arg0: i32) -> (i32, i32) {
    %c0_i32 = arith.constant 0 : i32
    %c0_i32_0 = arith.constant 0 : i32
    %c0_i32_1 = arith.constant 0 : i32
    return %c0_i32, %c0_i32_0 : i32, i32
  }
  func.func @transform_3(%arg0: i32) -> (i32, i32) {
    %c0_i32 = arith.constant 0 : i32
    %c0_i32_0 = arith.constant 0 : i32
    %c0_i32_1 = arith.constant 0 : i32
    return %c0_i32, %c0_i32_0 : i32, i32
  }
  func.func @transform_4(%arg0: i32) -> (i32, i32) {
    %c0_i32 = arith.constant 0 : i32
    %c0_i32_0 = arith.constant 0 : i32
    %c0_i32_1 = arith.constant 0 : i32
    return %c0_i32, %c0_i32_0 : i32, i32
  }
  func.func @transform_5(%arg0: i32) -> (i32, i32) {
    %c0_i32 = arith.constant 0 : i32
    %c0_i32_0 = arith.constant 0 : i32
    %c0_i32_1 = arith.constant 0 : i32
    return %c0_i32, %c0_i32_0 : i32, i32
  }
  func.func @transform_6(%arg0: i32) -> (i32, i32) {
    %c0_i32 = arith.constant 0 : i32
    %c0_i32_0 = arith.constant 0 : i32
    %c0_i32_1 = arith.constant 0 : i32
    return %c0_i32, %c0_i32_0 : i32, i32
  }
  func.func @transform_7(%arg0: i32) -> (i32, i32) {
    %c0_i32 = arith.constant 0 : i32
    %c0_i32_0 = arith.constant 0 : i32
    %c0_i32_1 = arith.constant 0 : i32
    return %c0_i32, %c0_i32_0 : i32, i32
  }
  func.func @transform_8(%arg0: i32) -> (i32, i32) {
    %c0_i32 = arith.constant 0 : i32
    %c0_i32_0 = arith.constant 0 : i32
    %c0_i32_1 = arith.constant 0 : i32
    return %c0_i32, %c0_i32_0 : i32, i32
  }
  func.func @transform_9(%arg0: i32) -> (i32, i32) {
    %c0_i32 = arith.constant 0 : i32
    %c0_i32_0 = arith.constant 0 : i32
    %c0_i32_1 = arith.constant 0 : i32
    return %c0_i32, %c0_i32_0 : i32, i32
  }
  func.func @transform_10(%arg0: i32) -> (i32, i32) {
    %c0_i32 = arith.constant 0 : i32
    %c0_i32_0 = arith.constant 0 : i32
    %c0_i32_1 = arith.constant 0 : i32
    return %c0_i32, %c0_i32_0 : i32, i32
  }
  func.func @transform_11(%arg0: i32) -> (i32, i32) {
    %c0_i32 = arith.constant 0 : i32
    %c0_i32_0 = arith.constant 0 : i32
    %c0_i32_1 = arith.constant 0 : i32
    return %c0_i32, %c0_i32_0 : i32, i32
  }
  func.func @transform_12(%arg0: i32) -> (i32, i32, i32) {
    %c0_i32 = arith.constant 0 : i32
    %c0_i32_0 = arith.constant 0 : i32
    %c0_i32_1 = arith.constant 0 : i32
    return %arg0, %c0_i32, %c0_i32_0 : i32, i32, i32
  }
}

module attributes {stable_mosaic.version = 11 : i64} {
  func.func @_branch_kernel(%arg0: i32, %arg1: memref<1x4x1024xf32, #tpu.memory_space<vmem>>, %arg2: memref<1x6x1024xf32, #tpu.memory_space<vmem>>, %arg3: memref<4x6xf32, #tpu.memory_space<vmem>>, %arg4: memref<4x2xf32, #tpu.memory_space<vmem>>, %arg5: memref<4x4xf32, #tpu.memory_space<vmem>>, %arg6: memref<4x4xf32, #tpu.memory_space<vmem>>, %arg7: memref<4x2xf32, #tpu.memory_space<vmem>>, %arg8: memref<4x2xf32, #tpu.memory_space<vmem>>, %arg9: memref<2x36xf32, #tpu.memory_space<vmem>>, %arg10: memref<2x2xf32, #tpu.memory_space<vmem>>, %arg11: memref<4x18xf32, #tpu.memory_space<vmem>>, %arg12: memref<4x1xf32, #tpu.memory_space<vmem>>, %arg13: memref<1x4x1024xf32, #tpu.memory_space<vmem>>, %arg14: memref<4x1090xf32, #tpu.memory_space<vmem>>, %arg15: memref<36x1024xf32, #tpu.memory_space<vmem>>) attributes {dimension_semantics = [#tpu.dimension_semantics<parallel>], iteration_bounds = array<i64: 2>, scalar_prefetch = 0 : i64, scratch_operands = 2 : i64, tpu.core_type = #tpu.core_type<tc>, window_params = [{transform_indices = @transform_0, window_bounds = array<i64: 1, 4, 1024>}, {transform_indices = @transform_1, window_bounds = array<i64: 1, 6, 1024>}, {pipeline_mode = #tpu.pipeline_mode<synchronous>, transform_indices = @transform_2, window_bounds = array<i64: 4, 6>}, {pipeline_mode = #tpu.pipeline_mode<synchronous>, transform_indices = @transform_3, window_bounds = array<i64: 4, 2>}, {pipeline_mode = #tpu.pipeline_mode<synchronous>, transform_indices = @transform_4, window_bounds = array<i64: 4, 4>}, {pipeline_mode = #tpu.pipeline_mode<synchronous>, transform_indices = @transform_5, window_bounds = array<i64: 4, 4>}, {pipeline_mode = #tpu.pipeline_mode<synchronous>, transform_indices = @transform_6, window_bounds = array<i64: 4, 2>}, {pipeline_mode = #tpu.pipeline_mode<synchronous>, transform_indices = @transform_7, window_bounds = array<i64: 4, 2>}, {pipeline_mode = #tpu.pipeline_mode<synchronous>, transform_indices = @transform_8, window_bounds = array<i64: 2, 36>}, {pipeline_mode = #tpu.pipeline_mode<synchronous>, transform_indices = @transform_9, window_bounds = array<i64: 2, 2>}, {pipeline_mode = #tpu.pipeline_mode<synchronous>, transform_indices = @transform_10, window_bounds = array<i64: 4, 18>}, {pipeline_mode = #tpu.pipeline_mode<synchronous>, transform_indices = @transform_11, window_bounds = array<i64: 4, 1>}, {transform_indices = @transform_12, window_bounds = array<i64: 1, 4, 1024>}]} {
    %0 = tpu.iota {dimensions = array<i32: 1>} : vector<1x1024xi32>
    %c31_i32 = arith.constant 31 : i32
    %1 = vector.broadcast %c31_i32 : i32 to vector<1x1024xi32>
    %2 = arith.andi %0, %1 : vector<1x1024xi32>
    %c1_i32 = arith.constant 1 : i32
    %3 = vector.broadcast %c1_i32 : i32 to vector<1x1024xi32>
    %4 = arith.cmpi sge, %2, %3 : vector<1x1024xi32>
    %c30_i32 = arith.constant 30 : i32
    %5 = vector.broadcast %c30_i32 : i32 to vector<1x1024xi32>
    %6 = arith.cmpi sle, %2, %5 : vector<1x1024xi32>
    %c0 = arith.constant 0 : index
    %c0_0 = arith.constant 0 : index
    %c0_1 = arith.constant 0 : index
    %7 = vector.load %arg1[%c0, %c0_0, %c0_1] : memref<1x4x1024xf32, #tpu.memory_space<vmem>>, vector<1x4x1024xf32>
    %8 = vector.shape_cast %7 : vector<1x4x1024xf32> to vector<4x1024xf32>
    %c0_2 = arith.constant 0 : index
    %c0_3 = arith.constant 0 : index
    %9 = vector.load %arg3[%c0_2, %c0_3] : memref<4x6xf32, #tpu.memory_space<vmem>>, vector<4x6xf32>
    %c0_4 = arith.constant 0 : index
    %c0_5 = arith.constant 0 : index
    %c0_6 = arith.constant 0 : index
    %10 = vector.load %arg2[%c0_4, %c0_5, %c0_6] : memref<1x6x1024xf32, #tpu.memory_space<vmem>>, vector<1x6x1024xf32>
    %11 = vector.shape_cast %10 : vector<1x6x1024xf32> to vector<6x1024xf32>
    %cst = arith.constant dense<0.000000e+00> : vector<4x1024xf32>
    %12 = tpu.matmul %9, %11, %cst {dimension_numbers = #tpu.dot_dimension_numbers<[1], [0], [0], [1], [0, 0, 1, 1], [], []>} : vector<4x6xf32>, vector<6x1024xf32>, vector<4x1024xf32> -> vector<4x1024xf32>
    %c0_7 = arith.constant 0 : index
    %c0_8 = arith.constant 0 : index
    %13 = vector.load %arg4[%c0_7, %c0_8] : memref<4x2xf32, #tpu.memory_space<vmem>>, vector<4x1xf32>
    %14 = vector.broadcast %13 : vector<4x1xf32> to vector<4x1024xf32>
    %15 = arith.mulf %12, %14 : vector<4x1024xf32>
    %c0_9 = arith.constant 0 : index
    %c1 = arith.constant 1 : index
    %16 = vector.load %arg4[%c0_9, %c1] : memref<4x2xf32, #tpu.memory_space<vmem>>, vector<4x1xf32>
    %17 = vector.broadcast %16 : vector<4x1xf32> to vector<4x1024xf32>
    %18 = arith.addf %15, %17 : vector<4x1024xf32>
    %cst_10 = arith.constant 0.000000e+00 : f32
    %19 = vector.broadcast %cst_10 : f32 to vector<4x1024xf32>
    %20 = arith.maximumf %18, %19 : vector<4x1024xf32>
    %c0_11 = arith.constant 0 : index
    %c0_12 = arith.constant 0 : index
    %21 = vector.load %arg5[%c0_11, %c0_12] : memref<4x4xf32, #tpu.memory_space<vmem>>, vector<4x4xf32>
    %cst_13 = arith.constant dense<0.000000e+00> : vector<4x1024xf32>
    %22 = tpu.matmul %21, %8, %cst_13 {dimension_numbers = #tpu.dot_dimension_numbers<[1], [0], [0], [1], [0, 0, 1, 1], [], []>} : vector<4x4xf32>, vector<4x1024xf32>, vector<4x1024xf32> -> vector<4x1024xf32>
    %c0_14 = arith.constant 0 : index
    %c0_15 = arith.constant 0 : index
    %23 = vector.load %arg6[%c0_14, %c0_15] : memref<4x4xf32, #tpu.memory_space<vmem>>, vector<4x4xf32>
    %cst_16 = arith.constant dense<0.000000e+00> : vector<4x1024xf32>
    %24 = tpu.matmul %23, %20, %cst_16 {dimension_numbers = #tpu.dot_dimension_numbers<[1], [0], [0], [1], [0, 0, 1, 1], [], []>} : vector<4x4xf32>, vector<4x1024xf32>, vector<4x1024xf32> -> vector<4x1024xf32>
    %25 = arith.addf %22, %24 : vector<4x1024xf32>
    %c0_17 = arith.constant 0 : index
    %c0_18 = arith.constant 0 : index
    %26 = vector.load %arg7[%c0_17, %c0_18] : memref<4x2xf32, #tpu.memory_space<vmem>>, vector<4x1xf32>
    %27 = vector.broadcast %26 : vector<4x1xf32> to vector<4x1024xf32>
    %28 = arith.mulf %25, %27 : vector<4x1024xf32>
    %c0_19 = arith.constant 0 : index
    %c1_20 = arith.constant 1 : index
    %29 = vector.load %arg7[%c0_19, %c1_20] : memref<4x2xf32, #tpu.memory_space<vmem>>, vector<4x1xf32>
    %30 = vector.broadcast %29 : vector<4x1xf32> to vector<4x1024xf32>
    %31 = arith.addf %28, %30 : vector<4x1024xf32>
    %cst_21 = arith.constant 0.000000e+00 : f32
    %32 = vector.broadcast %cst_21 : f32 to vector<4x1024xf32>
    %33 = arith.maximumf %31, %32 : vector<4x1024xf32>
    %c0_22 = arith.constant 0 : index
    %c0_23 = arith.constant 0 : index
    %34 = vector.load %arg8[%c0_22, %c0_23] : memref<4x2xf32, #tpu.memory_space<vmem>>, vector<4x1xf32>
    %35 = vector.broadcast %34 : vector<4x1xf32> to vector<4x1024xf32>
    %36 = arith.mulf %33, %35 : vector<4x1024xf32>
    %c0_24 = arith.constant 0 : index
    %c1_25 = arith.constant 1 : index
    %37 = vector.load %arg8[%c0_24, %c1_25] : memref<4x2xf32, #tpu.memory_space<vmem>>, vector<4x1xf32>
    %38 = vector.broadcast %37 : vector<4x1xf32> to vector<4x1024xf32>
    %39 = arith.addf %36, %38 : vector<4x1024xf32>
    %cst_26 = arith.constant 0.000000e+00 : f32
    %40 = vector.broadcast %cst_26 : f32 to vector<4x1024xf32>
    %41 = arith.maximumf %39, %40 : vector<4x1024xf32>
    %c0_27 = arith.constant 0 : index
    %c0_28 = arith.constant 0 : index
    %42 = vector.load %arg9[%c0_27, %c0_28] : memref<2x36xf32, #tpu.memory_space<vmem>>, vector<2x36xf32>
    %cst_29 = arith.constant 0.000000e+00 : f32
    %43 = vector.broadcast %cst_29 : f32 to vector<4x33xf32>
    %c0_30 = arith.constant 0 : index
    %c0_31 = arith.constant 0 : index
    %44 = vector.load %arg14[%c0_30, %c0_31] : memref<4x1090xf32, #tpu.memory_space<vmem>>, vector<4x33xf32>
    tpu.vector_store %arg14[%c0_30, %c0_31], %43 {strides = array<i32>} : memref<4x1090xf32, #tpu.memory_space<vmem>>, vector<4x33xf32>,
    %c0_32 = arith.constant 0 : index
    %c1057 = arith.constant 1057 : index
    %45 = vector.load %arg14[%c0_32, %c1057] : memref<4x1090xf32, #tpu.memory_space<vmem>>, vector<4x33xf32>
    tpu.vector_store %arg14[%c0_32, %c1057], %43 {strides = array<i32>} : memref<4x1090xf32, #tpu.memory_space<vmem>>, vector<4x33xf32>,
    %c0_33 = arith.constant 0 : index
    %c33 = arith.constant 33 : index
    %46 = vector.load %arg14[%c0_33, %c33] : memref<4x1090xf32, #tpu.memory_space<vmem>>, vector<4x1024xf32>
    tpu.vector_store %arg14[%c0_33, %c33], %41 {strides = array<i32>} : memref<4x1090xf32, #tpu.memory_space<vmem>>, vector<4x1024xf32>,
    %c0_34 = arith.constant 0 : index
    %c0_35 = arith.constant 0 : index
    %47 = vector.load %arg14[%c0_34, %c0_35] : memref<4x1090xf32, #tpu.memory_space<vmem>>, vector<4x1024xf32>
    %cst_36 = arith.constant 0.000000e+00 : f32
    %48 = vector.shape_cast %4 : vector<1x1024xi1> to vector<1x1024xi1>
    %49 = vector.broadcast %48 : vector<1x1024xi1> to vector<4x1024xi1>
    %50 = vector.broadcast %cst_36 : f32 to vector<4x1024xf32>
    %51 = arith.select %49, %47, %50 : vector<4x1024xi1>, vector<4x1024xf32>
    %c0_37 = arith.constant 0 : index
    %c0_38 = arith.constant 0 : index
    %52 = vector.load %arg15[%c0_37, %c0_38] : memref<36x1024xf32, #tpu.memory_space<vmem>>, vector<4x1024xf32>
    tpu.vector_store %arg15[%c0_37, %c0_38], %51 {strides = array<i32>} : memref<36x1024xf32, #tpu.memory_space<vmem>>, vector<4x1024xf32>,
    %c0_39 = arith.constant 0 : index
    %c1_40 = arith.constant 1 : index
    %53 = vector.load %arg14[%c0_39, %c1_40] : memref<4x1090xf32, #tpu.memory_space<vmem>>, vector<4x1024xf32>
    %c4 = arith.constant 4 : index
    %c0_41 = arith.constant 0 : index
    %54 = vector.load %arg15[%c4, %c0_41] : memref<36x1024xf32, #tpu.memory_space<vmem>>, vector<4x1024xf32>
    tpu.vector_store %arg15[%c4, %c0_41], %53 {strides = array<i32>} : memref<36x1024xf32, #tpu.memory_space<vmem>>, vector<4x1024xf32>,
    %c0_42 = arith.constant 0 : index
    %c2 = arith.constant 2 : index
    %55 = vector.load %arg14[%c0_42, %c2] : memref<4x1090xf32, #tpu.memory_space<vmem>>, vector<4x1024xf32>
    %cst_43 = arith.constant 0.000000e+00 : f32
    %56 = vector.shape_cast %6 : vector<1x1024xi1> to vector<1x1024xi1>
    %57 = vector.broadcast %56 : vector<1x1024xi1> to vector<4x1024xi1>
    %58 = vector.broadcast %cst_43 : f32 to vector<4x1024xf32>
    %59 = arith.select %57, %55, %58 : vector<4x1024xi1>, vector<4x1024xf32>
    %c8 = arith.constant 8 : index
    %c0_44 = arith.constant 0 : index
    %60 = vector.load %arg15[%c8, %c0_44] : memref<36x1024xf32, #tpu.memory_space<vmem>>, vector<4x1024xf32>
    tpu.vector_store %arg15[%c8, %c0_44], %59 {strides = array<i32>} : memref<36x1024xf32, #tpu.memory_space<vmem>>, vector<4x1024xf32>,
    %c0_45 = arith.constant 0 : index
    %c32 = arith.constant 32 : index
    %61 = vector.load %arg14[%c0_45, %c32] : memref<4x1090xf32, #tpu.memory_space<vmem>>, vector<4x1024xf32>
    %cst_46 = arith.constant 0.000000e+00 : f32
    %62 = vector.shape_cast %4 : vector<1x1024xi1> to vector<1x1024xi1>
    %63 = vector.broadcast %62 : vector<1x1024xi1> to vector<4x1024xi1>
    %64 = vector.broadcast %cst_46 : f32 to vector<4x1024xf32>
    %65 = arith.select %63, %61, %64 : vector<4x1024xi1>, vector<4x1024xf32>
    %c12 = arith.constant 12 : index
    %c0_47 = arith.constant 0 : index
    %66 = vector.load %arg15[%c12, %c0_47] : memref<36x1024xf32, #tpu.memory_space<vmem>>, vector<4x1024xf32>
    tpu.vector_store %arg15[%c12, %c0_47], %65 {strides = array<i32>} : memref<36x1024xf32, #tpu.memory_space<vmem>>, vector<4x1024xf32>,
    %c0_48 = arith.constant 0 : index
    %c33_49 = arith.constant 33 : index
    %67 = vector.load %arg14[%c0_48, %c33_49] : memref<4x1090xf32, #tpu.memory_space<vmem>>, vector<4x1024xf32>
    %c16 = arith.constant 16 : index
    %c0_50 = arith.constant 0 : index
    %68 = vector.load %arg15[%c16, %c0_50] : memref<36x1024xf32, #tpu.memory_space<vmem>>, vector<4x1024xf32>
    tpu.vector_store %arg15[%c16, %c0_50], %67 {strides = array<i32>} : memref<36x1024xf32, #tpu.memory_space<vmem>>, vector<4x1024xf32>,
    %c0_51 = arith.constant 0 : index
    %c34 = arith.constant 34 : index
    %69 = vector.load %arg14[%c0_51, %c34] : memref<4x1090xf32, #tpu.memory_space<vmem>>, vector<4x1024xf32>
    %cst_52 = arith.constant 0.000000e+00 : f32
    %70 = vector.shape_cast %6 : vector<1x1024xi1> to vector<1x1024xi1>
    %71 = vector.broadcast %70 : vector<1x1024xi1> to vector<4x1024xi1>
    %72 = vector.broadcast %cst_52 : f32 to vector<4x1024xf32>
    %73 = arith.select %71, %69, %72 : vector<4x1024xi1>, vector<4x1024xf32>
    %c20 = arith.constant 20 : index
    %c0_53 = arith.constant 0 : index
    %74 = vector.load %arg15[%c20, %c0_53] : memref<36x1024xf32, #tpu.memory_space<vmem>>, vector<4x1024xf32>
    tpu.vector_store %arg15[%c20, %c0_53], %73 {strides = array<i32>} : memref<36x1024xf32, #tpu.memory_space<vmem>>, vector<4x1024xf32>,
    %c0_54 = arith.constant 0 : index
    %c64 = arith.constant 64 : index
    %75 = vector.load %arg14[%c0_54, %c64] : memref<4x1090xf32, #tpu.memory_space<vmem>>, vector<4x1024xf32>
    %cst_55 = arith.constant 0.000000e+00 : f32
    %76 = vector.shape_cast %4 : vector<1x1024xi1> to vector<1x1024xi1>
    %77 = vector.broadcast %76 : vector<1x1024xi1> to vector<4x1024xi1>
    %78 = vector.broadcast %cst_55 : f32 to vector<4x1024xf32>
    %79 = arith.select %77, %75, %78 : vector<4x1024xi1>, vector<4x1024xf32>
    %c24 = arith.constant 24 : index
    %c0_56 = arith.constant 0 : index
    %80 = vector.load %arg15[%c24, %c0_56] : memref<36x1024xf32, #tpu.memory_space<vmem>>, vector<4x1024xf32>
    tpu.vector_store %arg15[%c24, %c0_56], %79 {strides = array<i32>} : memref<36x1024xf32, #tpu.memory_space<vmem>>, vector<4x1024xf32>,
    %c0_57 = arith.constant 0 : index
    %c65 = arith.constant 65 : index
    %81 = vector.load %arg14[%c0_57, %c65] : memref<4x1090xf32, #tpu.memory_space<vmem>>, vector<4x1024xf32>
    %c28 = arith.constant 28 : index
    %c0_58 = arith.constant 0 : index
    %82 = vector.load %arg15[%c28, %c0_58] : memref<36x1024xf32, #tpu.memory_space<vmem>>, vector<4x1024xf32>
    tpu.vector_store %arg15[%c28, %c0_58], %81 {strides = array<i32>} : memref<36x1024xf32, #tpu.memory_space<vmem>>, vector<4x1024xf32>,
    %c0_59 = arith.constant 0 : index
    %c66 = arith.constant 66 : index
    %83 = vector.load %arg14[%c0_59, %c66] : memref<4x1090xf32, #tpu.memory_space<vmem>>, vector<4x1024xf32>
    %cst_60 = arith.constant 0.000000e+00 : f32
    %84 = vector.shape_cast %6 : vector<1x1024xi1> to vector<1x1024xi1>
    %85 = vector.broadcast %84 : vector<1x1024xi1> to vector<4x1024xi1>
    %86 = vector.broadcast %cst_60 : f32 to vector<4x1024xf32>
    %87 = arith.select %85, %83, %86 : vector<4x1024xi1>, vector<4x1024xf32>
    %c32_61 = arith.constant 32 : index
    %c0_62 = arith.constant 0 : index
    %88 = vector.load %arg15[%c32_61, %c0_62] : memref<36x1024xf32, #tpu.memory_space<vmem>>, vector<4x1024xf32>
    tpu.vector_store %arg15[%c32_61, %c0_62], %87 {strides = array<i32>} : memref<36x1024xf32, #tpu.memory_space<vmem>>, vector<4x1024xf32>,
    %c0_63 = arith.constant 0 : index
    %c0_64 = arith.constant 0 : index
    %89 = vector.load %arg15[%c0_63, %c0_64] : memref<36x1024xf32, #tpu.memory_space<vmem>>, vector<36x1024xf32>
    %cst_65 = arith.constant dense<0.000000e+00> : vector<2x1024xf32>
    %90 = tpu.matmul %42, %89, %cst_65 {dimension_numbers = #tpu.dot_dimension_numbers<[1], [0], [0], [1], [0, 0, 1, 1], [], []>} : vector<2x36xf32>, vector<36x1024xf32>, vector<2x1024xf32> -> vector<2x1024xf32>
    %c0_66 = arith.constant 0 : index
    %c0_67 = arith.constant 0 : index
    %91 = vector.load %arg10[%c0_66, %c0_67] : memref<2x2xf32, #tpu.memory_space<vmem>>, vector<2x1xf32>
    %92 = vector.broadcast %91 : vector<2x1xf32> to vector<2x1024xf32>
    %93 = arith.mulf %90, %92 : vector<2x1024xf32>
    %c0_68 = arith.constant 0 : index
    %c1_69 = arith.constant 1 : index
    %94 = vector.load %arg10[%c0_68, %c1_69] : memref<2x2xf32, #tpu.memory_space<vmem>>, vector<2x1xf32>
    %95 = vector.broadcast %94 : vector<2x1xf32> to vector<2x1024xf32>
    %96 = arith.addf %93, %95 : vector<2x1024xf32>
    %cst_70 = arith.constant 0.000000e+00 : f32
    %97 = vector.broadcast %cst_70 : f32 to vector<2x1024xf32>
    %98 = arith.maximumf %96, %97 : vector<2x1024xf32>
    %c0_71 = arith.constant 0 : index
    %c0_72 = arith.constant 0 : index
    %99 = vector.load %arg11[%c0_71, %c0_72] : memref<4x18xf32, #tpu.memory_space<vmem>>, vector<4x18xf32>
    %cst_73 = arith.constant 0.000000e+00 : f32
    %100 = vector.broadcast %cst_73 : f32 to vector<2x33xf32>
    %c0_74 = arith.constant 0 : index
    %c0_75 = arith.constant 0 : index
    %101 = vector.load %arg14[%c0_74, %c0_75] : memref<4x1090xf32, #tpu.memory_space<vmem>>, vector<2x33xf32>
    tpu.vector_store %arg14[%c0_74, %c0_75], %100 {strides = array<i32>} : memref<4x1090xf32, #tpu.memory_space<vmem>>, vector<2x33xf32>,
    %c0_76 = arith.constant 0 : index
    %c1057_77 = arith.constant 1057 : index
    %102 = vector.load %arg14[%c0_76, %c1057_77] : memref<4x1090xf32, #tpu.memory_space<vmem>>, vector<2x33xf32>
    tpu.vector_store %arg14[%c0_76, %c1057_77], %100 {strides = array<i32>} : memref<4x1090xf32, #tpu.memory_space<vmem>>, vector<2x33xf32>,
    %c0_78 = arith.constant 0 : index
    %c33_79 = arith.constant 33 : index
    %103 = vector.load %arg14[%c0_78, %c33_79] : memref<4x1090xf32, #tpu.memory_space<vmem>>, vector<2x1024xf32>
    tpu.vector_store %arg14[%c0_78, %c33_79], %98 {strides = array<i32>} : memref<4x1090xf32, #tpu.memory_space<vmem>>, vector<2x1024xf32>,
    %c0_80 = arith.constant 0 : index
    %c0_81 = arith.constant 0 : index
    %104 = vector.load %arg14[%c0_80, %c0_81] : memref<4x1090xf32, #tpu.memory_space<vmem>>, vector<2x1024xf32>
    %cst_82 = arith.constant 0.000000e+00 : f32
    %105 = vector.shape_cast %4 : vector<1x1024xi1> to vector<1x1024xi1>
    %106 = vector.broadcast %105 : vector<1x1024xi1> to vector<2x1024xi1>
    %107 = vector.broadcast %cst_82 : f32 to vector<2x1024xf32>
    %108 = arith.select %106, %104, %107 : vector<2x1024xi1>, vector<2x1024xf32>
    %c0_83 = arith.constant 0 : index
    %c0_84 = arith.constant 0 : index
    %109 = vector.load %arg15[%c0_83, %c0_84] : memref<36x1024xf32, #tpu.memory_space<vmem>>, vector<2x1024xf32>
    tpu.vector_store %arg15[%c0_83, %c0_84], %108 {strides = array<i32>} : memref<36x1024xf32, #tpu.memory_space<vmem>>, vector<2x1024xf32>,
    %c0_85 = arith.constant 0 : index
    %c1_86 = arith.constant 1 : index
    %110 = vector.load %arg14[%c0_85, %c1_86] : memref<4x1090xf32, #tpu.memory_space<vmem>>, vector<2x1024xf32>
    %c2_87 = arith.constant 2 : index
    %c0_88 = arith.constant 0 : index
    %111 = vector.load %arg15[%c2_87, %c0_88] : memref<36x1024xf32, #tpu.memory_space<vmem>>, vector<2x1024xf32>
    tpu.vector_store %arg15[%c2_87, %c0_88], %110 {strides = array<i32>} : memref<36x1024xf32, #tpu.memory_space<vmem>>, vector<2x1024xf32>,
    %c0_89 = arith.constant 0 : index
    %c2_90 = arith.constant 2 : index
    %112 = vector.load %arg14[%c0_89, %c2_90] : memref<4x1090xf32, #tpu.memory_space<vmem>>, vector<2x1024xf32>
    %cst_91 = arith.constant 0.000000e+00 : f32
    %113 = vector.shape_cast %6 : vector<1x1024xi1> to vector<1x1024xi1>
    %114 = vector.broadcast %113 : vector<1x1024xi1> to vector<2x1024xi1>
    %115 = vector.broadcast %cst_91 : f32 to vector<2x1024xf32>
    %116 = arith.select %114, %112, %115 : vector<2x1024xi1>, vector<2x1024xf32>
    %c4_92 = arith.constant 4 : index
    %c0_93 = arith.constant 0 : index
    %117 = vector.load %arg15[%c4_92, %c0_93] : memref<36x1024xf32, #tpu.memory_space<vmem>>, vector<2x1024xf32>
    tpu.vector_store %arg15[%c4_92, %c0_93], %116 {strides = array<i32>} : memref<36x1024xf32, #tpu.memory_space<vmem>>, vector<2x1024xf32>,
    %c0_94 = arith.constant 0 : index
    %c32_95 = arith.constant 32 : index
    %118 = vector.load %arg14[%c0_94, %c32_95] : memref<4x1090xf32, #tpu.memory_space<vmem>>, vector<2x1024xf32>
    %cst_96 = arith.constant 0.000000e+00 : f32
    %119 = vector.shape_cast %4 : vector<1x1024xi1> to vector<1x1024xi1>
    %120 = vector.broadcast %119 : vector<1x1024xi1> to vector<2x1024xi1>
    %121 = vector.broadcast %cst_96 : f32 to vector<2x1024xf32>
    %122 = arith.select %120, %118, %121 : vector<2x1024xi1>, vector<2x1024xf32>
    %c6 = arith.constant 6 : index
    %c0_97 = arith.constant 0 : index
    %123 = vector.load %arg15[%c6, %c0_97] : memref<36x1024xf32, #tpu.memory_space<vmem>>, vector<2x1024xf32>
    tpu.vector_store %arg15[%c6, %c0_97], %122 {strides = array<i32>} : memref<36x1024xf32, #tpu.memory_space<vmem>>, vector<2x1024xf32>,
    %c0_98 = arith.constant 0 : index
    %c33_99 = arith.constant 33 : index
    %124 = vector.load %arg14[%c0_98, %c33_99] : memref<4x1090xf32, #tpu.memory_space<vmem>>, vector<2x1024xf32>
    %c8_100 = arith.constant 8 : index
    %c0_101 = arith.constant 0 : index
    %125 = vector.load %arg15[%c8_100, %c0_101] : memref<36x1024xf32, #tpu.memory_space<vmem>>, vector<2x1024xf32>
    tpu.vector_store %arg15[%c8_100, %c0_101], %124 {strides = array<i32>} : memref<36x1024xf32, #tpu.memory_space<vmem>>, vector<2x1024xf32>,
    %c0_102 = arith.constant 0 : index
    %c34_103 = arith.constant 34 : index
    %126 = vector.load %arg14[%c0_102, %c34_103] : memref<4x1090xf32, #tpu.memory_space<vmem>>, vector<2x1024xf32>
    %cst_104 = arith.constant 0.000000e+00 : f32
    %127 = vector.shape_cast %6 : vector<1x1024xi1> to vector<1x1024xi1>
    %128 = vector.broadcast %127 : vector<1x1024xi1> to vector<2x1024xi1>
    %129 = vector.broadcast %cst_104 : f32 to vector<2x1024xf32>
    %130 = arith.select %128, %126, %129 : vector<2x1024xi1>, vector<2x1024xf32>
    %c10 = arith.constant 10 : index
    %c0_105 = arith.constant 0 : index
    %131 = vector.load %arg15[%c10, %c0_105] : memref<36x1024xf32, #tpu.memory_space<vmem>>, vector<2x1024xf32>
    tpu.vector_store %arg15[%c10, %c0_105], %130 {strides = array<i32>} : memref<36x1024xf32, #tpu.memory_space<vmem>>, vector<2x1024xf32>,
    %c0_106 = arith.constant 0 : index
    %c64_107 = arith.constant 64 : index
    %132 = vector.load %arg14[%c0_106, %c64_107] : memref<4x1090xf32, #tpu.memory_space<vmem>>, vector<2x1024xf32>
    %cst_108 = arith.constant 0.000000e+00 : f32
    %133 = vector.shape_cast %4 : vector<1x1024xi1> to vector<1x1024xi1>
    %134 = vector.broadcast %133 : vector<1x1024xi1> to vector<2x1024xi1>
    %135 = vector.broadcast %cst_108 : f32 to vector<2x1024xf32>
    %136 = arith.select %134, %132, %135 : vector<2x1024xi1>, vector<2x1024xf32>
    %c12_109 = arith.constant 12 : index
    %c0_110 = arith.constant 0 : index
    %137 = vector.load %arg15[%c12_109, %c0_110] : memref<36x1024xf32, #tpu.memory_space<vmem>>, vector<2x1024xf32>
    tpu.vector_store %arg15[%c12_109, %c0_110], %136 {strides = array<i32>} : memref<36x1024xf32, #tpu.memory_space<vmem>>, vector<2x1024xf32>,
    %c0_111 = arith.constant 0 : index
    %c65_112 = arith.constant 65 : index
    %138 = vector.load %arg14[%c0_111, %c65_112] : memref<4x1090xf32, #tpu.memory_space<vmem>>, vector<2x1024xf32>
    %c14 = arith.constant 14 : index
    %c0_113 = arith.constant 0 : index
    %139 = vector.load %arg15[%c14, %c0_113] : memref<36x1024xf32, #tpu.memory_space<vmem>>, vector<2x1024xf32>
    tpu.vector_store %arg15[%c14, %c0_113], %138 {strides = array<i32>} : memref<36x1024xf32, #tpu.memory_space<vmem>>, vector<2x1024xf32>,
    %c0_114 = arith.constant 0 : index
    %c66_115 = arith.constant 66 : index
    %140 = vector.load %arg14[%c0_114, %c66_115] : memref<4x1090xf32, #tpu.memory_space<vmem>>, vector<2x1024xf32>
    %cst_116 = arith.constant 0.000000e+00 : f32
    %141 = vector.shape_cast %6 : vector<1x1024xi1> to vector<1x1024xi1>
    %142 = vector.broadcast %141 : vector<1x1024xi1> to vector<2x1024xi1>
    %143 = vector.broadcast %cst_116 : f32 to vector<2x1024xf32>
    %144 = arith.select %142, %140, %143 : vector<2x1024xi1>, vector<2x1024xf32>
    %c16_117 = arith.constant 16 : index
    %c0_118 = arith.constant 0 : index
    %145 = vector.load %arg15[%c16_117, %c0_118] : memref<36x1024xf32, #tpu.memory_space<vmem>>, vector<2x1024xf32>
    tpu.vector_store %arg15[%c16_117, %c0_118], %144 {strides = array<i32>} : memref<36x1024xf32, #tpu.memory_space<vmem>>, vector<2x1024xf32>,
    %c0_119 = arith.constant 0 : index
    %c0_120 = arith.constant 0 : index
    %146 = vector.load %arg15[%c0_119, %c0_120] : memref<36x1024xf32, #tpu.memory_space<vmem>>, vector<18x1024xf32>
    %cst_121 = arith.constant dense<0.000000e+00> : vector<4x1024xf32>
    %147 = tpu.matmul %99, %146, %cst_121 {dimension_numbers = #tpu.dot_dimension_numbers<[1], [0], [0], [1], [0, 0, 1, 1], [], []>} : vector<4x18xf32>, vector<18x1024xf32>, vector<4x1024xf32> -> vector<4x1024xf32>
    %c0_122 = arith.constant 0 : index
    %c0_123 = arith.constant 0 : index
    %148 = vector.load %arg12[%c0_122, %c0_123] : memref<4x1xf32, #tpu.memory_space<vmem>>, vector<4x1xf32>
    %149 = vector.broadcast %148 : vector<4x1xf32> to vector<4x1024xf32>
    %150 = arith.addf %147, %149 : vector<4x1024xf32>
    %c0_124 = arith.constant 0 : index
    %c0_125 = arith.constant 0 : index
    %c0_126 = arith.constant 0 : index
    %151 = vector.load %arg13[%c0_124, %c0_125, %c0_126] : memref<1x4x1024xf32, #tpu.memory_space<vmem>>, vector<1x4x1024xf32>
    %152 = vector.shape_cast %151 : vector<1x4x1024xf32> to vector<4x1024xf32>
    %153 = vector.shape_cast %150 : vector<4x1024xf32> to vector<1x4x1024xf32>
    tpu.vector_store %arg13[%c0_124, %c0_125, %c0_126], %153 {strides = array<i32>} : memref<1x4x1024xf32, #tpu.memory_space<vmem>>, vector<1x4x1024xf32>,
    return
  }
  func.func @transform_0(%arg0: i32) -> (i32, i32, i32) {
    %c0_i32 = arith.constant 0 : i32
    %c0_i32_0 = arith.constant 0 : i32
    %c0_i32_1 = arith.constant 0 : i32
    return %arg0, %c0_i32, %c0_i32_0 : i32, i32, i32
  }
  func.func @transform_1(%arg0: i32) -> (i32, i32, i32) {
    %c0_i32 = arith.constant 0 : i32
    %c0_i32_0 = arith.constant 0 : i32
    %c0_i32_1 = arith.constant 0 : i32
    return %arg0, %c0_i32, %c0_i32_0 : i32, i32, i32
  }
  func.func @transform_2(%arg0: i32) -> (i32, i32) {
    %c0_i32 = arith.constant 0 : i32
    %c0_i32_0 = arith.constant 0 : i32
    %c0_i32_1 = arith.constant 0 : i32
    return %c0_i32, %c0_i32_0 : i32, i32
  }
  func.func @transform_3(%arg0: i32) -> (i32, i32) {
    %c0_i32 = arith.constant 0 : i32
    %c0_i32_0 = arith.constant 0 : i32
    %c0_i32_1 = arith.constant 0 : i32
    return %c0_i32, %c0_i32_0 : i32, i32
  }
  func.func @transform_4(%arg0: i32) -> (i32, i32) {
    %c0_i32 = arith.constant 0 : i32
    %c0_i32_0 = arith.constant 0 : i32
    %c0_i32_1 = arith.constant 0 : i32
    return %c0_i32, %c0_i32_0 : i32, i32
  }
  func.func @transform_5(%arg0: i32) -> (i32, i32) {
    %c0_i32 = arith.constant 0 : i32
    %c0_i32_0 = arith.constant 0 : i32
    %c0_i32_1 = arith.constant 0 : i32
    return %c0_i32, %c0_i32_0 : i32, i32
  }
  func.func @transform_6(%arg0: i32) -> (i32, i32) {
    %c0_i32 = arith.constant 0 : i32
    %c0_i32_0 = arith.constant 0 : i32
    %c0_i32_1 = arith.constant 0 : i32
    return %c0_i32, %c0_i32_0 : i32, i32
  }
  func.func @transform_7(%arg0: i32) -> (i32, i32) {
    %c0_i32 = arith.constant 0 : i32
    %c0_i32_0 = arith.constant 0 : i32
    %c0_i32_1 = arith.constant 0 : i32
    return %c0_i32, %c0_i32_0 : i32, i32
  }
  func.func @transform_8(%arg0: i32) -> (i32, i32) {
    %c0_i32 = arith.constant 0 : i32
    %c0_i32_0 = arith.constant 0 : i32
    %c0_i32_1 = arith.constant 0 : i32
    return %c0_i32, %c0_i32_0 : i32, i32
  }
  func.func @transform_9(%arg0: i32) -> (i32, i32) {
    %c0_i32 = arith.constant 0 : i32
    %c0_i32_0 = arith.constant 0 : i32
    %c0_i32_1 = arith.constant 0 : i32
    return %c0_i32, %c0_i32_0 : i32, i32
  }
  func.func @transform_10(%arg0: i32) -> (i32, i32) {
    %c0_i32 = arith.constant 0 : i32
    %c0_i32_0 = arith.constant 0 : i32
    %c0_i32_1 = arith.constant 0 : i32
    return %c0_i32, %c0_i32_0 : i32, i32
  }
  func.func @transform_11(%arg0: i32) -> (i32, i32) {
    %c0_i32 = arith.constant 0 : i32
    %c0_i32_0 = arith.constant 0 : i32
    %c0_i32_1 = arith.constant 0 : i32
    return %c0_i32, %c0_i32_0 : i32, i32
  }
  func.func @transform_12(%arg0: i32) -> (i32, i32, i32) {
    %c0_i32 = arith.constant 0 : i32
    %c0_i32_0 = arith.constant 0 : i32
    %c0_i32_1 = arith.constant 0 : i32
    return %arg0, %c0_i32, %c0_i32_0 : i32, i32, i32
  }
}

module attributes {stable_mosaic.version = 11 : i64} {
  func.func @_branch_kernel(%arg0: i32, %arg1: memref<1x4x64xf32, #tpu.memory_space<vmem>>, %arg2: memref<1x4x64xf32, #tpu.memory_space<vmem>>, %arg3: memref<4x4xf32, #tpu.memory_space<vmem>>, %arg4: memref<4x2xf32, #tpu.memory_space<vmem>>, %arg5: memref<4x4xf32, #tpu.memory_space<vmem>>, %arg6: memref<4x4xf32, #tpu.memory_space<vmem>>, %arg7: memref<4x2xf32, #tpu.memory_space<vmem>>, %arg8: memref<4x2xf32, #tpu.memory_space<vmem>>, %arg9: memref<2x36xf32, #tpu.memory_space<vmem>>, %arg10: memref<2x2xf32, #tpu.memory_space<vmem>>, %arg11: memref<4x18xf32, #tpu.memory_space<vmem>>, %arg12: memref<4x1xf32, #tpu.memory_space<vmem>>, %arg13: memref<1x4x64xf32, #tpu.memory_space<vmem>>, %arg14: memref<4x82xf32, #tpu.memory_space<vmem>>, %arg15: memref<36x64xf32, #tpu.memory_space<vmem>>) attributes {dimension_semantics = [#tpu.dimension_semantics<parallel>], iteration_bounds = array<i64: 2>, scalar_prefetch = 0 : i64, scratch_operands = 2 : i64, tpu.core_type = #tpu.core_type<tc>, window_params = [{transform_indices = @transform_0, window_bounds = array<i64: 1, 4, 64>}, {transform_indices = @transform_1, window_bounds = array<i64: 1, 4, 64>}, {pipeline_mode = #tpu.pipeline_mode<synchronous>, transform_indices = @transform_2, window_bounds = array<i64: 4, 4>}, {pipeline_mode = #tpu.pipeline_mode<synchronous>, transform_indices = @transform_3, window_bounds = array<i64: 4, 2>}, {pipeline_mode = #tpu.pipeline_mode<synchronous>, transform_indices = @transform_4, window_bounds = array<i64: 4, 4>}, {pipeline_mode = #tpu.pipeline_mode<synchronous>, transform_indices = @transform_5, window_bounds = array<i64: 4, 4>}, {pipeline_mode = #tpu.pipeline_mode<synchronous>, transform_indices = @transform_6, window_bounds = array<i64: 4, 2>}, {pipeline_mode = #tpu.pipeline_mode<synchronous>, transform_indices = @transform_7, window_bounds = array<i64: 4, 2>}, {pipeline_mode = #tpu.pipeline_mode<synchronous>, transform_indices = @transform_8, window_bounds = array<i64: 2, 36>}, {pipeline_mode = #tpu.pipeline_mode<synchronous>, transform_indices = @transform_9, window_bounds = array<i64: 2, 2>}, {pipeline_mode = #tpu.pipeline_mode<synchronous>, transform_indices = @transform_10, window_bounds = array<i64: 4, 18>}, {pipeline_mode = #tpu.pipeline_mode<synchronous>, transform_indices = @transform_11, window_bounds = array<i64: 4, 1>}, {transform_indices = @transform_12, window_bounds = array<i64: 1, 4, 64>}]} {
    %0 = tpu.iota {dimensions = array<i32: 1>} : vector<1x64xi32>
    %c7_i32 = arith.constant 7 : i32
    %1 = vector.broadcast %c7_i32 : i32 to vector<1x64xi32>
    %2 = arith.andi %0, %1 : vector<1x64xi32>
    %c1_i32 = arith.constant 1 : i32
    %3 = vector.broadcast %c1_i32 : i32 to vector<1x64xi32>
    %4 = arith.cmpi sge, %2, %3 : vector<1x64xi32>
    %c6_i32 = arith.constant 6 : i32
    %5 = vector.broadcast %c6_i32 : i32 to vector<1x64xi32>
    %6 = arith.cmpi sle, %2, %5 : vector<1x64xi32>
    %c0 = arith.constant 0 : index
    %c0_0 = arith.constant 0 : index
    %c0_1 = arith.constant 0 : index
    %7 = vector.load %arg1[%c0, %c0_0, %c0_1] : memref<1x4x64xf32, #tpu.memory_space<vmem>>, vector<1x4x64xf32>
    %8 = vector.shape_cast %7 : vector<1x4x64xf32> to vector<4x64xf32>
    %c0_2 = arith.constant 0 : index
    %c0_3 = arith.constant 0 : index
    %9 = vector.load %arg3[%c0_2, %c0_3] : memref<4x4xf32, #tpu.memory_space<vmem>>, vector<4x4xf32>
    %c0_4 = arith.constant 0 : index
    %c0_5 = arith.constant 0 : index
    %c0_6 = arith.constant 0 : index
    %10 = vector.load %arg2[%c0_4, %c0_5, %c0_6] : memref<1x4x64xf32, #tpu.memory_space<vmem>>, vector<1x4x64xf32>
    %11 = vector.shape_cast %10 : vector<1x4x64xf32> to vector<4x64xf32>
    %cst = arith.constant dense<0.000000e+00> : vector<4x64xf32>
    %12 = tpu.matmul %9, %11, %cst {dimension_numbers = #tpu.dot_dimension_numbers<[1], [0], [0], [1], [0, 0, 1, 1], [], []>} : vector<4x4xf32>, vector<4x64xf32>, vector<4x64xf32> -> vector<4x64xf32>
    %c0_7 = arith.constant 0 : index
    %c0_8 = arith.constant 0 : index
    %13 = vector.load %arg4[%c0_7, %c0_8] : memref<4x2xf32, #tpu.memory_space<vmem>>, vector<4x1xf32>
    %14 = vector.broadcast %13 : vector<4x1xf32> to vector<4x64xf32>
    %15 = arith.mulf %12, %14 : vector<4x64xf32>
    %c0_9 = arith.constant 0 : index
    %c1 = arith.constant 1 : index
    %16 = vector.load %arg4[%c0_9, %c1] : memref<4x2xf32, #tpu.memory_space<vmem>>, vector<4x1xf32>
    %17 = vector.broadcast %16 : vector<4x1xf32> to vector<4x64xf32>
    %18 = arith.addf %15, %17 : vector<4x64xf32>
    %cst_10 = arith.constant 0.000000e+00 : f32
    %19 = vector.broadcast %cst_10 : f32 to vector<4x64xf32>
    %20 = arith.maximumf %18, %19 : vector<4x64xf32>
    %c0_11 = arith.constant 0 : index
    %c0_12 = arith.constant 0 : index
    %21 = vector.load %arg5[%c0_11, %c0_12] : memref<4x4xf32, #tpu.memory_space<vmem>>, vector<4x4xf32>
    %cst_13 = arith.constant dense<0.000000e+00> : vector<4x64xf32>
    %22 = tpu.matmul %21, %8, %cst_13 {dimension_numbers = #tpu.dot_dimension_numbers<[1], [0], [0], [1], [0, 0, 1, 1], [], []>} : vector<4x4xf32>, vector<4x64xf32>, vector<4x64xf32> -> vector<4x64xf32>
    %c0_14 = arith.constant 0 : index
    %c0_15 = arith.constant 0 : index
    %23 = vector.load %arg6[%c0_14, %c0_15] : memref<4x4xf32, #tpu.memory_space<vmem>>, vector<4x4xf32>
    %cst_16 = arith.constant dense<0.000000e+00> : vector<4x64xf32>
    %24 = tpu.matmul %23, %20, %cst_16 {dimension_numbers = #tpu.dot_dimension_numbers<[1], [0], [0], [1], [0, 0, 1, 1], [], []>} : vector<4x4xf32>, vector<4x64xf32>, vector<4x64xf32> -> vector<4x64xf32>
    %25 = arith.addf %22, %24 : vector<4x64xf32>
    %c0_17 = arith.constant 0 : index
    %c0_18 = arith.constant 0 : index
    %26 = vector.load %arg7[%c0_17, %c0_18] : memref<4x2xf32, #tpu.memory_space<vmem>>, vector<4x1xf32>
    %27 = vector.broadcast %26 : vector<4x1xf32> to vector<4x64xf32>
    %28 = arith.mulf %25, %27 : vector<4x64xf32>
    %c0_19 = arith.constant 0 : index
    %c1_20 = arith.constant 1 : index
    %29 = vector.load %arg7[%c0_19, %c1_20] : memref<4x2xf32, #tpu.memory_space<vmem>>, vector<4x1xf32>
    %30 = vector.broadcast %29 : vector<4x1xf32> to vector<4x64xf32>
    %31 = arith.addf %28, %30 : vector<4x64xf32>
    %cst_21 = arith.constant 0.000000e+00 : f32
    %32 = vector.broadcast %cst_21 : f32 to vector<4x64xf32>
    %33 = arith.maximumf %31, %32 : vector<4x64xf32>
    %c0_22 = arith.constant 0 : index
    %c0_23 = arith.constant 0 : index
    %34 = vector.load %arg8[%c0_22, %c0_23] : memref<4x2xf32, #tpu.memory_space<vmem>>, vector<4x1xf32>
    %35 = vector.broadcast %34 : vector<4x1xf32> to vector<4x64xf32>
    %36 = arith.mulf %33, %35 : vector<4x64xf32>
    %c0_24 = arith.constant 0 : index
    %c1_25 = arith.constant 1 : index
    %37 = vector.load %arg8[%c0_24, %c1_25] : memref<4x2xf32, #tpu.memory_space<vmem>>, vector<4x1xf32>
    %38 = vector.broadcast %37 : vector<4x1xf32> to vector<4x64xf32>
    %39 = arith.addf %36, %38 : vector<4x64xf32>
    %cst_26 = arith.constant 0.000000e+00 : f32
    %40 = vector.broadcast %cst_26 : f32 to vector<4x64xf32>
    %41 = arith.maximumf %39, %40 : vector<4x64xf32>
    %c0_27 = arith.constant 0 : index
    %c0_28 = arith.constant 0 : index
    %42 = vector.load %arg9[%c0_27, %c0_28] : memref<2x36xf32, #tpu.memory_space<vmem>>, vector<2x36xf32>
    %cst_29 = arith.constant 0.000000e+00 : f32
    %43 = vector.broadcast %cst_29 : f32 to vector<4x9xf32>
    %c0_30 = arith.constant 0 : index
    %c0_31 = arith.constant 0 : index
    %44 = vector.load %arg14[%c0_30, %c0_31] : memref<4x82xf32, #tpu.memory_space<vmem>>, vector<4x9xf32>
    tpu.vector_store %arg14[%c0_30, %c0_31], %43 {strides = array<i32>} : memref<4x82xf32, #tpu.memory_space<vmem>>, vector<4x9xf32>,
    %c0_32 = arith.constant 0 : index
    %c73 = arith.constant 73 : index
    %45 = vector.load %arg14[%c0_32, %c73] : memref<4x82xf32, #tpu.memory_space<vmem>>, vector<4x9xf32>
    tpu.vector_store %arg14[%c0_32, %c73], %43 {strides = array<i32>} : memref<4x82xf32, #tpu.memory_space<vmem>>, vector<4x9xf32>,
    %c0_33 = arith.constant 0 : index
    %c9 = arith.constant 9 : index
    %46 = vector.load %arg14[%c0_33, %c9] : memref<4x82xf32, #tpu.memory_space<vmem>>, vector<4x64xf32>
    tpu.vector_store %arg14[%c0_33, %c9], %41 {strides = array<i32>} : memref<4x82xf32, #tpu.memory_space<vmem>>, vector<4x64xf32>,
    %c0_34 = arith.constant 0 : index
    %c0_35 = arith.constant 0 : index
    %47 = vector.load %arg14[%c0_34, %c0_35] : memref<4x82xf32, #tpu.memory_space<vmem>>, vector<4x64xf32>
    %cst_36 = arith.constant 0.000000e+00 : f32
    %48 = vector.shape_cast %4 : vector<1x64xi1> to vector<1x64xi1>
    %49 = vector.broadcast %48 : vector<1x64xi1> to vector<4x64xi1>
    %50 = vector.broadcast %cst_36 : f32 to vector<4x64xf32>
    %51 = arith.select %49, %47, %50 : vector<4x64xi1>, vector<4x64xf32>
    %c0_37 = arith.constant 0 : index
    %c0_38 = arith.constant 0 : index
    %52 = vector.load %arg15[%c0_37, %c0_38] : memref<36x64xf32, #tpu.memory_space<vmem>>, vector<4x64xf32>
    tpu.vector_store %arg15[%c0_37, %c0_38], %51 {strides = array<i32>} : memref<36x64xf32, #tpu.memory_space<vmem>>, vector<4x64xf32>,
    %c0_39 = arith.constant 0 : index
    %c1_40 = arith.constant 1 : index
    %53 = vector.load %arg14[%c0_39, %c1_40] : memref<4x82xf32, #tpu.memory_space<vmem>>, vector<4x64xf32>
    %c4 = arith.constant 4 : index
    %c0_41 = arith.constant 0 : index
    %54 = vector.load %arg15[%c4, %c0_41] : memref<36x64xf32, #tpu.memory_space<vmem>>, vector<4x64xf32>
    tpu.vector_store %arg15[%c4, %c0_41], %53 {strides = array<i32>} : memref<36x64xf32, #tpu.memory_space<vmem>>, vector<4x64xf32>,
    %c0_42 = arith.constant 0 : index
    %c2 = arith.constant 2 : index
    %55 = vector.load %arg14[%c0_42, %c2] : memref<4x82xf32, #tpu.memory_space<vmem>>, vector<4x64xf32>
    %cst_43 = arith.constant 0.000000e+00 : f32
    %56 = vector.shape_cast %6 : vector<1x64xi1> to vector<1x64xi1>
    %57 = vector.broadcast %56 : vector<1x64xi1> to vector<4x64xi1>
    %58 = vector.broadcast %cst_43 : f32 to vector<4x64xf32>
    %59 = arith.select %57, %55, %58 : vector<4x64xi1>, vector<4x64xf32>
    %c8 = arith.constant 8 : index
    %c0_44 = arith.constant 0 : index
    %60 = vector.load %arg15[%c8, %c0_44] : memref<36x64xf32, #tpu.memory_space<vmem>>, vector<4x64xf32>
    tpu.vector_store %arg15[%c8, %c0_44], %59 {strides = array<i32>} : memref<36x64xf32, #tpu.memory_space<vmem>>, vector<4x64xf32>,
    %c0_45 = arith.constant 0 : index
    %c8_46 = arith.constant 8 : index
    %61 = vector.load %arg14[%c0_45, %c8_46] : memref<4x82xf32, #tpu.memory_space<vmem>>, vector<4x64xf32>
    %cst_47 = arith.constant 0.000000e+00 : f32
    %62 = vector.shape_cast %4 : vector<1x64xi1> to vector<1x64xi1>
    %63 = vector.broadcast %62 : vector<1x64xi1> to vector<4x64xi1>
    %64 = vector.broadcast %cst_47 : f32 to vector<4x64xf32>
    %65 = arith.select %63, %61, %64 : vector<4x64xi1>, vector<4x64xf32>
    %c12 = arith.constant 12 : index
    %c0_48 = arith.constant 0 : index
    %66 = vector.load %arg15[%c12, %c0_48] : memref<36x64xf32, #tpu.memory_space<vmem>>, vector<4x64xf32>
    tpu.vector_store %arg15[%c12, %c0_48], %65 {strides = array<i32>} : memref<36x64xf32, #tpu.memory_space<vmem>>, vector<4x64xf32>,
    %c0_49 = arith.constant 0 : index
    %c9_50 = arith.constant 9 : index
    %67 = vector.load %arg14[%c0_49, %c9_50] : memref<4x82xf32, #tpu.memory_space<vmem>>, vector<4x64xf32>
    %c16 = arith.constant 16 : index
    %c0_51 = arith.constant 0 : index
    %68 = vector.load %arg15[%c16, %c0_51] : memref<36x64xf32, #tpu.memory_space<vmem>>, vector<4x64xf32>
    tpu.vector_store %arg15[%c16, %c0_51], %67 {strides = array<i32>} : memref<36x64xf32, #tpu.memory_space<vmem>>, vector<4x64xf32>,
    %c0_52 = arith.constant 0 : index
    %c10 = arith.constant 10 : index
    %69 = vector.load %arg14[%c0_52, %c10] : memref<4x82xf32, #tpu.memory_space<vmem>>, vector<4x64xf32>
    %cst_53 = arith.constant 0.000000e+00 : f32
    %70 = vector.shape_cast %6 : vector<1x64xi1> to vector<1x64xi1>
    %71 = vector.broadcast %70 : vector<1x64xi1> to vector<4x64xi1>
    %72 = vector.broadcast %cst_53 : f32 to vector<4x64xf32>
    %73 = arith.select %71, %69, %72 : vector<4x64xi1>, vector<4x64xf32>
    %c20 = arith.constant 20 : index
    %c0_54 = arith.constant 0 : index
    %74 = vector.load %arg15[%c20, %c0_54] : memref<36x64xf32, #tpu.memory_space<vmem>>, vector<4x64xf32>
    tpu.vector_store %arg15[%c20, %c0_54], %73 {strides = array<i32>} : memref<36x64xf32, #tpu.memory_space<vmem>>, vector<4x64xf32>,
    %c0_55 = arith.constant 0 : index
    %c16_56 = arith.constant 16 : index
    %75 = vector.load %arg14[%c0_55, %c16_56] : memref<4x82xf32, #tpu.memory_space<vmem>>, vector<4x64xf32>
    %cst_57 = arith.constant 0.000000e+00 : f32
    %76 = vector.shape_cast %4 : vector<1x64xi1> to vector<1x64xi1>
    %77 = vector.broadcast %76 : vector<1x64xi1> to vector<4x64xi1>
    %78 = vector.broadcast %cst_57 : f32 to vector<4x64xf32>
    %79 = arith.select %77, %75, %78 : vector<4x64xi1>, vector<4x64xf32>
    %c24 = arith.constant 24 : index
    %c0_58 = arith.constant 0 : index
    %80 = vector.load %arg15[%c24, %c0_58] : memref<36x64xf32, #tpu.memory_space<vmem>>, vector<4x64xf32>
    tpu.vector_store %arg15[%c24, %c0_58], %79 {strides = array<i32>} : memref<36x64xf32, #tpu.memory_space<vmem>>, vector<4x64xf32>,
    %c0_59 = arith.constant 0 : index
    %c17 = arith.constant 17 : index
    %81 = vector.load %arg14[%c0_59, %c17] : memref<4x82xf32, #tpu.memory_space<vmem>>, vector<4x64xf32>
    %c28 = arith.constant 28 : index
    %c0_60 = arith.constant 0 : index
    %82 = vector.load %arg15[%c28, %c0_60] : memref<36x64xf32, #tpu.memory_space<vmem>>, vector<4x64xf32>
    tpu.vector_store %arg15[%c28, %c0_60], %81 {strides = array<i32>} : memref<36x64xf32, #tpu.memory_space<vmem>>, vector<4x64xf32>,
    %c0_61 = arith.constant 0 : index
    %c18 = arith.constant 18 : index
    %83 = vector.load %arg14[%c0_61, %c18] : memref<4x82xf32, #tpu.memory_space<vmem>>, vector<4x64xf32>
    %cst_62 = arith.constant 0.000000e+00 : f32
    %84 = vector.shape_cast %6 : vector<1x64xi1> to vector<1x64xi1>
    %85 = vector.broadcast %84 : vector<1x64xi1> to vector<4x64xi1>
    %86 = vector.broadcast %cst_62 : f32 to vector<4x64xf32>
    %87 = arith.select %85, %83, %86 : vector<4x64xi1>, vector<4x64xf32>
    %c32 = arith.constant 32 : index
    %c0_63 = arith.constant 0 : index
    %88 = vector.load %arg15[%c32, %c0_63] : memref<36x64xf32, #tpu.memory_space<vmem>>, vector<4x64xf32>
    tpu.vector_store %arg15[%c32, %c0_63], %87 {strides = array<i32>} : memref<36x64xf32, #tpu.memory_space<vmem>>, vector<4x64xf32>,
    %c0_64 = arith.constant 0 : index
    %c0_65 = arith.constant 0 : index
    %89 = vector.load %arg15[%c0_64, %c0_65] : memref<36x64xf32, #tpu.memory_space<vmem>>, vector<36x64xf32>
    %cst_66 = arith.constant dense<0.000000e+00> : vector<2x64xf32>
    %90 = tpu.matmul %42, %89, %cst_66 {dimension_numbers = #tpu.dot_dimension_numbers<[1], [0], [0], [1], [0, 0, 1, 1], [], []>} : vector<2x36xf32>, vector<36x64xf32>, vector<2x64xf32> -> vector<2x64xf32>
    %c0_67 = arith.constant 0 : index
    %c0_68 = arith.constant 0 : index
    %91 = vector.load %arg10[%c0_67, %c0_68] : memref<2x2xf32, #tpu.memory_space<vmem>>, vector<2x1xf32>
    %92 = vector.broadcast %91 : vector<2x1xf32> to vector<2x64xf32>
    %93 = arith.mulf %90, %92 : vector<2x64xf32>
    %c0_69 = arith.constant 0 : index
    %c1_70 = arith.constant 1 : index
    %94 = vector.load %arg10[%c0_69, %c1_70] : memref<2x2xf32, #tpu.memory_space<vmem>>, vector<2x1xf32>
    %95 = vector.broadcast %94 : vector<2x1xf32> to vector<2x64xf32>
    %96 = arith.addf %93, %95 : vector<2x64xf32>
    %cst_71 = arith.constant 0.000000e+00 : f32
    %97 = vector.broadcast %cst_71 : f32 to vector<2x64xf32>
    %98 = arith.maximumf %96, %97 : vector<2x64xf32>
    %c0_72 = arith.constant 0 : index
    %c0_73 = arith.constant 0 : index
    %99 = vector.load %arg11[%c0_72, %c0_73] : memref<4x18xf32, #tpu.memory_space<vmem>>, vector<4x18xf32>
    %cst_74 = arith.constant 0.000000e+00 : f32
    %100 = vector.broadcast %cst_74 : f32 to vector<2x9xf32>
    %c0_75 = arith.constant 0 : index
    %c0_76 = arith.constant 0 : index
    %101 = vector.load %arg14[%c0_75, %c0_76] : memref<4x82xf32, #tpu.memory_space<vmem>>, vector<2x9xf32>
    tpu.vector_store %arg14[%c0_75, %c0_76], %100 {strides = array<i32>} : memref<4x82xf32, #tpu.memory_space<vmem>>, vector<2x9xf32>,
    %c0_77 = arith.constant 0 : index
    %c73_78 = arith.constant 73 : index
    %102 = vector.load %arg14[%c0_77, %c73_78] : memref<4x82xf32, #tpu.memory_space<vmem>>, vector<2x9xf32>
    tpu.vector_store %arg14[%c0_77, %c73_78], %100 {strides = array<i32>} : memref<4x82xf32, #tpu.memory_space<vmem>>, vector<2x9xf32>,
    %c0_79 = arith.constant 0 : index
    %c9_80 = arith.constant 9 : index
    %103 = vector.load %arg14[%c0_79, %c9_80] : memref<4x82xf32, #tpu.memory_space<vmem>>, vector<2x64xf32>
    tpu.vector_store %arg14[%c0_79, %c9_80], %98 {strides = array<i32>} : memref<4x82xf32, #tpu.memory_space<vmem>>, vector<2x64xf32>,
    %c0_81 = arith.constant 0 : index
    %c0_82 = arith.constant 0 : index
    %104 = vector.load %arg14[%c0_81, %c0_82] : memref<4x82xf32, #tpu.memory_space<vmem>>, vector<2x64xf32>
    %cst_83 = arith.constant 0.000000e+00 : f32
    %105 = vector.shape_cast %4 : vector<1x64xi1> to vector<1x64xi1>
    %106 = vector.broadcast %105 : vector<1x64xi1> to vector<2x64xi1>
    %107 = vector.broadcast %cst_83 : f32 to vector<2x64xf32>
    %108 = arith.select %106, %104, %107 : vector<2x64xi1>, vector<2x64xf32>
    %c0_84 = arith.constant 0 : index
    %c0_85 = arith.constant 0 : index
    %109 = vector.load %arg15[%c0_84, %c0_85] : memref<36x64xf32, #tpu.memory_space<vmem>>, vector<2x64xf32>
    tpu.vector_store %arg15[%c0_84, %c0_85], %108 {strides = array<i32>} : memref<36x64xf32, #tpu.memory_space<vmem>>, vector<2x64xf32>,
    %c0_86 = arith.constant 0 : index
    %c1_87 = arith.constant 1 : index
    %110 = vector.load %arg14[%c0_86, %c1_87] : memref<4x82xf32, #tpu.memory_space<vmem>>, vector<2x64xf32>
    %c2_88 = arith.constant 2 : index
    %c0_89 = arith.constant 0 : index
    %111 = vector.load %arg15[%c2_88, %c0_89] : memref<36x64xf32, #tpu.memory_space<vmem>>, vector<2x64xf32>
    tpu.vector_store %arg15[%c2_88, %c0_89], %110 {strides = array<i32>} : memref<36x64xf32, #tpu.memory_space<vmem>>, vector<2x64xf32>,
    %c0_90 = arith.constant 0 : index
    %c2_91 = arith.constant 2 : index
    %112 = vector.load %arg14[%c0_90, %c2_91] : memref<4x82xf32, #tpu.memory_space<vmem>>, vector<2x64xf32>
    %cst_92 = arith.constant 0.000000e+00 : f32
    %113 = vector.shape_cast %6 : vector<1x64xi1> to vector<1x64xi1>
    %114 = vector.broadcast %113 : vector<1x64xi1> to vector<2x64xi1>
    %115 = vector.broadcast %cst_92 : f32 to vector<2x64xf32>
    %116 = arith.select %114, %112, %115 : vector<2x64xi1>, vector<2x64xf32>
    %c4_93 = arith.constant 4 : index
    %c0_94 = arith.constant 0 : index
    %117 = vector.load %arg15[%c4_93, %c0_94] : memref<36x64xf32, #tpu.memory_space<vmem>>, vector<2x64xf32>
    tpu.vector_store %arg15[%c4_93, %c0_94], %116 {strides = array<i32>} : memref<36x64xf32, #tpu.memory_space<vmem>>, vector<2x64xf32>,
    %c0_95 = arith.constant 0 : index
    %c8_96 = arith.constant 8 : index
    %118 = vector.load %arg14[%c0_95, %c8_96] : memref<4x82xf32, #tpu.memory_space<vmem>>, vector<2x64xf32>
    %cst_97 = arith.constant 0.000000e+00 : f32
    %119 = vector.shape_cast %4 : vector<1x64xi1> to vector<1x64xi1>
    %120 = vector.broadcast %119 : vector<1x64xi1> to vector<2x64xi1>
    %121 = vector.broadcast %cst_97 : f32 to vector<2x64xf32>
    %122 = arith.select %120, %118, %121 : vector<2x64xi1>, vector<2x64xf32>
    %c6 = arith.constant 6 : index
    %c0_98 = arith.constant 0 : index
    %123 = vector.load %arg15[%c6, %c0_98] : memref<36x64xf32, #tpu.memory_space<vmem>>, vector<2x64xf32>
    tpu.vector_store %arg15[%c6, %c0_98], %122 {strides = array<i32>} : memref<36x64xf32, #tpu.memory_space<vmem>>, vector<2x64xf32>,
    %c0_99 = arith.constant 0 : index
    %c9_100 = arith.constant 9 : index
    %124 = vector.load %arg14[%c0_99, %c9_100] : memref<4x82xf32, #tpu.memory_space<vmem>>, vector<2x64xf32>
    %c8_101 = arith.constant 8 : index
    %c0_102 = arith.constant 0 : index
    %125 = vector.load %arg15[%c8_101, %c0_102] : memref<36x64xf32, #tpu.memory_space<vmem>>, vector<2x64xf32>
    tpu.vector_store %arg15[%c8_101, %c0_102], %124 {strides = array<i32>} : memref<36x64xf32, #tpu.memory_space<vmem>>, vector<2x64xf32>,
    %c0_103 = arith.constant 0 : index
    %c10_104 = arith.constant 10 : index
    %126 = vector.load %arg14[%c0_103, %c10_104] : memref<4x82xf32, #tpu.memory_space<vmem>>, vector<2x64xf32>
    %cst_105 = arith.constant 0.000000e+00 : f32
    %127 = vector.shape_cast %6 : vector<1x64xi1> to vector<1x64xi1>
    %128 = vector.broadcast %127 : vector<1x64xi1> to vector<2x64xi1>
    %129 = vector.broadcast %cst_105 : f32 to vector<2x64xf32>
    %130 = arith.select %128, %126, %129 : vector<2x64xi1>, vector<2x64xf32>
    %c10_106 = arith.constant 10 : index
    %c0_107 = arith.constant 0 : index
    %131 = vector.load %arg15[%c10_106, %c0_107] : memref<36x64xf32, #tpu.memory_space<vmem>>, vector<2x64xf32>
    tpu.vector_store %arg15[%c10_106, %c0_107], %130 {strides = array<i32>} : memref<36x64xf32, #tpu.memory_space<vmem>>, vector<2x64xf32>,
    %c0_108 = arith.constant 0 : index
    %c16_109 = arith.constant 16 : index
    %132 = vector.load %arg14[%c0_108, %c16_109] : memref<4x82xf32, #tpu.memory_space<vmem>>, vector<2x64xf32>
    %cst_110 = arith.constant 0.000000e+00 : f32
    %133 = vector.shape_cast %4 : vector<1x64xi1> to vector<1x64xi1>
    %134 = vector.broadcast %133 : vector<1x64xi1> to vector<2x64xi1>
    %135 = vector.broadcast %cst_110 : f32 to vector<2x64xf32>
    %136 = arith.select %134, %132, %135 : vector<2x64xi1>, vector<2x64xf32>
    %c12_111 = arith.constant 12 : index
    %c0_112 = arith.constant 0 : index
    %137 = vector.load %arg15[%c12_111, %c0_112] : memref<36x64xf32, #tpu.memory_space<vmem>>, vector<2x64xf32>
    tpu.vector_store %arg15[%c12_111, %c0_112], %136 {strides = array<i32>} : memref<36x64xf32, #tpu.memory_space<vmem>>, vector<2x64xf32>,
    %c0_113 = arith.constant 0 : index
    %c17_114 = arith.constant 17 : index
    %138 = vector.load %arg14[%c0_113, %c17_114] : memref<4x82xf32, #tpu.memory_space<vmem>>, vector<2x64xf32>
    %c14 = arith.constant 14 : index
    %c0_115 = arith.constant 0 : index
    %139 = vector.load %arg15[%c14, %c0_115] : memref<36x64xf32, #tpu.memory_space<vmem>>, vector<2x64xf32>
    tpu.vector_store %arg15[%c14, %c0_115], %138 {strides = array<i32>} : memref<36x64xf32, #tpu.memory_space<vmem>>, vector<2x64xf32>,
    %c0_116 = arith.constant 0 : index
    %c18_117 = arith.constant 18 : index
    %140 = vector.load %arg14[%c0_116, %c18_117] : memref<4x82xf32, #tpu.memory_space<vmem>>, vector<2x64xf32>
    %cst_118 = arith.constant 0.000000e+00 : f32
    %141 = vector.shape_cast %6 : vector<1x64xi1> to vector<1x64xi1>
    %142 = vector.broadcast %141 : vector<1x64xi1> to vector<2x64xi1>
    %143 = vector.broadcast %cst_118 : f32 to vector<2x64xf32>
    %144 = arith.select %142, %140, %143 : vector<2x64xi1>, vector<2x64xf32>
    %c16_119 = arith.constant 16 : index
    %c0_120 = arith.constant 0 : index
    %145 = vector.load %arg15[%c16_119, %c0_120] : memref<36x64xf32, #tpu.memory_space<vmem>>, vector<2x64xf32>
    tpu.vector_store %arg15[%c16_119, %c0_120], %144 {strides = array<i32>} : memref<36x64xf32, #tpu.memory_space<vmem>>, vector<2x64xf32>,
    %c0_121 = arith.constant 0 : index
    %c0_122 = arith.constant 0 : index
    %146 = vector.load %arg15[%c0_121, %c0_122] : memref<36x64xf32, #tpu.memory_space<vmem>>, vector<18x64xf32>
    %cst_123 = arith.constant dense<0.000000e+00> : vector<4x64xf32>
    %147 = tpu.matmul %99, %146, %cst_123 {dimension_numbers = #tpu.dot_dimension_numbers<[1], [0], [0], [1], [0, 0, 1, 1], [], []>} : vector<4x18xf32>, vector<18x64xf32>, vector<4x64xf32> -> vector<4x64xf32>
    %c0_124 = arith.constant 0 : index
    %c0_125 = arith.constant 0 : index
    %148 = vector.load %arg12[%c0_124, %c0_125] : memref<4x1xf32, #tpu.memory_space<vmem>>, vector<4x1xf32>
    %149 = vector.broadcast %148 : vector<4x1xf32> to vector<4x64xf32>
    %150 = arith.addf %147, %149 : vector<4x64xf32>
    %c0_126 = arith.constant 0 : index
    %c0_127 = arith.constant 0 : index
    %c0_128 = arith.constant 0 : index
    %151 = vector.load %arg13[%c0_126, %c0_127, %c0_128] : memref<1x4x64xf32, #tpu.memory_space<vmem>>, vector<1x4x64xf32>
    %152 = vector.shape_cast %151 : vector<1x4x64xf32> to vector<4x64xf32>
    %153 = vector.shape_cast %150 : vector<4x64xf32> to vector<1x4x64xf32>
    tpu.vector_store %arg13[%c0_126, %c0_127, %c0_128], %153 {strides = array<i32>} : memref<1x4x64xf32, #tpu.memory_space<vmem>>, vector<1x4x64xf32>,
    return
  }
  func.func @transform_0(%arg0: i32) -> (i32, i32, i32) {
    %c0_i32 = arith.constant 0 : i32
    %c0_i32_0 = arith.constant 0 : i32
    %c0_i32_1 = arith.constant 0 : i32
    return %arg0, %c0_i32, %c0_i32_0 : i32, i32, i32
  }
  func.func @transform_1(%arg0: i32) -> (i32, i32, i32) {
    %c0_i32 = arith.constant 0 : i32
    %c0_i32_0 = arith.constant 0 : i32
    %c0_i32_1 = arith.constant 0 : i32
    return %arg0, %c0_i32, %c0_i32_0 : i32, i32, i32
  }
  func.func @transform_2(%arg0: i32) -> (i32, i32) {
    %c0_i32 = arith.constant 0 : i32
    %c0_i32_0 = arith.constant 0 : i32
    %c0_i32_1 = arith.constant 0 : i32
    return %c0_i32, %c0_i32_0 : i32, i32
  }
  func.func @transform_3(%arg0: i32) -> (i32, i32) {
    %c0_i32 = arith.constant 0 : i32
    %c0_i32_0 = arith.constant 0 : i32
    %c0_i32_1 = arith.constant 0 : i32
    return %c0_i32, %c0_i32_0 : i32, i32
  }
  func.func @transform_4(%arg0: i32) -> (i32, i32) {
    %c0_i32 = arith.constant 0 : i32
    %c0_i32_0 = arith.constant 0 : i32
    %c0_i32_1 = arith.constant 0 : i32
    return %c0_i32, %c0_i32_0 : i32, i32
  }
  func.func @transform_5(%arg0: i32) -> (i32, i32) {
    %c0_i32 = arith.constant 0 : i32
    %c0_i32_0 = arith.constant 0 : i32
    %c0_i32_1 = arith.constant 0 : i32
    return %c0_i32, %c0_i32_0 : i32, i32
  }
  func.func @transform_6(%arg0: i32) -> (i32, i32) {
    %c0_i32 = arith.constant 0 : i32
    %c0_i32_0 = arith.constant 0 : i32
    %c0_i32_1 = arith.constant 0 : i32
    return %c0_i32, %c0_i32_0 : i32, i32
  }
  func.func @transform_7(%arg0: i32) -> (i32, i32) {
    %c0_i32 = arith.constant 0 : i32
    %c0_i32_0 = arith.constant 0 : i32
    %c0_i32_1 = arith.constant 0 : i32
    return %c0_i32, %c0_i32_0 : i32, i32
  }
  func.func @transform_8(%arg0: i32) -> (i32, i32) {
    %c0_i32 = arith.constant 0 : i32
    %c0_i32_0 = arith.constant 0 : i32
    %c0_i32_1 = arith.constant 0 : i32
    return %c0_i32, %c0_i32_0 : i32, i32
  }
  func.func @transform_9(%arg0: i32) -> (i32, i32) {
    %c0_i32 = arith.constant 0 : i32
    %c0_i32_0 = arith.constant 0 : i32
    %c0_i32_1 = arith.constant 0 : i32
    return %c0_i32, %c0_i32_0 : i32, i32
  }
  func.func @transform_10(%arg0: i32) -> (i32, i32) {
    %c0_i32 = arith.constant 0 : i32
    %c0_i32_0 = arith.constant 0 : i32
    %c0_i32_1 = arith.constant 0 : i32
    return %c0_i32, %c0_i32_0 : i32, i32
  }
  func.func @transform_11(%arg0: i32) -> (i32, i32) {
    %c0_i32 = arith.constant 0 : i32
    %c0_i32_0 = arith.constant 0 : i32
    %c0_i32_1 = arith.constant 0 : i32
    return %c0_i32, %c0_i32_0 : i32, i32
  }
  func.func @transform_12(%arg0: i32) -> (i32, i32, i32) {
    %c0_i32 = arith.constant 0 : i32
    %c0_i32_0 = arith.constant 0 : i32
    %c0_i32_1 = arith.constant 0 : i32
    return %arg0, %c0_i32, %c0_i32_0 : i32, i32, i32
  }
}

module attributes {stable_mosaic.version = 11 : i64} {
  func.func @_combine_kernel(%arg0: i32, %arg1: memref<1x8x256xf32, #tpu.memory_space<vmem>>, %arg2: memref<1x4x256xf32, #tpu.memory_space<vmem>>, %arg3: memref<1x4x256xf32, #tpu.memory_space<vmem>>, %arg4: memref<1x16x256xf32, #tpu.memory_space<vmem>>, %arg5: memref<1x16x256xf32, #tpu.memory_space<vmem>>) attributes {dimension_semantics = [#tpu.dimension_semantics<parallel>], iteration_bounds = array<i64: 2>, scalar_prefetch = 0 : i64, scratch_operands = 0 : i64, tpu.core_type = #tpu.core_type<tc>, window_params = [{transform_indices = @transform_0, window_bounds = array<i64: 1, 8, 256>}, {transform_indices = @transform_1, window_bounds = array<i64: 1, 4, 256>}, {transform_indices = @transform_2, window_bounds = array<i64: 1, 4, 256>}, {transform_indices = @transform_3, window_bounds = array<i64: 1, 16, 256>}, {transform_indices = @transform_4, window_bounds = array<i64: 1, 16, 256>}]} {
    %c0 = arith.constant 0 : index
    %c0_0 = arith.constant 0 : index
    %c0_1 = arith.constant 0 : index
    %0 = vector.load %arg1[%c0, %c0_0, %c0_1] : memref<1x8x256xf32, #tpu.memory_space<vmem>>, vector<1x8x256xf32>
    %1 = vector.shape_cast %0 : vector<1x8x256xf32> to vector<8x256xf32>
    %c0_2 = arith.constant 0 : index
    %c0_3 = arith.constant 0 : index
    %c0_4 = arith.constant 0 : index
    %2 = vector.load %arg4[%c0_2, %c0_3, %c0_4] : memref<1x16x256xf32, #tpu.memory_space<vmem>>, vector<1x8x256xf32>
    %3 = vector.shape_cast %2 : vector<1x8x256xf32> to vector<8x256xf32>
    %4 = arith.addf %1, %3 : vector<8x256xf32>
    %c0_5 = arith.constant 0 : index
    %c0_6 = arith.constant 0 : index
    %c0_7 = arith.constant 0 : index
    %5 = vector.load %arg5[%c0_5, %c0_6, %c0_7] : memref<1x16x256xf32, #tpu.memory_space<vmem>>, vector<1x8x256xf32>
    %6 = vector.shape_cast %5 : vector<1x8x256xf32> to vector<8x256xf32>
    %7 = vector.shape_cast %4 : vector<8x256xf32> to vector<1x8x256xf32>
    tpu.vector_store %arg5[%c0_5, %c0_6, %c0_7], %7 {strides = array<i32>} : memref<1x16x256xf32, #tpu.memory_space<vmem>>, vector<1x8x256xf32>,
    %c0_8 = arith.constant 0 : index
    %c0_9 = arith.constant 0 : index
    %c0_10 = arith.constant 0 : index
    %8 = vector.load %arg2[%c0_8, %c0_9, %c0_10] : memref<1x4x256xf32, #tpu.memory_space<vmem>>, vector<1x4x256xf32>
    %9 = vector.shape_cast %8 : vector<1x4x256xf32> to vector<4x256xf32>
    %c0_11 = arith.constant 0 : index
    %c8 = arith.constant 8 : index
    %c0_12 = arith.constant 0 : index
    %10 = vector.load %arg4[%c0_11, %c8, %c0_12] : memref<1x16x256xf32, #tpu.memory_space<vmem>>, vector<1x4x256xf32>
    %11 = vector.shape_cast %10 : vector<1x4x256xf32> to vector<4x256xf32>
    %12 = arith.addf %9, %11 : vector<4x256xf32>
    %c0_13 = arith.constant 0 : index
    %c8_14 = arith.constant 8 : index
    %c0_15 = arith.constant 0 : index
    %13 = vector.load %arg5[%c0_13, %c8_14, %c0_15] : memref<1x16x256xf32, #tpu.memory_space<vmem>>, vector<1x4x256xf32>
    %14 = vector.shape_cast %13 : vector<1x4x256xf32> to vector<4x256xf32>
    %15 = vector.shape_cast %12 : vector<4x256xf32> to vector<1x4x256xf32>
    tpu.vector_store %arg5[%c0_13, %c8_14, %c0_15], %15 {strides = array<i32>} : memref<1x16x256xf32, #tpu.memory_space<vmem>>, vector<1x4x256xf32>,
    %c0_16 = arith.constant 0 : index
    %c0_17 = arith.constant 0 : index
    %c0_18 = arith.constant 0 : index
    %16 = vector.load %arg3[%c0_16, %c0_17, %c0_18] : memref<1x4x256xf32, #tpu.memory_space<vmem>>, vector<1x4x256xf32>
    %17 = vector.shape_cast %16 : vector<1x4x256xf32> to vector<4x256xf32>
    %c0_19 = arith.constant 0 : index
    %c12 = arith.constant 12 : index
    %c0_20 = arith.constant 0 : index
    %18 = vector.load %arg4[%c0_19, %c12, %c0_20] : memref<1x16x256xf32, #tpu.memory_space<vmem>>, vector<1x4x256xf32>
    %19 = vector.shape_cast %18 : vector<1x4x256xf32> to vector<4x256xf32>
    %20 = arith.addf %17, %19 : vector<4x256xf32>
    %c0_21 = arith.constant 0 : index
    %c12_22 = arith.constant 12 : index
    %c0_23 = arith.constant 0 : index
    %21 = vector.load %arg5[%c0_21, %c12_22, %c0_23] : memref<1x16x256xf32, #tpu.memory_space<vmem>>, vector<1x4x256xf32>
    %22 = vector.shape_cast %21 : vector<1x4x256xf32> to vector<4x256xf32>
    %23 = vector.shape_cast %20 : vector<4x256xf32> to vector<1x4x256xf32>
    tpu.vector_store %arg5[%c0_21, %c12_22, %c0_23], %23 {strides = array<i32>} : memref<1x16x256xf32, #tpu.memory_space<vmem>>, vector<1x4x256xf32>,
    return
  }
  func.func @transform_0(%arg0: i32) -> (i32, i32, i32) {
    %c0_i32 = arith.constant 0 : i32
    %c0_i32_0 = arith.constant 0 : i32
    %c0_i32_1 = arith.constant 0 : i32
    return %arg0, %c0_i32, %c0_i32_0 : i32, i32, i32
  }
  func.func @transform_1(%arg0: i32) -> (i32, i32, i32) {
    %c0_i32 = arith.constant 0 : i32
    %c0_i32_0 = arith.constant 0 : i32
    %c0_i32_1 = arith.constant 0 : i32
    return %arg0, %c0_i32, %c0_i32_0 : i32, i32, i32
  }
  func.func @transform_2(%arg0: i32) -> (i32, i32, i32) {
    %c0_i32 = arith.constant 0 : i32
    %c0_i32_0 = arith.constant 0 : i32
    %c0_i32_1 = arith.constant 0 : i32
    return %arg0, %c0_i32, %c0_i32_0 : i32, i32, i32
  }
  func.func @transform_3(%arg0: i32) -> (i32, i32, i32) {
    %c0_i32 = arith.constant 0 : i32
    %c0_i32_0 = arith.constant 0 : i32
    %c0_i32_1 = arith.constant 0 : i32
    return %arg0, %c0_i32, %c0_i32_0 : i32, i32, i32
  }
  func.func @transform_4(%arg0: i32) -> (i32, i32, i32) {
    %c0_i32 = arith.constant 0 : i32
    %c0_i32_0 = arith.constant 0 : i32
    %c0_i32_1 = arith.constant 0 : i32
    return %arg0, %c0_i32, %c0_i32_0 : i32, i32, i32
  }
}

</mosaic_0001>

<bundles_post_ra>
// kernel: pyramid_forward.5
= control target key start
LH: loop header
LB: loop body
LE: loop exit
PB: predicated region body
PF: predicated region fallthrough
CT: control target
= control target key end

     0   :  { %s645_s21 = smov 0   ;;  %s693_s0 = inlined_call_operand.vmem [shape: f32[2,4,256], index: 0, kind: input, shape index: {}]   ;;  %s694_s1 = inlined_call_operand.vmem [shape: f32[16,4], index: 1, kind: input, shape index: {}]   ;;  %s695_s2 = inlined_call_operand.vmem [shape: f32[16,1], index: 2, kind: input, shape index: {}]   ;;  %s696_s3 = inlined_call_operand.vmem [shape: f32[16,16], index: 3, kind: input, shape index: {}]   ;;  %s697_s4 = inlined_call_operand.vmem [shape: f32[16,1], index: 4, kind: input, shape index: {}]   ;;  %s698_s5 = inlined_call_operand.vmem [shape: f32[2,16,256], index: 5, kind: output, shape index: {0}]   ;;  %s699_s6 = inlined_call_operand.vmem [shape: f32[2,16,256], index: 6, kind: output, shape index: {1}]  }
   0x1 LB: > { %s565_s22 = sadd.s32 4294967295, %s606_s21   ;;  %p569_p0 = scmp.ge.s32.totalorder %s606_s21, 1  ;;  %s606_s21 = sphi %s645_s21, %s17_s21  }
   0x2   : > { %p215_p1 = scmp.lt.s32.totalorder %s606_s21, 3 }
   0x4   : > { %p216_p2 = pnand %p569_p0, %p215_p1 }
   0x5   : > { %p250_p3 = scmp.lt.s32.totalorder (!%p216_p2), %s565_s22, 1 }
   0x6   : > { %219 = sbr.rel (%p216_p2) target bundleno = 426 (0x1aa), region = 40 }
   0xb   : > { %v608_v0 = vmov 0.0   ;;  %v269_v1 = vld [vmem:[%s695_s2 + $0x8] sm:$0xff]  ;;  %s701_s22 = smov (!%p250_p3, %s565_s22), 1  ;;  %v609_v2 = vmov 0   ;;  %v268_v3 = vld [vmem:[%s695_s2] sm:$0xff]  ;;  %vm289_vm0 = vcmask 1043456  }
   0xc   : > { %358 = vmatprep.mubr.f32.mxu0 %v608_v0  ;;  %460 = vmatprep.mubr.f32.mxu1 %v608_v0  ;;  %s584_s25 = sshll.u32 %s701_s22, 3  ;;  %v265_v6 = vld [vmem:[%s694_s1] sm:$0xff]  ;;  %vm282_vm1 = vcmask 31744   ;;  %v266_v7 = vld [vmem:[%s694_s1 + $0x8] sm:$0xff]  ;;  %s585_s15 = sshll.u32 %s701_s22, 5  ;;  %vm389_vm2 = vcmask 130048  }
   0xd   : > { %597 = vset.pattern.permute.xlu0 %v609_v2  ;;  %598 = vset.pattern.permute.xlu1 %v609_v2  ;;  %s254_s30 = scalar_lea.vmem %s693_s0, %s584_s25  ;;  %v377_v8 = vld [vmem:[%s697_s4] sm:$0xff]  ;;  %v378_v9 = vld [vmem:[%s697_s4 + $0x8] sm:$0xff]  ;;  %s259_s18 = scalar_lea.vmem %s698_s5, %s585_s15 }
   0xe   : > { %277 = vperm.xlu0 %597, %v269_v1   ;;  %v267_v4 = vld [vmem:[%s254_s30] sm:$0xff]  ;;  %381 = vperm.xlu1 %598, %v377_v8   ;;  %v376_v21 = vld [vmem:[%s696_s3 + $0x8] sm:$0xff]  ;;  %s264_s26 = scalar_lea.vmem %s699_s6, %s585_s15 }
   0xf   : > { %v281_v5 = vcombine.high %v267_v4, %v267_v4  ;;  %v375_v20 = vld [vmem:[%s696_s3] sm:$0xff] }
  0x11   : > { %576 = vmatprep.subr.msk.mxu0 %vm289_vm0, %v281_v5 }
  0x12   : > { %272 = vperm.xlu0 %597, %v268_v3   ;;  %577 = vmatpush1.msk.msra.mxu0 %vm289_vm0, %v267_v4 }
  0x13   : > { %578 = vmatmul.mubr.msk.f32.vlgmr.msra.gmra.mxu0 %vm282_vm1, %v265_v6  ;;  %386 = vperm.xlu1 %598, %v378_v9  }
  0x14   : > { %364 = vmatprep.mubr.f32.mxu0 %v608_v0 }
  0x17   : > { %579 = vmatmul.mubr.msk.f32.gmra.mxu0 %vm282_vm1, %v266_v7 }
  0x89   : > { %v278_v10 = vpop.permute.xlu0 %277  ;;  %v382_v22 = vpop.permute.xlu1 %381 }
  0x8d   : > { %v273_v11 = vpop.permute.xlu0 %272 }
  0x8e   : > { %v387_v27 = vpop.permute.xlu1 %386 }
  0xd3   : > { %v360_v12 = vpop.f32.mrf.mxu0 }
  0xd4   : > { %v361_v13 = vadd.f32 %v360_v12, %v273_v11 }
  0xd5   : > { %v362_v14 = vpop.f32.mrf.mxu0 }
  0xd6   : > { %371 = vst [vmem:[%s259_s18] sm:$0xff] %v361_v13  ;;  %v363_v15 = vadd.f32 %v362_v14, %v273_v11 }
  0xd7   : > { %v366_v16 = vpop.f32.mrf.mxu0 }
  0xd8   : > { %372 = vst [vmem:[%s259_s18 + $0x8] sm:$0xff] %v363_v15  ;;  %v367_v17 = vadd.f32 %v366_v16, %v278_v10 }
  0xd9   : > { %v368_v18 = vpop.f32.mrf.mxu0 }
  0xda   : > { %373 = vst [vmem:[%s259_s18 + $0x10] sm:$0xff] %v367_v17  ;;  %v369_v19 = vadd.f32 %v368_v18, %v278_v10 }
  0xdc   : > { %374 = vst [vmem:[%s259_s18 + $0x18] sm:$0xff] %v369_v19  ;;  %424 = vmatprep.subr.mxu1 %v369_v19 }
  0xdd   : > { %425 = vmatpush1.msra.mxu1 %v367_v17 }
  0xde   : > { %426 = vmatprep.subr.mxu1 %v363_v15 }
  0xdf   : > { %427 = vmatpush1.msra.mxu1 %v361_v13 }
  0xe0   : > { %580 = vmatmul.mubr.msk.f32.vlgmr.msra.gmra.mxu1 %vm389_vm2, %v375_v20 }
  0xe1   : > { %466 = vmatprep.mubr.f32.mxu1 %v608_v0 }
  0xe4   : > { %581 = vmatmul.mubr.msk.f32.gmra.mxu1 %vm389_vm2, %v376_v21 }
 0x1a0   : > { %v462_v23 = vpop.f32.mrf.mxu1 }
 0x1a1   : > { %v463_v24 = vadd.f32 %v462_v23, %v382_v22 }
 0x1a2   : > { %v464_v25 = vpop.f32.mrf.mxu1 }
 0x1a3   : > { %473 = vst [vmem:[%s264_s26] sm:$0xff] %v463_v24  ;;  %v465_v26 = vadd.f32 %v464_v25, %v382_v22 }
 0x1a4   : > { %v468_v28 = vpop.f32.mrf.mxu1 }
 0x1a5   : > { %474 = vst [vmem:[%s264_s26 + $0x8] sm:$0xff] %v465_v26  ;;  %v469_v29 = vadd.f32 %v468_v28, %v387_v27 }
 0x1a6   : > { %v470_v30 = vpop.f32.mrf.mxu1 }
 0x1a7   : > { %475 = vst [vmem:[%s264_s26 + $0x10] sm:$0xff] %v469_v29  ;;  %v471_v31 = vadd.f32 %v470_v30, %v387_v27 }
 0x1a9   : > { %476 = vst [vmem:[%s264_s26 + $0x18] sm:$0xff] %v471_v31 }
 0x1aa PF: > { %s17_s21 = sadd.s32 1, %s606_s21  }
 0x1ab   : > { %p14_p4 = scmp.ge.s32.totalorder %s17_s21, 4  }
 0x1ad   :  { %16 = sbr.rel (!%p14_p4) target bundleno = 1 (0x1), region = 82 }

// kernel: pyramid_forward.6
= control target key start
LH: loop header
LB: loop body
LE: loop exit
PB: predicated region body
PF: predicated region fallthrough
CT: control target
= control target key end

     0   :  { %s1535_s21 = smov 0   ;;  %s1815_s0 = inlined_call_operand.vmem [shape: f32[2,16,256], index: 0, kind: input, shape index: {}]   ;;  %s1816_s1 = inlined_call_operand.vmem [shape: f32[2,8,256], index: 1, kind: input, shape index: {}]   ;;  %s1817_s2 = inlined_call_operand.vmem [shape: f32[8,8], index: 2, kind: input, shape index: {}]   ;;  %s1818_s3 = inlined_call_operand.vmem [shape: f32[8,2], index: 3, kind: input, shape index: {}]   ;;  %s1819_s4 = inlined_call_operand.vmem [shape: f32[8,8], index: 4, kind: input, shape index: {}]   ;;  %s1820_s5 = inlined_call_operand.vmem [shape: f32[8,8], index: 5, kind: input, shape index: {}]   ;;  %s1821_s6 = inlined_call_operand.vmem [shape: f32[8,2], index: 6, kind: input, shape index: {}]   ;;  %s1822_s7 = inlined_call_operand.vmem [shape: f32[8,2], index: 7, kind: input, shape index: {}]   ;;  %s1823_s8 = inlined_call_operand.vmem [shape: f32[4,72], index: 8, kind: input, shape index: {}]   ;;  %s1824_s9 = inlined_call_operand.vmem [shape: f32[4,2], index: 9, kind: input, shape index: {}]   ;;  %s1825_s10 = inlined_call_operand.vmem [shape: f32[8,36], index: 10, kind: input, shape index: {}]   ;;  %s1826_s11 = inlined_call_operand.vmem [shape: f32[8,1], index: 11, kind: input, shape index: {}]   ;;  %s1827_s12 = inlined_call_operand.vmem [shape: f32[2,8,256], index: 12, kind: output, shape index: {}]  }
   0x1 LB: > { %s1389_s22 = sadd.s32 4294967295, %s1456_s21   ;;  %p1393_p0 = scmp.ge.s32.totalorder %s1456_s21, 1  ;;  %s1456_s21 = sphi %s1535_s21, %s22_s21  }
   0x2   : > { %p372_p1 = scmp.lt.s32.totalorder %s1456_s21, 3 }
   0x4   : > { %p373_p2 = pnand %p1393_p0, %p372_p1 }
   0x5   : > { %p419_p3 = scmp.lt.s32.totalorder (!%p373_p2), %s1389_s22, 1  ;;  %s1462_s29 = smov (!%p373_p2), 94  }
   0x6   : > { %376 = sbr.rel (%p373_p2) target bundleno = 1404 (0x57c), region = 68  ;;  %s1463_s30 = smov (!%p373_p2), 95  }
   0x7   : > { %s1464_s13 = smov (!%p373_p2), 96   ;;  %s1465_s14 = smov (!%p373_p2), 110  }
   0x8   : > { %s1467_s16 = smov (!%p373_p2), 112   ;;  %s1468_s17 = smov (!%p373_p2), 126  }
   0xb   : > { %v523_v0 = vld [vmem:[%s1818_s3] sm:$0xff]  ;;  %v1458_v1 = vmov 0.0   ;;  %v1459_v2 = vmov 0   ;;  %s1837_s22 = smov (!%p419_p3, %s1389_s22), 1  ;;  %vm448_vm0 = vcmask 64512   ;;  %v1460_v6 = vmov 1  }
   0xc   : > { %516 = vmatprep.mubr.f32.mxu0 %v1458_v1  ;;  %1432 = vset.pattern.permute.xlu0 %v1459_v2  ;;  %s1410_s25 = sshll.u32 %s1837_s22, 4  ;;  %v445_v5 = vld [vmem:[%s1817_s2] sm:$0xff]  ;;  %s1409_s15 = sshll.u32 %s1837_s22, 5  ;;  %vm722_vm1 = vcmask 138240   ;;  %vm724_vm2 = vcmask 277640   ;;  %v434_v45 = vlaneseq  ;;  %vm736_vm3 = vcmask 1047688  }
   0xd   : > { %526 = vperm.xlu0 %1432, %v523_v0   ;;  %608 = vmatprep.mubr.f32.mxu1 %v1458_v1  ;;  %s428_s28 = scalar_lea.vmem %s1816_s1, %s1410_s25  ;;  %v705_v7 = vld [vmem:[%s1822_s7] sm:$0xff]  ;;  %s423_s18 = scalar_lea.vmem %s1815_s0, %s1409_s15  ;;  %723 = vst.msk [vmem:[#allocation2] sm:$0xff] %vm722_vm1, %v1458_v1  ;;  %vm1028_vm6 = vcmask 273544   ;;  %vm1026_vm7 = vcmask 134144   ;;  %vm907_vm8 = vcmask 769024   ;;  %vm888_vm9 = vcmask 777216  }
   0xe   : > { %1434 = vset.pattern.permute.xlu1 %v1459_v2  ;;  %v447_v3 = vld [vmem:[%s428_s28 + $0x8] sm:$0xff]  ;;  %v446_v4 = vld [vmem:[%s428_s28] sm:$0xff]  ;;  %725 = vst.msk [vmem:[#allocation2 + $0x10] sm:$0xff] %vm724_vm2, %v1458_v1  ;;  %s1461_s28 = smov 17   ;;  %v1589_v46 = vand.u32 127, %v434_v45  ;;  %s1466_s15 = smov 111  }
   0xf   : > { %482 = vmatprep.subr.mxu0 %v447_v3  ;;  %v444_v8 = vld [vmem:[%s423_s18 + $0x8] sm:$0xff]  ;;  %v443_v9 = vld [vmem:[%s423_s18] sm:$0xff]  ;;  %s1469_s18 = smov 127   ;;  %vm867_vm12 = vcmask 785408   ;;  %vm846_vm13 = vcmask 900096   ;;  %vm827_vm14 = vcmask 908288  }
  0x10   : > { %483 = vmatpush1.msra.mxu0 %v446_v4  ;;  %v539_v10 = vld [vmem:[%s1819_s4] sm:$0xff]  ;;  %v1592_v47 = vadd.s32 128, %v1589_v46  ;;  %v437_v52 = vand.u32 15, %v1589_v46  ;;  %vm806_vm15 = vcmask 916480   ;;  %vm762_vm2 = vcmask 1039360  }
  0x11   : > { %1433 = vset.pattern.permute.xlu0 %v1460_v6  ;;  %1400 = vmatmul.mubr.msk.f32.vlgmr.msra.gmra.mxu0 %vm448_vm0, %v445_v5  ;;  %v689_v11 = vld [vmem:[%s1821_s6] sm:$0xff] }
  0x12   : > { %532 = vperm.xlu0 %1433, %v523_v0   ;;  %682 = vmatprep.mubr.f32.mxu0 %v1458_v1  ;;  %v540_v22 = vld [vmem:[%s1820_s5] sm:$0xff]  ;;  %v438_v48 = vand.u32 15, %v1592_v47  ;;  %vm1612_vm5 = vcmp.ge.s32.totalorder %v437_v52, 1  ;;  %vm1670_vm10 = vcmp.le.s32.totalorder %v437_v52, 14 }
  0x13   : > { %648 = vmatprep.subr.mxu0 %v444_v8  ;;  %692 = vperm.xlu1 %1434, %v689_v11   ;;  %v1009_v59 = vld [vmem:[%s1824_s9] sm:$0xf] }
  0x14   : > { %649 = vmatpush1.msra.mxu0 %v443_v9  ;;  %vm1597_vm4 = vcmp.ge.s32.totalorder %v438_v48, 1  ;;  %vm1676_vm11 = vcmp.le.s32.totalorder %v438_v48, 14 }
  0x15   : > { %1402 = vmatmul.mubr.msk.f32.vlgmr.msra.gmra.mxu0 %vm448_vm0, %v539_v10 }
  0x16   : > { %714 = vperm.xlu0 %1433, %v705_v7   ;;  %1313 = vmatprep.mubr.f32.mxu0 %v1458_v1 }
  0x17   : > { %1435 = vset.pattern.permute.xlu1 %v1460_v6 }
  0x18   : > { %698 = vperm.xlu1 %1435, %v689_v11  }
  0x1c   : > { %1436 = vset.pattern.permute.xlu1 %v1459_v2 }
  0x1d   : > { %708 = vperm.xlu1 %1436, %v705_v7  }
  0x88   : > { %v527_v12 = vpop.permute.xlu0 %526 }
  0x8d   : > { %v533_v16 = vpop.permute.xlu0 %532 }
  0x8e   : > { %v693_v23 = vpop.permute.xlu1 %692 }
  0x91   : > { %v715_v39 = vpop.permute.xlu0 %714 }
  0x93   : > { %v699_v26 = vpop.permute.xlu1 %698 }
  0x98   : > { %v709_v34 = vpop.permute.xlu1 %708 }
  0xd1   : > { %v518_v13 = vpop.f32.mrf.mxu0 }
  0xd2   : > { %v529_v14 = vmul.f32 %v527_v12, %v518_v13 }
  0xd3   : > { %v520_v15 = vpop.f32.mrf.mxu0 }
  0xd4   : > { %v530_v17 = vmul.f32 %v527_v12, %v520_v15  ;;  %v535_v18 = vadd.f32 %v533_v16, %v529_v14 }
  0xd5   : > { %v684_v24 = vpop.f32.mrf.mxu0 }
  0xd6   : > { %v536_v19 = vadd.f32 %v533_v16, %v530_v17  ;;  %v537_v21 = vmax.f32 %v535_v18, 0.0 }
  0xd7   : > { %v686_v28 = vpop.f32.mrf.mxu0 }
  0xd8   : > { %v538_v20 = vmax.f32 %v536_v19, 0.0 }
  0xda   : > { %574 = vmatprep.subr.mxu1 %v538_v20 }
  0xdb   : > { %575 = vmatpush1.msra.mxu1 %v537_v21 }
  0xdc   : > { %1401 = vmatmul.mubr.msk.f32.vlgmr.msra.gmra.mxu1 %vm448_vm0, %v540_v22  ;;  %vm785_vm0 = vcmask 1031168  }
  0xdd   : > { %1002 = vmatprep.mubr.f32.mxu1 %v1458_v1 }
 0x19c   : > { %v610_v25 = vpop.f32.mrf.mxu1 }
 0x19d   : > { %v685_v27 = vadd.f32 %v684_v24, %v610_v25 }
 0x19e   : > { %v612_v29 = vpop.f32.mrf.mxu1 }
 0x19f   : > { %v695_v30 = vmul.f32 %v693_v23, %v685_v27  ;;  %v687_v31 = vadd.f32 %v686_v28, %v612_v29 }
 0x1a1   : > { %v696_v32 = vmul.f32 %v693_v23, %v687_v31  ;;  %v701_v33 = vadd.f32 %v699_v26, %v695_v30 }
 0x1a3   : > { %v702_v35 = vadd.f32 %v699_v26, %v696_v32  ;;  %v703_v36 = vmax.f32 %v701_v33, 0.0 }
 0x1a5   : > { %v704_v37 = vmax.f32 %v702_v35, 0.0  ;;  %v711_v38 = vmul.f32 %v709_v34, %v703_v36 }
 0x1a7   : > { %v712_v40 = vmul.f32 %v709_v34, %v704_v37  ;;  %v717_v41 = vadd.f32 %v715_v39, %v711_v38 }
 0x1a9   : > { %v718_v42 = vadd.f32 %v715_v39, %v712_v40  ;;  %v719_v43 = vmax.f32 %v717_v41, 0.0 }
 0x1ab   : > { %728 = vrot.lane.b32.xlu1 %v719_v43, %s1461_s28  ;;  %v720_v44 = vmax.f32 %v718_v42, 0.0  ;;  %v721_v42 = vld [vmem:[%s1823_s8] sm:$0xf] }
 0x1ad   : > { %730 = vrot.lane.b32.xlu0 %v720_v44, %s1461_s28 }
 0x21d   : > { %v729_v49 = vpop.permute.xlu1 %728 }
 0x21e   : > { %737 = vst.msk [vmem:[#allocation2] sm:$0xff] %vm736_vm3, %v729_v49  ;;  %vm934_vm3 = vcmask 588800  }
 0x21f   : > { %v731_v51 = vpop.permute.xlu0 %730 }
 0x220   : > { %v1603_v53 = vsel %vm722_vm1, %v729_v49, %v731_v51  ;;  %739 = vst.msk [vmem:[#allocation2 + $0x10] sm:$0xff] %vm722_vm1, %v731_v51 }
 0x221   : > { %738 = vst [vmem:[#allocation2 + $0x8] sm:$0xff] %v1603_v53  ;;  %v747_v54 = vsel %vm1597_vm4, %v1603_v53, 0.0 }
 0x222   : > { %749 = vst [vmem:[#allocation3 + $0x38] sm:$0xff] %v747_v54 }
 0x225   : > { %v1616_v56 = vld [vmem:[#allocation2] sm:$0xff] }
 0x226   : > { %901 = vrot.lane.b32.xlu1 %v1616_v56, %s1462_s29  ;;  %882 = vrot.lane.b32.xlu0 %v1616_v56, %s1463_s30  ;;  %v746_v57 = vsel %vm1612_vm5, %v1616_v56, 0.0  ;;  %1027 = vst.msk [vmem:[#allocation2] sm:$0xf] %vm1026_vm7, %v1458_v1 }
 0x227   : > { %v878_v58 = vld [vmem:[#allocation2 + $0x10] sm:$0xff]  ;;  %748 = vst [vmem:[#allocation3] sm:$0xff] %v746_v57 }
 0x228   : > { %1029 = vst.msk [vmem:[#allocation2 + $0x10] sm:$0xf] %vm1028_vm6, %v1458_v1  ;;  %vm1040_vm6 = vcmask 1043592  }
 0x22a   : > { %861 = vrot.lane.b32.xlu1 %v1616_v56, %s1464_s13  ;;  %840 = vrot.lane.b32.xlu0 %v1616_v56, %s1465_s14 }
 0x22e   : > { %821 = vrot.lane.b32.xlu1 %v1616_v56, %s1466_s15  ;;  %800 = vrot.lane.b32.xlu0 %v1616_v56, %s1467_s16 }
 0x232   : > { %886 = vrot.lane.b32.xlu1 %v878_v58, %s1463_s30  ;;  %905 = vrot.lane.b32.xlu0 %v878_v58, %s1462_s29 }
 0x236   : > { %865 = vrot.lane.b32.xlu1 %v878_v58, %s1464_s13  ;;  %825 = vrot.lane.b32.xlu0 %v878_v58, %s1466_s15 }
 0x23a   : > { %844 = vrot.lane.b32.xlu1 %v878_v58, %s1465_s14  ;;  %804 = vrot.lane.b32.xlu0 %v878_v58, %s1467_s16 }
 0x23e   : > { %903 = vrot.lane.b32.xlu1 %v1603_v53, %s1462_s29  ;;  %884 = vrot.lane.b32.xlu0 %v1603_v53, %s1463_s30 }
 0x242   : > { %779 = vrot.lane.b32.xlu1 %v1616_v56, %s1468_s17  ;;  %863 = vrot.lane.b32.xlu0 %v1603_v53, %s1464_s13 }
 0x246   : > { %842 = vrot.lane.b32.xlu0 %v1603_v53, %s1465_s14  ;;  %823 = vrot.lane.b32.xlu1 %v1603_v53, %s1466_s15 }
 0x24a   : > { %783 = vrot.lane.b32.xlu0 %v878_v58, %s1468_s17  ;;  %802 = vrot.lane.b32.xlu1 %v1603_v53, %s1467_s16 }
 0x24e   : > { %781 = vrot.lane.b32.xlu1 %v1603_v53, %s1468_s17  ;;  %758 = vrot.lane.b32.xlu0 %v1603_v53, %s1469_s18 }
 0x252   : > { %760 = vrot.lane.b32.xlu1 %v878_v58, %s1469_s18  ;;  %756 = vrot.lane.b32.xlu0 %v1616_v56, %s1469_s18 }
 0x256   : > { %1012 = vperm.xlu1 %1436, %v1009_v59   ;;  %1018 = vperm.xlu0 %1433, %v1009_v59  }
 0x25a   : > { %1437 = vset.pattern.permute.xlu0 %v1459_v2 }
 0x298   : > { %v902_v60 = vpop.permute.xlu1 %901  ;;  %v883_v61 = vpop.permute.xlu0 %882 }
 0x29c   : > { %v862_v62 = vpop.permute.xlu1 %861  ;;  %v841_v63 = vpop.permute.xlu0 %840 }
 0x2a0   : > { %v822_v0 = vpop.permute.xlu1 %821  ;;  %v801_v1 = vpop.permute.xlu0 %800 }
 0x2a4   : > { %v887_v3 = vpop.permute.xlu1 %886  ;;  %v906_v4 = vpop.permute.xlu0 %905 }
 0x2a8   : > { %v866_v5 = vpop.permute.xlu1 %865  ;;  %v826_v6 = vpop.permute.xlu0 %825 }
 0x2ac   : > { %v845_v7 = vpop.permute.xlu1 %844  ;;  %v805_v8 = vpop.permute.xlu0 %804 }
 0x2b0   : > { %v904_v10 = vpop.permute.xlu1 %903  ;;  %v885_v11 = vpop.permute.xlu0 %884 }
 0x2b1   : > { %v908_v12 = vsel %vm907_vm8, %v902_v60, %v904_v10  ;;  %v909_v13 = vsel %vm907_vm8, %v904_v10, %v906_v4  ;;  %v889_v14 = vsel %vm888_vm9, %v883_v61, %v885_v11  ;;  %v890_v15 = vsel %vm888_vm9, %v885_v11, %v887_v3 }
 0x2b2   : > { %1438 = vmatprep.subr.msk.mxu1 %vm1676_vm11, %v909_v13 }
 0x2b3   : > { %1439 = vmatpush1.msk.msra.mxu1 %vm1670_vm10, %v908_v12 }
 0x2b4   : > { %v780_v16 = vpop.permute.xlu1 %779  ;;  %v864_v17 = vpop.permute.xlu0 %863  ;;  %954 = vmatprep.subr.mxu1 %v890_v15 }
 0x2b5   : > { %v868_v18 = vsel %vm867_vm12, %v862_v62, %v864_v17  ;;  %v869_v19 = vsel %vm867_vm12, %v864_v17, %v866_v5  ;;  %955 = vmatpush1.msra.mxu1 %v889_v14 }
 0x2b6   : > { %1440 = vmatprep.subr.msk.mxu1 %vm1597_vm4, %v869_v19 }
 0x2b7   : > { %1441 = vmatpush1.msk.msra.mxu1 %vm1612_vm5, %v868_v18 }
 0x2b8   : > { %v843_v20 = vpop.permute.xlu0 %842  ;;  %v824_v21 = vpop.permute.xlu1 %823 }
 0x2b9   : > { %v847_v22 = vsel %vm846_vm13, %v841_v63, %v843_v20  ;;  %v848_v23 = vsel %vm846_vm13, %v843_v20, %v845_v7  ;;  %v828_v24 = vsel %vm827_vm14, %v822_v0, %v824_v21  ;;  %v829_v25 = vsel %vm827_vm14, %v824_v21, %v826_v6 }
 0x2ba   : > { %832 = vst [vmem:[#allocation3 + $0x88] sm:$0xff] %v828_v24  ;;  %833 = vst [vmem:[#allocation3 + $0x40] sm:$0xff] %v829_v25  ;;  %1442 = vmatprep.subr.msk.mxu1 %vm1676_vm11, %v848_v23 }
 0x2bb   : > { %1443 = vmatpush1.msk.msra.mxu1 %vm1670_vm10, %v847_v22 }
 0x2bc   : > { %v784_v26 = vpop.permute.xlu0 %783  ;;  %v803_v27 = vpop.permute.xlu1 %802  ;;  %960 = vmatprep.subr.mxu1 %v829_v25 }
 0x2bd   : > { %v807_v28 = vsel %vm806_vm15, %v801_v1, %v803_v27  ;;  %v808_v29 = vsel %vm806_vm15, %v803_v27, %v805_v8  ;;  %961 = vmatpush1.msra.mxu1 %v828_v24 }
 0x2be   : > { %v811_v30 = vsel %vm1612_vm5, %v807_v28, 0.0  ;;  %v812_v31 = vsel %vm1597_vm4, %v808_v29, 0.0  ;;  %1444 = vmatprep.subr.msk.mxu1 %vm1597_vm4, %v808_v29 }
 0x2bf   : > { %813 = vst [vmem:[#allocation3 + $0x70] sm:$0xff] %v811_v30  ;;  %814 = vst [vmem:[#allocation3 + $0x80] sm:$0xff] %v812_v31  ;;  %1445 = vmatpush1.msk.msra.mxu1 %vm1612_vm5, %v807_v28  ;;  %v1232_v30 = vld [vmem:[%s1826_s11] sm:$0xff] }
 0x2c0   : > { %v782_v32 = vpop.permute.xlu1 %781  ;;  %v759_v33 = vpop.permute.xlu0 %758 }
 0x2c1   : > { %v786_v34 = vsel %vm785_vm0, %v780_v16, %v782_v32  ;;  %v787_v35 = vsel %vm785_vm0, %v782_v32, %v784_v26 }
 0x2c2   : > { %v790_v36 = vsel %vm1670_vm10, %v786_v34, 0.0  ;;  %v791_v37 = vsel %vm1676_vm11, %v787_v35, 0.0  ;;  %1446 = vmatprep.subr.msk.mxu1 %vm1676_vm11, %v787_v35 }
 0x2c3   : > { %792 = vst [vmem:[#allocation3 + $0x20] sm:$0xff] %v790_v36  ;;  %793 = vst [vmem:[#allocation3 + $0x8] sm:$0xff] %v791_v37  ;;  %1447 = vmatpush1.msk.msra.mxu1 %vm1670_vm10, %v786_v34 }
 0x2c4   : > { %v761_v38 = vpop.permute.xlu1 %760  ;;  %v757_v39 = vpop.permute.xlu0 %756 }
 0x2c5   : > { %v764_v40 = vsel %vm762_vm2, %v759_v33, %v761_v38  ;;  %v763_v41 = vsel %vm762_vm2, %v757_v39, %v759_v33 }
 0x2c6   : > { %768 = vst [vmem:[#allocation3 + $0x58] sm:$0xff] %v764_v40  ;;  %767 = vst [vmem:[#allocation3 + $0x78] sm:$0xff] %v763_v41  ;;  %966 = vmatprep.subr.mxu1 %v764_v40 }
 0x2c7   : > { %967 = vmatpush1.msra.mxu1 %v763_v41 }
 0x2c8   : > { %1448 = vmatprep.subr.msk.mxu1 %vm1597_vm4, %v1603_v53 }
 0x2c9   : > { %1449 = vmatpush1.msk.msra.mxu1 %vm1612_vm5, %v1616_v56 }
 0x2ca   : > { %1403 = vmatmul.mubr.msk.f32.vlgmr.msra.gmra.mxu1 %vm934_vm3, %v721_v42 }
 0x2d1   : > { %v1013_v43 = vpop.permute.xlu1 %1012  ;;  %v1019_v46 = vpop.permute.xlu0 %1018 }
 0x38a   : > { %v1004_v44 = vpop.f32.mrf.mxu1 }
 0x38b   : > { %v1015_v45 = vmul.f32 %v1013_v43, %v1004_v44 }
 0x38c   : > { %v1006_v47 = vpop.f32.mrf.mxu1 }
 0x38d   : > { %v1021_v48 = vadd.f32 %v1019_v46, %v1015_v45  ;;  %v1016_v49 = vmul.f32 %v1013_v43, %v1006_v47 }
 0x38f   : > { %v1023_v51 = vmax.f32 %v1021_v48, 0.0  ;;  %v1022_v52 = vadd.f32 %v1019_v46, %v1016_v49 }
 0x391   : > { %v1024_v54 = vmax.f32 %v1022_v52, 0.0  ;;  %1032 = vrot.lane.b32.xlu1 %v1023_v51, %s1461_s28 }
 0x393   : > { %1034 = vrot.lane.b32.xlu0 %v1024_v54, %s1461_s28 }
 0x403   : > { %v1033_v53 = vpop.permute.xlu1 %1032 }
 0x404   : > { %1041 = vst.msk [vmem:[#allocation2] sm:$0xf] %vm1040_vm6, %v1033_v53 }
 0x405   : > { %v1035_v57 = vpop.permute.xlu0 %1034 }
 0x406   : > { %v1036_v56 = vsel %vm722_vm1, %v1033_v53, %v1035_v57  ;;  %1043 = vst.msk [vmem:[#allocation2 + $0x10] sm:$0xf] %vm1026_vm7, %v1035_v57  ;;  %vm1242_vm1 = vcmask 1043456  }
 0x407   : > { %1042 = vst [vmem:[#allocation2 + $0x8] sm:$0xf] %v1036_v56 }
 0x40b   : > { %v1202_v58 = vld [vmem:[#allocation2] sm:$0xf] }
 0x40c   : > { %v1135_v59 = vld [vmem:[#allocation2] sm:$0xf]  ;;  %1208 = vrot.lane.b32.xlu1 %v1202_v58, %s1462_s29 }
 0x40d   : > { %1141 = vrot.lane.b32.xlu0 %v1135_v59, %s1465_s14  ;;  %v1161_v60 = vld [vmem:[#allocation2] sm:$0xf]  ;;  %v1204_v63 = vld [vmem:[#allocation2 + $0x10] sm:$0xf] }
 0x40e   : > { %v1117_v61 = vld [vmem:[#allocation2] sm:$0xf]  ;;  %v1045_v1 = vld [vmem:[#allocation2 + $0x8] sm:$0xf]  ;;  %v1137_v7 = vld [vmem:[#allocation2 + $0x10] sm:$0xf] }
 0x40f   : > { %v1091_v62 = vld [vmem:[#allocation2] sm:$0xf]  ;;  %v1047_v4 = vsel %vm1597_vm4, %v1045_v1, 0.0  ;;  %v1163_v8 = vld [vmem:[#allocation2 + $0x10] sm:$0xf] }
 0x410   : > { %1167 = vrot.lane.b32.xlu1 %v1161_v60, %s1464_s13  ;;  %v1181_v0 = vld [vmem:[#allocation2] sm:$0xf]  ;;  %1049 = vst [vmem:[#allocation3 + $0x38] sm:$0xf] %v1047_v4  ;;  %v1136_v10 = vld [vmem:[#allocation2 + $0x8] sm:$0xf] }
 0x411   : > { %1123 = vrot.lane.b32.xlu0 %v1117_v61, %s1466_s15  ;;  %v1044_v3 = vld [vmem:[#allocation2] sm:$0xf]  ;;  %v1187_v6 = vrot.slane %v1181_v0, 4  ;;  %v1093_v11 = vld [vmem:[#allocation2 + $0x10] sm:$0xf] }
 0x412   : > { %v1046_v5 = vsel %vm1612_vm5, %v1044_v3, 0.0  ;;  %v1162_v12 = vld [vmem:[#allocation2 + $0x8] sm:$0xf]  ;;  %v1119_v13 = vld [vmem:[#allocation2 + $0x10] sm:$0xf] }
 0x413   : > { %1048 = vst [vmem:[#allocation3] sm:$0xf] %v1046_v5  ;;  %v1092_v14 = vld [vmem:[#allocation2 + $0x8] sm:$0xf]  ;;  %v1073_v15 = vld [vmem:[#allocation2 + $0x10] sm:$0xf] }
 0x414   : > { %1097 = vrot.lane.b32.xlu1 %v1091_v62, %s1467_s16  ;;  %v1118_v16 = vld [vmem:[#allocation2 + $0x8] sm:$0xf]  ;;  %v1183_v19 = vld [vmem:[#allocation2 + $0x10] sm:$0xf]  ;;  %v1071_v25 = vld [vmem:[#allocation2] sm:$0xf] }
 0x415   : > { %1212 = vrot.lane.b32.xlu0 %v1204_v63, %s1462_s29  ;;  %v1203_v17 = vld [vmem:[#allocation2 + $0x8] sm:$0xf]  ;;  %v1189_v21 = vrot.slane %v1183_v19, 4  ;;  %v1052_v26 = vld [vmem:[#allocation2 + $0x10] sm:$0xf] }
 0x416   : > { %v1072_v18 = vld [vmem:[#allocation2 + $0x8] sm:$0xf]  ;;  %v1050_v27 = vld [vmem:[#allocation2] sm:$0xf]  ;;  %v1058_v28 = vrot.slane %v1052_v26, 4 }
 0x417   : > { %v1182_v20 = vld [vmem:[#allocation2 + $0x8] sm:$0xf]  ;;  %v1056_v29 = vrot.slane %v1050_v27, 4 }
 0x418   : > { %1145 = vrot.lane.b32.xlu1 %v1137_v7, %s1465_s14  ;;  %v1188_v22 = vrot.slane %v1182_v20, 4  ;;  %v1051_v23 = vld [vmem:[#allocation2 + $0x8] sm:$0xf] }
 0x419   : > { %1190 = vrot.lane.b32.xlu0 %v1187_v6, %s1463_s30  ;;  %v1057_v24 = vrot.slane %v1051_v23, 4 }
 0x41c   : > { %1171 = vrot.lane.b32.xlu1 %v1163_v8, %s1464_s13 }
 0x41d   : > { %1143 = vrot.lane.b32.xlu0 %v1136_v10, %s1465_s14  ;;  %s433_s14 = scalar_lea.vmem %s1827_s12, %s1410_s25 }
 0x420   : > { %1101 = vrot.lane.b32.xlu1 %v1093_v11, %s1467_s16 }
 0x421   : > { %1169 = vrot.lane.b32.xlu0 %v1162_v12, %s1464_s13 }
 0x424   : > { %1127 = vrot.lane.b32.xlu1 %v1119_v13, %s1466_s15 }
 0x425   : > { %1099 = vrot.lane.b32.xlu0 %v1092_v14, %s1467_s16 }
 0x428   : > { %1081 = vrot.lane.b32.xlu1 %v1073_v15, %s1468_s17 }
 0x429   : > { %1125 = vrot.lane.b32.xlu0 %v1118_v16, %s1466_s15 }
 0x42c   : > { %1210 = vrot.lane.b32.xlu1 %v1203_v17, %s1462_s29 }
 0x42d   : > { %1079 = vrot.lane.b32.xlu0 %v1072_v18, %s1468_s17 }
 0x430   : > { %1194 = vrot.lane.b32.xlu1 %v1189_v21, %s1463_s30 }
 0x431   : > { %1192 = vrot.lane.b32.xlu0 %v1188_v22, %s1463_s30 }
 0x434   : > { %1077 = vrot.lane.b32.xlu1 %v1071_v25, %s1468_s17 }
 0x435   : > { %1061 = vrot.lane.b32.xlu0 %v1057_v24, %s1469_s18 }
 0x438   : > { %1063 = vrot.lane.b32.xlu1 %v1058_v28, %s1469_s18 }
 0x439   : > { %1059 = vrot.lane.b32.xlu0 %v1056_v29, %s1469_s18 }
 0x43c   : > { %1235 = vperm.xlu1 %1436, %v1232_v30  }
 0x47e   : > { %v1209_v31 = vpop.permute.xlu1 %1208 }
 0x47f   : > { %v1142_v32 = vpop.permute.xlu0 %1141 }
 0x482   : > { %v1168_v33 = vpop.permute.xlu1 %1167 }
 0x483   : > { %v1124_v34 = vpop.permute.xlu0 %1123 }
 0x486   : > { %v1098_v35 = vpop.permute.xlu1 %1097 }
 0x487   : > { %v1213_v36 = vpop.permute.xlu0 %1212 }
 0x48a   : > { %v1146_v37 = vpop.permute.xlu1 %1145 }
 0x48b   : > { %v1191_v38 = vpop.permute.xlu0 %1190 }
 0x48e   : > { %v1172_v39 = vpop.permute.xlu1 %1171 }
 0x48f   : > { %v1144_v40 = vpop.permute.xlu0 %1143 }
 0x490   : > { %v1147_v41 = vsel %vm846_vm13, %v1142_v32, %v1144_v40  ;;  %v1148_v42 = vsel %vm846_vm13, %v1144_v40, %v1146_v37 }
 0x491   : > { %v1151_v43 = vsel %vm1670_vm10, %v1147_v41, 0.0  ;;  %v1152_v44 = vsel %vm1676_vm11, %v1148_v42, 0.0 }
 0x492   : > { %v1155_v45 = vrot.slane %v1151_v43, 4  ;;  %v1156_v46 = vrot.slane %v1152_v44, 4  ;;  %v1102_v47 = vpop.permute.xlu1 %1101 }
 0x493   : > { %v1170_v48 = vpop.permute.xlu0 %1169 }
 0x494   : > { %1159 = vst [vmem:[#allocation3 + $0x20] sm:$0xf0] %v1155_v45  ;;  %1160 = vst [vmem:[#allocation3 + $0x8] sm:$0xf0] %v1156_v46  ;;  %v1173_v49 = vsel %vm867_vm12, %v1168_v33, %v1170_v48  ;;  %v1174_v51 = vsel %vm867_vm12, %v1170_v48, %v1172_v39 }
 0x495   : > { %v1177_v52 = vsel %vm1612_vm5, %v1173_v49, 0.0  ;;  %v1178_v54 = vsel %vm1597_vm4, %v1174_v51, 0.0 }
 0x496   : > { %1179 = vst [vmem:[#allocation3 + $0x70] sm:$0xf] %v1177_v52  ;;  %1180 = vst [vmem:[#allocation3 + $0x80] sm:$0xf] %v1178_v54  ;;  %v1128_v53 = vpop.permute.xlu1 %1127 }
 0x497   : > { %v1100_v57 = vpop.permute.xlu0 %1099 }
 0x498   : > { %v1103_v56 = vsel %vm806_vm15, %v1098_v35, %v1100_v57  ;;  %v1104_v58 = vsel %vm806_vm15, %v1100_v57, %v1102_v47 }
 0x499   : > { %v1107_v59 = vsel %vm1612_vm5, %v1103_v56, 0.0  ;;  %v1108_v60 = vsel %vm1597_vm4, %v1104_v58, 0.0  ;;  %vm1238_vm4 = vcmask 293888  }
 0x49a   : > { %v1111_v61 = vrot.slane %v1107_v59, 4  ;;  %v1112_v62 = vrot.slane %v1108_v60, 4  ;;  %v1082_v63 = vpop.permute.xlu1 %1081 }
 0x49b   : > { %v1126_v0 = vpop.permute.xlu0 %1125 }
 0x49c   : > { %1115 = vst [vmem:[#allocation3 + $0x78] sm:$0xf0] %v1111_v61  ;;  %1116 = vst [vmem:[#allocation3 + $0x58] sm:$0xf0] %v1112_v62  ;;  %v1129_v1 = vsel %vm827_vm14, %v1124_v34, %v1126_v0  ;;  %v1130_v3 = vsel %vm827_vm14, %v1126_v0, %v1128_v53 }
 0x49d   : > { %1133 = vst [vmem:[#allocation3 + $0x20] sm:$0xf] %v1129_v1  ;;  %1134 = vst [vmem:[#allocation3 + $0x8] sm:$0xf] %v1130_v3 }
 0x49e   : > { %v1211_v4 = vpop.permute.xlu1 %1210 }
 0x49f   : > { %v1080_v5 = vpop.permute.xlu0 %1079  ;;  %v1214_v55 = vsel %vm907_vm8, %v1209_v31, %v1211_v4  ;;  %v1215_v6 = vsel %vm907_vm8, %v1211_v4, %v1213_v36  ;;  %v1025_v31 = vld [vmem:[%s1825_s10] sm:$0xff] }
 0x4a0   : > { %v1084_v50 = vsel %vm785_vm0, %v1080_v5, %v1082_v63  ;;  %v1218_v7 = vsel %vm1670_vm10, %v1214_v55, 0.0  ;;  %v1219_v8 = vsel %vm1676_vm11, %v1215_v6, 0.0 }
 0x4a1   : > { %v1088_v10 = vsel %vm1676_vm11, %v1084_v50, 0.0  ;;  %1220 = vst [vmem:[#allocation3 + $0x88] sm:$0xf] %v1218_v7  ;;  %1221 = vst [vmem:[#allocation3 + $0x40] sm:$0xf] %v1219_v8 }
 0x4a2   : > { %1090 = vst [vmem:[#allocation3 + $0x58] sm:$0xf] %v1088_v10  ;;  %v1195_v11 = vpop.permute.xlu1 %1194 }
 0x4a3   : > { %v1193_v12 = vpop.permute.xlu0 %1192 }
 0x4a4   : > { %v1196_v13 = vsel %vm888_vm9, %v1191_v38, %v1193_v12  ;;  %v1197_v14 = vsel %vm888_vm9, %v1193_v12, %v1195_v11  ;;  %v1227_v9 = vld [vmem:[#allocation3 + $0x8] sm:$0xff]  ;;  %v1226_v26 = vld [vmem:[#allocation3 + $0x20] sm:$0xff] }
 0x4a5   : > { %1200 = vst [vmem:[#allocation3 + $0x70] sm:$0xf0] %v1196_v13  ;;  %1201 = vst [vmem:[#allocation3 + $0x80] sm:$0xf0] %v1197_v14 }
 0x4a6   : > { %v1078_v15 = vpop.permute.xlu1 %1077 }
 0x4a7   : > { %v1062_v16 = vpop.permute.xlu0 %1061  ;;  %v1083_v17 = vsel %vm785_vm0, %v1078_v15, %v1080_v5 }
 0x4a8   : > { %v1087_v2 = vsel %vm1670_vm10, %v1083_v17, 0.0  ;;  %v1231_v18 = vld [vmem:[#allocation3 + $0x40] sm:$0xf]  ;;  %v1230_v19 = vld [vmem:[#allocation3 + $0x88] sm:$0xf] }
 0x4a9   : > { %1089 = vst [vmem:[#allocation3 + $0x78] sm:$0xf] %v1087_v2  ;;  %1404 = vmatprep.subr.msk.mxu0 %vm1242_vm1, %v1231_v18  ;;  %v1225_v27 = vld [vmem:[#allocation3 + $0x58] sm:$0xff] }
 0x4aa   : > { %v1064_v20 = vpop.permute.xlu1 %1063  ;;  %1405 = vmatpush1.msk.msra.mxu0 %vm1242_vm1, %v1230_v19 }
 0x4ab   : > { %v1060_v21 = vpop.permute.xlu0 %1059  ;;  %v1066_v22 = vsel %vm762_vm2, %v1062_v16, %v1064_v20 }
 0x4ac   : > { %v1065_v23 = vsel %vm762_vm2, %v1060_v21, %v1062_v16  ;;  %v1229_v24 = vld [vmem:[#allocation3 + $0x80] sm:$0xff]  ;;  %v1228_v25 = vld [vmem:[#allocation3 + $0x70] sm:$0xff]  ;;  %1070 = vst [vmem:[#allocation3 + $0x38] sm:$0xf0] %v1066_v22 }
 0x4ad   : > { %1069 = vst [vmem:[#allocation3] sm:$0xf0] %v1065_v23  ;;  %1273 = vmatprep.subr.mxu0 %v1229_v24 }
 0x4ae   : > { %1274 = vmatpush1.msra.mxu0 %v1228_v25 }
 0x4af   : > { %1275 = vmatprep.subr.mxu0 %v1227_v9 }
 0x4b0   : > { %1276 = vmatpush1.msra.mxu0 %v1226_v26  ;;  %v1224_v28 = vld [vmem:[#allocation3 + $0x78] sm:$0xff] }
 0x4b1   : > { %1277 = vmatprep.subr.mxu0 %v1225_v27 }
 0x4b2   : > { %1278 = vmatpush1.msra.mxu0 %v1224_v28 }
 0x4b3   : > { %v1223_v29 = vld [vmem:[#allocation3 + $0x38] sm:$0xff] }
 0x4b4   : > { %v1222_v30 = vld [vmem:[#allocation3] sm:$0xff]  ;;  %1279 = vmatprep.subr.mxu0 %v1223_v29 }
 0x4b5   : > { %1280 = vmatpush1.msra.mxu0 %v1222_v30 }
 0x4b6   : > { %1406 = vmatmul.mubr.msk.f32.vlgmr.msra.gmra.mxu0 %vm1238_vm4, %v1025_v31 }
 0x4b7   : > { %v1236_v32 = vpop.permute.xlu1 %1235 }
 0x576   : > { %v1315_v33 = vpop.f32.mrf.mxu0 }
 0x577   : > { %v1316_v34 = vadd.f32 %v1315_v33, %v1236_v32 }
 0x578   : > { %v1317_v35 = vpop.f32.mrf.mxu0 }
 0x579   : > { %1320 = vst [vmem:[%s433_s14] sm:$0xff] %v1316_v34  ;;  %v1318_v36 = vadd.f32 %v1317_v35, %v1236_v32 }
 0x57b   : > { %1321 = vst [vmem:[%s433_s14 + $0x8] sm:$0xff] %v1318_v36 }
 0x57c PF: > { %s22_s21 = sadd.s32 1, %s1456_s21  }
 0x57d   : > { %p19_p4 = scmp.ge.s32.totalorder %s22_s21, 4  }
 0x57f   :  { %21 = sbr.rel (!%p19_p4) target bundleno = 1 (0x1), region = 101 }

// kernel: pyramid_forward.8
= control target key start
LH: loop header
LB: loop body
LE: loop exit
PB: predicated region body
PF: predicated region fallthrough
CT: control target
= control target key end

     0   :  { %s1280_s21 = smov 0   ;;  %s1438_s0 = inlined_call_operand.vmem [shape: f32[2,4,64], index: 0, kind: input, shape index: {}]   ;;  %s1439_s1 = inlined_call_operand.vmem [shape: f32[2,4,64], index: 1, kind: input, shape index: {}]   ;;  %s1440_s2 = inlined_call_operand.vmem [shape: f32[4,4], index: 2, kind: input, shape index: {}]   ;;  %s1441_s3 = inlined_call_operand.vmem [shape: f32[4,2], index: 3, kind: input, shape index: {}]   ;;  %s1442_s4 = inlined_call_operand.vmem [shape: f32[4,4], index: 4, kind: input, shape index: {}]   ;;  %s1443_s5 = inlined_call_operand.vmem [shape: f32[4,4], index: 5, kind: input, shape index: {}]   ;;  %s1444_s6 = inlined_call_operand.vmem [shape: f32[4,2], index: 6, kind: input, shape index: {}]   ;;  %s1445_s7 = inlined_call_operand.vmem [shape: f32[4,2], index: 7, kind: input, shape index: {}]   ;;  %s1446_s8 = inlined_call_operand.vmem [shape: f32[2,36], index: 8, kind: input, shape index: {}]   ;;  %s1447_s9 = inlined_call_operand.vmem [shape: f32[2,2], index: 9, kind: input, shape index: {}]   ;;  %s1448_s10 = inlined_call_operand.vmem [shape: f32[4,18], index: 10, kind: input, shape index: {}]   ;;  %s1449_s11 = inlined_call_operand.vmem [shape: f32[4,1], index: 11, kind: input, shape index: {}]   ;;  %s1450_s12 = inlined_call_operand.vmem [shape: f32[2,4,64], index: 12, kind: output, shape index: {}]  }
   0x1 LB: > { %s1093_s22 = sadd.s32 4294967295, %s1200_s21   ;;  %p1097_p0 = scmp.ge.s32.totalorder %s1200_s21, 1  ;;  %s1200_s21 = sphi %s1280_s21, %s22_s21  }
   0x2   : > { %p370_p1 = scmp.lt.s32.totalorder %s1200_s21, 3 }
   0x4   : > { %p371_p2 = pnand %p1097_p0, %p370_p1 }
   0x5   : > { %p414_p3 = scmp.lt.s32.totalorder (!%p371_p2), %s1093_s22, 1  ;;  %s1206_s26 = smov (!%p371_p2), 9  }
   0x6   : > { %374 = sbr.rel (%p371_p2) target bundleno = 1340 (0x53c), region = 68  ;;  %s1207_s27 = smov (!%p371_p2), 110  }
   0x7   : > { %s1209_s29 = smov (!%p371_p2), 111   ;;  %s1210_s30 = smov (!%p371_p2), 118  }
   0x8   : > { %s1211_s13 = smov (!%p371_p2), 119   ;;  %s1212_s14 = smov (!%p371_p2), 126  }
   0x9   : > { %s1213_s15 = smov (!%p371_p2), 120   ;;  %s1214_s16 = smov (!%p371_p2), 127  }
   0xb   : > { %v1202_v0 = vmov 0.0   ;;  %vm1203_vm0 = vmmov 0   ;;  %v512_v1 = vld [vmem:[%s1441_s3] sm:$0xf]  ;;  %s1456_s22 = smov (!%p414_p3, %s1093_s22), 1  ;;  %v1204_v2 = vmov 0   ;;  %v426_v33 = vlaneseq }
   0xc   : > { %1129 = vmatprep.subr.mxu0 %v1202_v0  ;;  %1131 = vmatprep.mubr.msk.f32.mxu0 %vm1203_vm0, %v1202_v0  ;;  %s1297_s25 = sshll.u32 %s1456_s22, 2  ;;  %vm438_vm1 = vcmask 1043456   ;;  %v432_v3 = vld [vmem:[%s1440_s2] sm:$0xf]  ;;  %vm434_vm2 = vcmask 31744   ;;  %v1205_v5 = vmov 1  }
   0xd   : > { %1187 = vset.pattern.permute.xlu0 %v1204_v2  ;;  %1134 = vmatprep.subr.mxu1 %v1202_v0  ;;  %s421_s28 = scalar_lea.vmem %s1439_s1, %s1297_s25  ;;  %v692_v6 = vld [vmem:[%s1445_s7] sm:$0xf]  ;;  %s417_s17 = scalar_lea.vmem %s1438_s0, %s1297_s25  ;;  %vm706_vm3 = vcmask 68608   ;;  %vm708_vm4 = vcmask 667208   ;;  %vm714_vm5 = vcmask 592968   ;;  %v427_v34 = vand.u32 127, %v426_v33 }
   0xe   : > { %515 = vperm.xlu0 %1187, %v512_v1   ;;  %1136 = vmatprep.mubr.msk.f32.mxu1 %vm1203_vm0, %v1202_v0  ;;  %v433_v4 = vld [vmem:[%s421_s28] sm:$0xf]  ;;  %707 = vst.msk [vmem:[#allocation2] sm:$0xf] %vm706_vm3, %v1202_v0  ;;  %vm720_vm6 = vcmask 519168   ;;  %vm873_vm8 = vcmask 66560  }
   0xf   : > { %1189 = vset.pattern.permute.xlu1 %v1204_v2  ;;  %1130 = vmatpush3.msk.msra.mxu0 %vm438_vm1, %v433_v4  ;;  %v431_v7 = vld [vmem:[%s417_s17] sm:$0xf]  ;;  %709 = vst.msk [vmem:[#allocation2] sm:$0xf] %vm708_vm4, %v1202_v0  ;;  %v428_v36 = vand.u32 7, %v427_v34  ;;  %vm875_vm9 = vcmask 665160  }
  0x10   : > { %1132 = vmatmul.mubr.msk.f32.vlgmr.msra.gmra.mxu0 %vm434_vm2, %v432_v3  ;;  %1139 = vmatprep.subr.mxu0 %v1202_v0  ;;  %v525_v8 = vld [vmem:[%s1442_s4] sm:$0xf]  ;;  %s1208_s28 = smov 112   ;;  %vm782_vm11 = vcmask 293888   ;;  %vm881_vm12 = vcmask 590920   ;;  %vm885_vm13 = vcmask 517120  }
  0x11   : > { %1141 = vmatprep.mubr.msk.f32.mxu0 %vm1203_vm0, %v1202_v0  ;;  %1140 = vmatpush3.msk.msra.mxu0 %vm438_vm1, %v431_v7  ;;  %v679_v9 = vld [vmem:[%s1444_s6] sm:$0xf]  ;;  %vm1340_vm7 = vcmp.ge.s32.totalorder %v428_v36, 1  ;;  %vm1362_vm10 = vcmp.le.s32.totalorder %v428_v36, 6  ;;  %vm953_vm14 = vcmask 1041408   ;;  %vm949_vm15 = vcmask 146432  }
  0x12   : > { %1188 = vset.pattern.permute.xlu0 %v1205_v5  ;;  %1157 = vmatprep.subr.mxu0 %v1202_v0  ;;  %v526_v17 = vld [vmem:[%s1443_s5] sm:$0xf] }
  0x13   : > { %520 = vperm.xlu0 %1188, %v512_v1   ;;  %682 = vperm.xlu1 %1189, %v679_v9   ;;  %v859_v48 = vld [vmem:[%s1447_s9] sm:$0x3] }
  0x14   : > { %1142 = vmatmul.mubr.msk.f32.vlgmr.msra.gmra.mxu0 %vm434_vm2, %v525_v8  ;;  %v705_v4 = vld [vmem:[%s1446_s8] sm:$0x3] }
  0x15   : > { %1163 = vmatprep.mubr.msk.f32.mxu0 %vm1203_vm0, %v1202_v0 }
  0x17   : > { %700 = vperm.xlu0 %1188, %v692_v6   ;;  %1190 = vset.pattern.permute.xlu1 %v1205_v5 }
  0x18   : > { %687 = vperm.xlu1 %1190, %v679_v9  }
  0x1b   : > { %1192 = vset.pattern.permute.xlu0 %v1204_v2 }
  0x1c   : > { %1191 = vset.pattern.permute.xlu1 %v1204_v2 }
  0x1d   : > { %695 = vperm.xlu1 %1191, %v692_v6  }
  0x21   : > { %1193 = vset.pattern.permute.xlu1 %v1205_v5 }
  0x89   : > { %v516_v10 = vpop.permute.xlu0 %515 }
  0x8e   : > { %v521_v13 = vpop.permute.xlu0 %520  ;;  %v683_v20 = vpop.permute.xlu1 %682 }
  0x92   : > { %v701_v30 = vpop.permute.xlu0 %700 }
  0x93   : > { %v688_v22 = vpop.permute.xlu1 %687 }
  0x98   : > { %v696_v27 = vpop.permute.xlu1 %695 }
  0xd0   : > { %v508_v11 = vpop.f32.mrf.mxu0 }
  0xd1   : > { %v518_v12 = vmul.f32 %v516_v10, %v508_v11 }
  0xd2   : > { %v1133_v14 = vpop.f32.mrf.mxu0 }
  0xd3   : > { %v523_v15 = vadd.f32 %v521_v13, %v518_v12 }
  0xd4   : > { %v675_v18 = vpop.f32.mrf.mxu0 }
  0xd5   : > { %v524_v16 = vmax.f32 %v523_v15, 0.0 }
  0xd6   : > { %v1143_v19 = vpop.f32.mrf.mxu0 }
  0xd7   : > { %1135 = vmatpush3.msk.msra.mxu1 %vm438_vm1, %v524_v16 }
  0xd8   : > { %1137 = vmatmul.mubr.msk.f32.vlgmr.msra.gmra.mxu1 %vm434_vm2, %v526_v17  ;;  %1144 = vmatprep.subr.mxu1 %v1202_v0 }
  0xd9   : > { %1154 = vmatprep.mubr.msk.f32.mxu1 %vm1203_vm0, %v1202_v0 }
 0x198   : > { %v599_v21 = vpop.f32.mrf.mxu1 }
 0x199   : > { %v676_v23 = vadd.f32 %v675_v18, %v599_v21 }
 0x19a   : > { %v1138_v24 = vpop.f32.mrf.mxu1 }
 0x19b   : > { %v685_v25 = vmul.f32 %v683_v20, %v676_v23  ;;  %v943_v24 = vld [vmem:[%s1449_s11] sm:$0xf] }
 0x19d   : > { %v690_v26 = vadd.f32 %v688_v22, %v685_v25 }
 0x19f   : > { %v691_v28 = vmax.f32 %v690_v26, 0.0 }
 0x1a1   : > { %v698_v29 = vmul.f32 %v696_v27, %v691_v28 }
 0x1a3   : > { %v703_v31 = vadd.f32 %v701_v30, %v698_v29 }
 0x1a5   : > { %v704_v32 = vmax.f32 %v703_v31, 0.0 }
 0x1a7   : > { %711 = vrot.lane.b32.xlu1 %v704_v32, %s1206_s26 }
 0x219   : > { %v712_v35 = vpop.permute.xlu1 %711 }
 0x21a   : > { %715 = vst.msk [vmem:[#allocation2] sm:$0xf] %vm714_vm5, %v712_v35 }
 0x221   : > { %v770_v38 = vld [vmem:[#allocation2] sm:$0xf] }
 0x222   : > { %v757_v39 = vld [vmem:[#allocation2] sm:$0xf]  ;;  %772 = vrot.lane.b32.xlu0 %v770_v38, %s1207_s27 }
 0x223   : > { %v764_v40 = vld [vmem:[#allocation2] sm:$0xf]  ;;  %759 = vrot.lane.b32.xlu1 %v757_v39, %s1208_s28 }
 0x224   : > { %v750_v41 = vld [vmem:[#allocation2] sm:$0xf] }
 0x225   : > { %v744_v42 = vld [vmem:[#allocation2] sm:$0xf] }
 0x226   : > { %v728_v43 = vld [vmem:[#allocation2] sm:$0xf]  ;;  %766 = vrot.lane.b32.xlu0 %v764_v40, %s1209_s29 }
 0x227   : > { %v737_v44 = vld [vmem:[#allocation2] sm:$0xf]  ;;  %752 = vrot.lane.b32.xlu1 %v750_v41, %s1210_s30 }
 0x228   : > { %v722_v45 = vld [vmem:[#allocation2] sm:$0xf] }
 0x229   : > { %v716_v46 = vld [vmem:[#allocation2] sm:$0xf] }
 0x22a   : > { %v719_v47 = vsel %vm1340_vm7, %v716_v46, 0.0  ;;  %874 = vst.msk [vmem:[#allocation2] sm:$0x3] %vm873_vm8, %v1202_v0  ;;  %746 = vrot.lane.b32.xlu0 %v744_v42, %s1211_s13  ;;  %v872_v41 = vld [vmem:[%s1448_s10] sm:$0xf] }
 0x22b   : > { %721 = vst.msk [vmem:[#allocation3] sm:$0xf] %vm720_vm6, %v719_v47  ;;  %732 = vrot.lane.b32.xlu1 %v728_v43, %s1212_s14 }
 0x22c   : > { %876 = vst.msk [vmem:[#allocation2] sm:$0x3] %vm875_vm9, %v1202_v0 }
 0x22e   : > { %739 = vrot.lane.b32.xlu0 %v737_v44, %s1213_s15 }
 0x22f   : > { %724 = vrot.lane.b32.xlu1 %v722_v45, %s1214_s16 }
 0x232   : > { %862 = vperm.xlu0 %1192, %v859_v48  }
 0x233   : > { %867 = vperm.xlu1 %1193, %v859_v48  }
 0x294   : > { %v773_v50 = vpop.permute.xlu0 %772 }
 0x295   : > { %v760_v51 = vpop.permute.xlu1 %759  ;;  %v775_v52 = vsel %vm1362_vm10, %v773_v50, 0.0 }
 0x296   : > { %v762_v53 = vsel %vm1340_vm7, %v760_v51, 0.0  ;;  %776 = vst.msk [vmem:[#allocation3 + $0x20] sm:$0xf] %vm720_vm6, %v775_v52 }
 0x297   : > { %763 = vst.msk [vmem:[#allocation3 + $0x18] sm:$0xf] %vm720_vm6, %v762_v53 }
 0x298   : > { %v767_v54 = vpop.permute.xlu0 %766 }
 0x299   : > { %v753_v55 = vpop.permute.xlu1 %752  ;;  %769 = vst.msk [vmem:[#allocation3 + $0x1c] sm:$0xf] %vm720_vm6, %v767_v54 }
 0x29a   : > { %v755_v56 = vsel %vm1362_vm10, %v753_v55, 0.0 }
 0x29b   : > { %756 = vst.msk [vmem:[#allocation3 + $0x14] sm:$0xf] %vm720_vm6, %v755_v56 }
 0x29c   : > { %v747_v57 = vpop.permute.xlu0 %746 }
 0x29d   : > { %v733_v58 = vpop.permute.xlu1 %732  ;;  %749 = vst.msk [vmem:[#allocation3 + $0x10] sm:$0xf] %vm720_vm6, %v747_v57  ;;  %v781_v60 = vld [vmem:[#allocation3 + $0x20] sm:$0xf] }
 0x29e   : > { %v735_v59 = vsel %vm1362_vm10, %v733_v58, 0.0  ;;  %1145 = vmatpush3.msk.msra.mxu1 %vm438_vm1, %v781_v60 }
 0x29f   : > { %736 = vst.msk [vmem:[#allocation3 + $0x8] sm:$0xf] %vm720_vm6, %v735_v59  ;;  %1146 = vmatprep.subr.mxu1 %v1202_v0 }
 0x2a0   : > { %v740_v61 = vpop.permute.xlu0 %739  ;;  %v780_v63 = vld [vmem:[#allocation3 + $0x18] sm:$0xff] }
 0x2a1   : > { %v725_v62 = vpop.permute.xlu1 %724  ;;  %v742_v1 = vsel %vm1340_vm7, %v740_v61, 0.0  ;;  %1147 = vmatpush3.msra.mxu1 %v780_v63 }
 0x2a2   : > { %727 = vst.msk [vmem:[#allocation3 + $0x4] sm:$0xf] %vm720_vm6, %v725_v62  ;;  %743 = vst.msk [vmem:[#allocation3 + $0xc] sm:$0xf] %vm720_vm6, %v742_v1  ;;  %1148 = vmatprep.subr.mxu1 %v1202_v0 }
 0x2a4   : > { %v779_v2 = vld [vmem:[#allocation3 + $0x10] sm:$0xff] }
 0x2a5   : > { %1149 = vmatpush3.msra.mxu1 %v779_v2 }
 0x2a6   : > { %1150 = vmatprep.subr.mxu1 %v1202_v0 }
 0x2a9   : > { %v778_v3 = vld [vmem:[#allocation3 + $0x8] sm:$0xff]  ;;  %v777_v5 = vld [vmem:[#allocation3] sm:$0xff] }
 0x2aa   : > { %1151 = vmatpush3.msra.mxu1 %v778_v3 }
 0x2ab   : > { %1152 = vmatprep.subr.mxu1 %v1202_v0 }
 0x2ac   : > { %1153 = vmatpush3.msra.mxu1 %v777_v5 }
 0x2ad   : > { %1155 = vmatmul.mubr.msk.f32.vlgmr.msra.gmra.mxu1 %vm782_vm11, %v705_v4  ;;  %v863_v6 = vpop.permute.xlu0 %862 }
 0x2ae   : > { %v868_v8 = vpop.permute.xlu1 %867 }
 0x36d   : > { %v855_v7 = vpop.f32.mrf.mxu1 }
 0x36e   : > { %v865_v9 = vmul.f32 %v863_v6, %v855_v7 }
 0x36f   : > { %v1156_v10 = vpop.f32.mrf.mxu1 }
 0x370   : > { %v870_v11 = vadd.f32 %v868_v8, %v865_v9 }
 0x372   : > { %v871_v12 = vmax.f32 %v870_v11, 0.0 }
 0x374   : > { %878 = vrot.lane.b32.xlu1 %v871_v12, %s1206_s26 }
 0x3e6   : > { %v879_v13 = vpop.permute.xlu1 %878 }
 0x3e7   : > { %882 = vst.msk [vmem:[#allocation2] sm:$0x3] %vm881_vm12, %v879_v13 }
 0x3ee   : > { %v933_v14 = vld [vmem:[#allocation2] sm:$0x3] }
 0x3ef   : > { %v913_v15 = vld [vmem:[#allocation2] sm:$0x3]  ;;  %935 = vrot.lane.b32.xlu0 %v933_v14, %s1207_s27 }
 0x3f0   : > { %915 = vrot.lane.b32.xlu1 %v913_v15, %s1210_s30  ;;  %v883_v16 = vld [vmem:[#allocation2] sm:$0x3] }
 0x3f1   : > { %v884_v17 = vsel %vm1340_vm7, %v883_v16, 0.0  ;;  %v920_v18 = vld [vmem:[#allocation2] sm:$0x3] }
 0x3f2   : > { %v907_v19 = vld [vmem:[#allocation2] sm:$0x3]  ;;  %886 = vst.msk [vmem:[#allocation3] sm:$0x3] %vm885_vm13, %v884_v17 }
 0x3f3   : > { %922 = vrot.lane.b32.xlu0 %v920_v18, %s1208_s28  ;;  %v927_v20 = vld [vmem:[#allocation2] sm:$0x3] }
 0x3f4   : > { %909 = vrot.lane.b32.xlu1 %v907_v19, %s1211_s13  ;;  %v893_v21 = vld [vmem:[#allocation2] sm:$0x3] }
 0x3f5   : > { %v900_v22 = vld [vmem:[#allocation2] sm:$0x3] }
 0x3f6   : > { %v887_v23 = vld [vmem:[#allocation2] sm:$0x3] }
 0x3f7   : > { %929 = vrot.lane.b32.xlu0 %v927_v20, %s1209_s29  ;;  %s425_s29 = scalar_lea.vmem %s1450_s12, %s1297_s25 }
 0x3f8   : > { %895 = vrot.lane.b32.xlu1 %v893_v21, %s1212_s14 }
 0x3fb   : > { %902 = vrot.lane.b32.xlu0 %v900_v22, %s1213_s15 }
 0x3fc   : > { %889 = vrot.lane.b32.xlu1 %v887_v23, %s1214_s16 }
 0x3ff   : > { %946 = vperm.xlu0 %1192, %v943_v24  }
 0x461   : > { %v936_v25 = vpop.permute.xlu0 %935 }
 0x462   : > { %v916_v26 = vpop.permute.xlu1 %915  ;;  %v938_v27 = vsel %vm1362_vm10, %v936_v25, 0.0 }
 0x463   : > { %v918_v28 = vsel %vm1362_vm10, %v916_v26, 0.0  ;;  %939 = vst.msk [vmem:[#allocation3 + $0x10] sm:$0x3] %vm885_vm13, %v938_v27 }
 0x464   : > { %919 = vst.msk [vmem:[#allocation3 + $0xa] sm:$0x3] %vm885_vm13, %v918_v28 }
 0x465   : > { %v923_v29 = vpop.permute.xlu0 %922 }
 0x466   : > { %v910_v30 = vpop.permute.xlu1 %909  ;;  %v925_v31 = vsel %vm1340_vm7, %v923_v29, 0.0 }
 0x467   : > { %912 = vst.msk [vmem:[#allocation3 + $0x8] sm:$0x3] %vm885_vm13, %v910_v30  ;;  %926 = vst.msk [vmem:[#allocation3 + $0xc] sm:$0x3] %vm885_vm13, %v925_v31 }
 0x469   : > { %v930_v32 = vpop.permute.xlu0 %929 }
 0x46a   : > { %v896_v33 = vpop.permute.xlu1 %895  ;;  %932 = vst.msk [vmem:[#allocation3 + $0xe] sm:$0x3] %vm885_vm13, %v930_v32  ;;  %v942_v35 = vld [vmem:[#allocation3 + $0x10] sm:$0x3] }
 0x46b   : > { %v898_v34 = vsel %vm1362_vm10, %v896_v33, 0.0  ;;  %1158 = vmatpush3.msk.msra.mxu0 %vm953_vm14, %v942_v35 }
 0x46c   : > { %899 = vst.msk [vmem:[#allocation3 + $0x4] sm:$0x3] %vm885_vm13, %v898_v34  ;;  %1159 = vmatprep.subr.mxu0 %v1202_v0 }
 0x46d   : > { %v903_v36 = vpop.permute.xlu0 %902 }
 0x46e   : > { %v890_v38 = vpop.permute.xlu1 %889  ;;  %v905_v39 = vsel %vm1340_vm7, %v903_v36, 0.0 }
 0x46f   : > { %892 = vst.msk [vmem:[#allocation3 + $0x2] sm:$0x3] %vm885_vm13, %v890_v38  ;;  %906 = vst.msk [vmem:[#allocation3 + $0x6] sm:$0x3] %vm885_vm13, %v905_v39 }
 0x471   : > { %v941_v40 = vld [vmem:[#allocation3 + $0x8] sm:$0xff] }
 0x472   : > { %1160 = vmatpush3.msra.mxu0 %v941_v40 }
 0x473   : > { %1161 = vmatprep.subr.mxu0 %v1202_v0 }
 0x476   : > { %v940_v42 = vld [vmem:[#allocation3] sm:$0xff] }
 0x477   : > { %1162 = vmatpush3.msra.mxu0 %v940_v42 }
 0x478   : > { %1164 = vmatmul.mubr.msk.f32.vlgmr.msra.gmra.mxu0 %vm949_vm15, %v872_v41 }
 0x47a   : > { %v947_v37 = vpop.permute.xlu0 %946 }
 0x538   : > { %v1023_v43 = vpop.f32.mrf.mxu0 }
 0x539   : > { %v1024_v44 = vadd.f32 %v1023_v43, %v947_v37 }
 0x53a   : > { %v1165_v45 = vpop.f32.mrf.mxu0 }
 0x53b   : > { %1027 = vst.msk [vmem:[%s425_s29] sm:$0xf] %vm720_vm6, %v1024_v44 }
 0x53c PF: > { %s22_s21 = sadd.s32 1, %s1200_s21  }
 0x53d   : > { %p19_p4 = scmp.ge.s32.totalorder %s22_s21, 4  }
 0x53f   :  { %21 = sbr.rel (!%p19_p4) target bundleno = 1 (0x1), region = 101 }

// kernel: pyramid_forward.7
= control target key start
LH: loop header
LB: loop body
LE: loop exit
PB: predicated region body
PF: predicated region fallthrough
CT: control target
= control target key end

     0   :  { %s3909_s21 = smov 0   ;;  %s4979_s0 = inlined_call_operand.vmem [shape: f32[2,4,1024], index: 0, kind: input, shape index: {}]   ;;  %s4980_s1 = inlined_call_operand.vmem [shape: f32[2,6,1024], index: 1, kind: input, shape index: {}]   ;;  %s4981_s2 = inlined_call_operand.vmem [shape: f32[4,6], index: 2, kind: input, shape index: {}]   ;;  %s4982_s3 = inlined_call_operand.vmem [shape: f32[4,2], index: 3, kind: input, shape index: {}]   ;;  %s4983_s4 = inlined_call_operand.vmem [shape: f32[4,4], index: 4, kind: input, shape index: {}]   ;;  %s4984_s5 = inlined_call_operand.vmem [shape: f32[4,4], index: 5, kind: input, shape index: {}]   ;;  %s4985_s6 = inlined_call_operand.vmem [shape: f32[4,2], index: 6, kind: input, shape index: {}]   ;;  %s4986_s7 = inlined_call_operand.vmem [shape: f32[4,2], index: 7, kind: input, shape index: {}]   ;;  %s4987_s8 = inlined_call_operand.vmem [shape: f32[2,36], index: 8, kind: input, shape index: {}]   ;;  %s4988_s9 = inlined_call_operand.vmem [shape: f32[2,2], index: 9, kind: input, shape index: {}]   ;;  %s4989_s10 = inlined_call_operand.vmem [shape: f32[4,18], index: 10, kind: input, shape index: {}]   ;;  %s4990_s11 = inlined_call_operand.vmem [shape: f32[4,1], index: 11, kind: input, shape index: {}]   ;;  %s4991_s12 = inlined_call_operand.vmem [shape: f32[2,4,1024], index: 12, kind: output, shape index: {}]  }
   0x1 LB: > { %s3680_s22 = sadd.s32 4294967295, %s3830_s21   ;;  %p3684_p0 = scmp.ge.s32.totalorder %s3830_s21, 1  ;;  %s3830_s21 = sphi %s3909_s21, %s22_s21  }
   0x2   : > { %p372_p1 = scmp.lt.s32.totalorder %s3830_s21, 3 }
   0x4   : > { %p373_p2 = pnand %p3684_p0, %p372_p1 }
   0x5   : > { %p419_p3 = scmp.lt.s32.totalorder (!%p373_p2), %s3680_s22, 1  ;;  %s3835_s27 = smov (!%p373_p2), 33  }
   0x6   : > { %376 = sbr.rel (%p373_p2) target bundleno = 1585 (0x631), region = 68  ;;  %s3837_s29 = smov (!%p373_p2), 94  }
   0x7   : > { %s3838_s30 = smov (!%p373_p2), 64   ;;  %s3839_s13 = smov (!%p373_p2), 63  }
   0x8   : > { %s3840_s14 = smov (!%p373_p2), 95   ;;  %s3841_s15 = smov (!%p373_p2), 96  }
   0x9   : > { %s3842_s16 = smov (!%p373_p2), 126   ;;  %s3843_s18 = smov (!%p373_p2), 127  }
   0xb   : > { %v3832_v0 = vmov 0.0   ;;  %v793_v1 = vld [vmem:[%s4982_s3] sm:$0xf]  ;;  %s5173_s22 = smov (!%p419_p3, %s3680_s22), 1  ;;  %v3833_v2 = vmov 0   ;;  %vm484_vm0 = vcmask 1045504  }
   0xc   : > { %573 = vmatprep.mubr.f32.mxu0 %v3832_v0  ;;  %644 = vmatprep.mubr.f32.mxu1 %v3832_v0  ;;  %s3754_s25 = sshll.u32 %s5173_s22, 6  ;;  %v471_v3 = vld [vmem:[%s4981_s2] sm:$0xf]  ;;  %vm480_vm1 = vcmask 48128   ;;  %v3834_v12 = vmov 1   ;;  %s3753_s17 = sshll.u32 %s5173_s22, 5 }
   0xd   : > { %3776 = vset.pattern.permute.xlu0 %v3833_v2  ;;  %3778 = vset.pattern.permute.xlu1 %v3833_v2  ;;  %s428_s28 = scalar_lea.vmem %s4980_s1, %s3754_s25  ;;  %v1487_v13 = vld [vmem:[%s4986_s7] sm:$0xf]  ;;  %vm4999_vm2 = vcmask 1043456   ;;  %vm829_vm3 = vcmask 31744   ;;  %s3962_s20 = scalar_lea.vmem %s4979_s0, %s3753_s17  ;;  %vm1522_vm4 = vcmask 265216   ;;  %vm1524_vm5 = vcmask 535816  }
   0xe   : > { %796 = vperm.xlu0 %3776, %v793_v1   ;;  %v473_v4 = vld [vmem:[%s428_s28 + $0x8] sm:$0x3f]  ;;  %v475_v5 = vld [vmem:[%s428_s28 + $0x18] sm:$0x3f]  ;;  %v472_v6 = vld [vmem:[%s428_s28] sm:$0x3f] }
   0xf   : > { %3691 = vmatprep.subr.msk.mxu0 %vm484_vm0, %v473_v4  ;;  %3694 = vmatprep.subr.msk.mxu1 %vm484_vm0, %v475_v5  ;;  %v474_v7 = vld [vmem:[%s428_s28 + $0x10] sm:$0x3f]  ;;  %v477_v8 = vld [vmem:[%s428_s28 + $0x28] sm:$0x3f]  ;;  %v479_v9 = vld [vmem:[%s428_s28 + $0x38] sm:$0x3f] }
  0x10   : > { %3692 = vmatpush1.msk.msra.mxu0 %vm484_vm0, %v472_v6  ;;  %3695 = vmatpush1.msk.msra.mxu1 %vm484_vm0, %v474_v7  ;;  %v476_v10 = vld [vmem:[%s428_s28 + $0x20] sm:$0x3f]  ;;  %v478_v11 = vld [vmem:[%s428_s28 + $0x30] sm:$0x3f]  ;;  %v468_v47 = vld [vmem:[%s3962_s20 + $0x8] sm:$0xff]  ;;  %vm1563_vm6 = vcmask 1043720  }
  0x11   : > { %3693 = vmatmul.mubr.msk.f32.vlgmr.msra.gmra.mxu0 %vm480_vm1, %v471_v3  ;;  %3696 = vmatmul.mubr.msk.f32.vlgmr.msra.gmra.mxu1 %vm480_vm1, %v471_v3  ;;  %v1453_v14 = vld [vmem:[%s4985_s6] sm:$0xf]  ;;  %v1147_v53 = vcombine.high %v468_v47, %v468_v47  ;;  %v469_v54 = vld [vmem:[%s3962_s20 + $0x10] sm:$0xff]  ;;  %v470_v55 = vld [vmem:[%s3962_s20 + $0x18] sm:$0xff]  ;;  %1523 = vst.msk [vmem:[#allocation2] sm:$0xf] %vm1522_vm4, %v3832_v0 }
  0x12   : > { %3697 = vmatprep.subr.msk.mxu0 %vm484_vm0, %v477_v8  ;;  %3700 = vmatprep.subr.msk.mxu1 %vm484_vm0, %v479_v9  ;;  %v828_v43 = vld [vmem:[%s4984_s5] sm:$0xf]  ;;  %v1148_v57 = vcombine.high %v469_v54, %v469_v54  ;;  %v1149_v58 = vcombine.high %v470_v55, %v470_v55  ;;  %1525 = vst.msk [vmem:[#allocation2 + $0x20] sm:$0xf] %vm1524_vm5, %v3832_v0  ;;  %vm1564_vm7 = vcmask 1047556   ;;  %vm4993_vm8 = vcmask 269312  }
  0x13   : > { %3698 = vmatpush1.msk.msra.mxu0 %vm484_vm0, %v476_v10  ;;  %715 = vmatprep.mubr.f32.mxu0 %v3832_v0  ;;  %v467_v46 = vld [vmem:[%s3962_s20] sm:$0xff]  ;;  %vm1565_vm9 = vmor %vm1564_vm7, %vm1563_vm6  ;;  %s3836_s28 = smov 62   ;;  %vm4995_vm5 = vcmask 769024  }
  0x14   : > { %3701 = vmatpush1.msk.msra.mxu1 %vm484_vm0, %v478_v11  ;;  %786 = vmatprep.mubr.f32.mxu1 %v3832_v0  ;;  %v1146_v52 = vcombine.high %v467_v46, %v467_v46  ;;  %v827_v56 = vld [vmem:[%s4983_s4] sm:$0xf] }
  0x15   : > { %3699 = vmatmul.mubr.msk.f32.vlgmr.msra.gmra.mxu0 %vm480_vm1, %v471_v3  ;;  %3702 = vmatmul.mubr.msk.f32.vlgmr.msra.gmra.mxu1 %vm480_vm1, %v471_v3 }
  0x16   : > { %3777 = vset.pattern.permute.xlu0 %v3834_v12  ;;  %922 = vmatprep.mubr.f32.mxu0 %v3832_v0 }
  0x17   : > { %808 = vperm.xlu0 %3777, %v793_v1   ;;  %993 = vmatprep.mubr.f32.mxu1 %v3832_v0 }
  0x18   : > { %1456 = vperm.xlu1 %3778, %v1453_v14  }
  0x1b   : > { %1502 = vperm.xlu0 %3777, %v1487_v13  }
  0x1c   : > { %3779 = vset.pattern.permute.xlu1 %v3834_v12 }
  0x1d   : > { %1468 = vperm.xlu1 %3779, %v1453_v14  }
  0x21   : > { %3780 = vset.pattern.permute.xlu1 %v3833_v2 }
  0x22   : > { %1490 = vperm.xlu1 %3780, %v1487_v13  }
  0x89   : > { %v797_v15 = vpop.permute.xlu0 %796 }
  0x92   : > { %v809_v22 = vpop.permute.xlu0 %808 }
  0x93   : > { %v1457_v63 = vpop.permute.xlu1 %1456 }
  0x98   : > { %v1469_v10 = vpop.permute.xlu1 %1468 }
  0xd1   : > { %v575_v16 = vpop.f32.mrf.mxu0  ;;  %v646_v17 = vpop.f32.mrf.mxu1 }
  0xd2   : > { %v799_v18 = vmul.f32 %v797_v15, %v575_v16  ;;  %v801_v19 = vmul.f32 %v797_v15, %v646_v17 }
  0xd3   : > { %v577_v20 = vpop.f32.mrf.mxu0  ;;  %v648_v21 = vpop.f32.mrf.mxu1 }
  0xd4   : > { %v800_v23 = vmul.f32 %v797_v15, %v577_v20  ;;  %v802_v24 = vmul.f32 %v797_v15, %v648_v21  ;;  %v811_v25 = vadd.f32 %v809_v22, %v799_v18  ;;  %v813_v26 = vadd.f32 %v809_v22, %v801_v19 }
  0xd5   : > { %v717_v27 = vpop.f32.mrf.mxu0  ;;  %v788_v28 = vpop.f32.mrf.mxu1 }
  0xd6   : > { %v812_v29 = vadd.f32 %v809_v22, %v800_v23  ;;  %v814_v30 = vadd.f32 %v809_v22, %v802_v24  ;;  %v803_v31 = vmul.f32 %v797_v15, %v717_v27  ;;  %v805_v32 = vmul.f32 %v797_v15, %v788_v28 }
  0xd7   : > { %v719_v33 = vpop.f32.mrf.mxu0  ;;  %v790_v34 = vpop.f32.mrf.mxu1  ;;  %v819_v39 = vmax.f32 %v811_v25, 0.0  ;;  %v821_v40 = vmax.f32 %v813_v26, 0.0 }
  0xd8   : > { %v820_v35 = vmax.f32 %v812_v29, 0.0  ;;  %v822_v36 = vmax.f32 %v814_v30, 0.0  ;;  %v804_v37 = vmul.f32 %v797_v15, %v719_v33  ;;  %v806_v38 = vmul.f32 %v797_v15, %v790_v34 }
  0xd9   : > { %v815_v41 = vadd.f32 %v809_v22, %v803_v31  ;;  %v817_v42 = vadd.f32 %v809_v22, %v805_v32  ;;  %v1491_v31 = vpop.permute.xlu1 %1490 }
  0xda   : > { %v816_v44 = vadd.f32 %v809_v22, %v804_v37  ;;  %v818_v45 = vadd.f32 %v809_v22, %v806_v38  ;;  %3703 = vmatprep.subr.msk.mxu0 %vm4999_vm2, %v820_v35  ;;  %3706 = vmatprep.subr.msk.mxu1 %vm4999_vm2, %v822_v36 }
  0xdb   : > { %3704 = vmatpush1.msk.msra.mxu0 %vm4999_vm2, %v819_v39  ;;  %3707 = vmatpush1.msk.msra.mxu1 %vm4999_vm2, %v821_v40  ;;  %v823_v50 = vmax.f32 %v815_v41, 0.0  ;;  %v825_v51 = vmax.f32 %v817_v42, 0.0 }
  0xdc   : > { %v824_v48 = vmax.f32 %v816_v44, 0.0  ;;  %v826_v49 = vmax.f32 %v818_v45, 0.0  ;;  %3705 = vmatmul.mubr.msk.f32.vlgmr.msra.gmra.mxu0 %vm829_vm3, %v828_v43  ;;  %3708 = vmatmul.mubr.msk.f32.vlgmr.msra.gmra.mxu1 %vm829_vm3, %v828_v43  ;;  %v1503_v44 = vpop.permute.xlu0 %1502 }
  0xdd   : > { %1064 = vmatprep.mubr.f32.mxu0 %v3832_v0  ;;  %1135 = vmatprep.mubr.f32.mxu1 %v3832_v0 }
  0xde   : > { %3709 = vmatprep.subr.msk.mxu0 %vm4999_vm2, %v824_v48  ;;  %3712 = vmatprep.subr.msk.mxu1 %vm4999_vm2, %v826_v49 }
  0xdf   : > { %3710 = vmatpush1.msk.msra.mxu0 %vm4999_vm2, %v823_v50  ;;  %3713 = vmatpush1.msk.msra.mxu1 %vm4999_vm2, %v825_v51 }
  0xe0   : > { %3711 = vmatmul.mubr.msk.f32.vlgmr.msra.gmra.mxu0 %vm829_vm3, %v828_v43  ;;  %3714 = vmatmul.mubr.msk.f32.vlgmr.msra.gmra.mxu1 %vm829_vm3, %v828_v43 }
  0xe1   : > { %3715 = vmatprep.subr.msk.mxu0 %vm4999_vm2, %v1146_v52  ;;  %3718 = vmatprep.subr.msk.mxu1 %vm4999_vm2, %v1147_v53 }
  0xe2   : > { %3716 = vmatpush1.msk.msra.mxu0 %vm4999_vm2, %v467_v46  ;;  %1233 = vmatprep.mubr.f32.mxu0 %v3832_v0 }
  0xe3   : > { %3719 = vmatpush1.msk.msra.mxu1 %vm4999_vm2, %v468_v47  ;;  %1304 = vmatprep.mubr.f32.mxu1 %v3832_v0 }
  0xe4   : > { %3717 = vmatmul.mubr.msk.f32.vlgmr.msra.gmra.mxu0 %vm829_vm3, %v827_v56  ;;  %3720 = vmatmul.mubr.msk.f32.vlgmr.msra.gmra.mxu1 %vm829_vm3, %v827_v56 }
  0xe5   : > { %3721 = vmatprep.subr.msk.mxu0 %vm4999_vm2, %v1148_v57  ;;  %3724 = vmatprep.subr.msk.mxu1 %vm4999_vm2, %v1149_v58 }
  0xe6   : > { %3722 = vmatpush1.msk.msra.mxu0 %vm4999_vm2, %v469_v54  ;;  %1375 = vmatprep.mubr.f32.mxu0 %v3832_v0 }
  0xe7   : > { %3725 = vmatpush1.msk.msra.mxu1 %vm4999_vm2, %v470_v55  ;;  %1446 = vmatprep.mubr.f32.mxu1 %v3832_v0 }
  0xe8   : > { %3723 = vmatmul.mubr.msk.f32.vlgmr.msra.gmra.mxu0 %vm829_vm3, %v827_v56  ;;  %3726 = vmatmul.mubr.msk.f32.vlgmr.msra.gmra.mxu1 %vm829_vm3, %v827_v56  ;;  %vm2570_vm3 = vcmask 533768  }
  0xe9   : > { %2313 = vmatprep.mubr.f32.mxu0 %v3832_v0  ;;  %2384 = vmatprep.mubr.f32.mxu1 %v3832_v0 }
 0x19c   : > { %v924_v59 = vpop.f32.mrf.mxu0  ;;  %v995_v60 = vpop.f32.mrf.mxu1 }
 0x19e   : > { %v926_v61 = vpop.f32.mrf.mxu0  ;;  %v997_v62 = vpop.f32.mrf.mxu1 }
 0x1a0   : > { %v1066_v1 = vpop.f32.mrf.mxu0  ;;  %v1137_v3 = vpop.f32.mrf.mxu1 }
 0x1a2   : > { %v1068_v4 = vpop.f32.mrf.mxu0  ;;  %v1139_v5 = vpop.f32.mrf.mxu1 }
 0x1a4   : > { %v1235_v6 = vpop.f32.mrf.mxu0  ;;  %v1306_v7 = vpop.f32.mrf.mxu1 }
 0x1a5   : > { %v1236_v8 = vadd.f32 %v1235_v6, %v924_v59  ;;  %v1307_v9 = vadd.f32 %v1306_v7, %v995_v60 }
 0x1a6   : > { %v1237_v11 = vpop.f32.mrf.mxu0  ;;  %v1308_v12 = vpop.f32.mrf.mxu1 }
 0x1a7   : > { %v1459_v13 = vmul.f32 %v1457_v63, %v1236_v8  ;;  %v1461_v14 = vmul.f32 %v1457_v63, %v1307_v9  ;;  %v1238_v15 = vadd.f32 %v1237_v11, %v926_v61  ;;  %v1309_v16 = vadd.f32 %v1308_v12, %v997_v62 }
 0x1a8   : > { %v1377_v17 = vpop.f32.mrf.mxu0  ;;  %v1448_v18 = vpop.f32.mrf.mxu1 }
 0x1a9   : > { %v1460_v19 = vmul.f32 %v1457_v63, %v1238_v15  ;;  %v1462_v20 = vmul.f32 %v1457_v63, %v1309_v16  ;;  %v1378_v21 = vadd.f32 %v1377_v17, %v1066_v1  ;;  %v1449_v22 = vadd.f32 %v1448_v18, %v1137_v3 }
 0x1aa   : > { %v1379_v23 = vpop.f32.mrf.mxu0  ;;  %v1450_v24 = vpop.f32.mrf.mxu1  ;;  %v1473_v25 = vadd.f32 %v1469_v10, %v1461_v14  ;;  %v1471_v26 = vadd.f32 %v1469_v10, %v1459_v13  ;;  %v434_v15 = vlaneseq }
 0x1ab   : > { %v1463_v27 = vmul.f32 %v1457_v63, %v1378_v21  ;;  %v1465_v28 = vmul.f32 %v1457_v63, %v1449_v22  ;;  %v1380_v29 = vadd.f32 %v1379_v23, %v1068_v4  ;;  %v1451_v30 = vadd.f32 %v1450_v24, %v1139_v5 }
 0x1ac   : > { %v1474_v32 = vadd.f32 %v1469_v10, %v1462_v20  ;;  %v1481_v33 = vmax.f32 %v1473_v25, 0.0  ;;  %v1472_v34 = vadd.f32 %v1469_v10, %v1460_v19  ;;  %v1479_v35 = vmax.f32 %v1471_v26, 0.0 }
 0x1ad   : > { %v1475_v36 = vadd.f32 %v1469_v10, %v1463_v27  ;;  %v1477_v37 = vadd.f32 %v1469_v10, %v1465_v28  ;;  %v1464_v38 = vmul.f32 %v1457_v63, %v1380_v29  ;;  %v1466_v39 = vmul.f32 %v1457_v63, %v1451_v30 }
 0x1ae   : > { %v1482_v40 = vmax.f32 %v1474_v32, 0.0  ;;  %v1495_v41 = vmul.f32 %v1491_v31, %v1481_v33  ;;  %v1480_v42 = vmax.f32 %v1472_v34, 0.0  ;;  %v1493_v43 = vmul.f32 %v1491_v31, %v1479_v35 }
 0x1af   : > { %v1483_v45 = vmax.f32 %v1475_v36, 0.0  ;;  %v1485_v46 = vmax.f32 %v1477_v37, 0.0  ;;  %v1476_v47 = vadd.f32 %v1469_v10, %v1464_v38  ;;  %v1478_v48 = vadd.f32 %v1469_v10, %v1466_v39 }
 0x1b0   : > { %v1496_v49 = vmul.f32 %v1491_v31, %v1482_v40  ;;  %v1507_v50 = vadd.f32 %v1503_v44, %v1495_v41  ;;  %v1494_v51 = vmul.f32 %v1491_v31, %v1480_v42  ;;  %v1505_v52 = vadd.f32 %v1503_v44, %v1493_v43 }
 0x1b1   : > { %v1484_v53 = vmax.f32 %v1476_v47, 0.0  ;;  %v1486_v54 = vmax.f32 %v1478_v48, 0.0  ;;  %v1499_v55 = vmul.f32 %v1491_v31, %v1485_v46  ;;  %v1497_v56 = vmul.f32 %v1491_v31, %v1483_v45 }
 0x1b2   : > { %v1508_v57 = vadd.f32 %v1503_v44, %v1496_v49  ;;  %v1515_v58 = vmax.f32 %v1507_v50, 0.0  ;;  %v1506_v59 = vadd.f32 %v1503_v44, %v1494_v51  ;;  %v1513_v3 = vmax.f32 %v1505_v52, 0.0 }
 0x1b3   : > { %v1500_v60 = vmul.f32 %v1491_v31, %v1486_v54  ;;  %v1511_v61 = vadd.f32 %v1503_v44, %v1499_v55  ;;  %v1498_v62 = vmul.f32 %v1491_v31, %v1484_v53  ;;  %v1509_v63 = vadd.f32 %v1503_v44, %v1497_v56 }
 0x1b4   : > { %v1516_v1 = vmax.f32 %v1508_v57, 0.0  ;;  %v1514_v4 = vmax.f32 %v1506_v59, 0.0  ;;  %v4013_v16 = vand.u32 127, %v434_v15 }
 0x1b5   : > { %v1512_v5 = vadd.f32 %v1503_v44, %v1500_v60  ;;  %v1510_v6 = vadd.f32 %v1503_v44, %v1498_v62  ;;  %v1519_v9 = vmax.f32 %v1511_v61, 0.0  ;;  %v1517_v11 = vmax.f32 %v1509_v63, 0.0 }
 0x1b6   : > { %v1535_v7 = vcombine.low %v1515_v58, %v1516_v1  ;;  %v1534_v8 = vcombine.low %v1513_v3, %v1514_v4  ;;  %v4016_v17 = vadd.s32 256, %v4013_v16  ;;  %v4019_v18 = vadd.s32 384, %v4013_v16 }
 0x1b7   : > { %v1520_v10 = vmax.f32 %v1512_v5, 0.0  ;;  %v1518_v12 = vmax.f32 %v1510_v6, 0.0  ;;  %v4022_v19 = vadd.s32 512, %v4013_v16  ;;  %v4026_v21 = vadd.s32 768, %v4013_v16 }
 0x1b8   : > { %1540 = vrot.lane.b32.xlu0 %v1535_v7, %s3835_s27  ;;  %1538 = vrot.lane.b32.xlu1 %v1534_v8, %s3835_s27  ;;  %v445_v20 = vand.u32 31, %v4016_v17  ;;  %v446_v24 = vand.u32 31, %v4019_v18  ;;  %v4030_v25 = vadd.s32 640, %v4013_v16  ;;  %v4033_v26 = vadd.s32 896, %v4013_v16 }
 0x1b9   : > { %v1537_v13 = vcombine.low %v1519_v9, %v1520_v10  ;;  %v1536_v14 = vcombine.low %v1517_v11, %v1518_v12  ;;  %v447_v29 = vand.u32 31, %v4022_v19  ;;  %v449_v33 = vand.u32 31, %v4026_v21 }
 0x1ba   : > { %vm4040_vm10 = vcmp.ge.s32.totalorder %v445_v20, 1  ;;  %vm4050_vm11 = vcmp.ge.s32.totalorder %v446_v24, 1  ;;  %v448_v38 = vand.u32 31, %v4030_v25  ;;  %v450_v39 = vand.u32 31, %v4033_v26 }
 0x1bb   : > { %v443_v43 = vand.u32 31, %v4013_v16  ;;  %v4063_v44 = vadd.s32 128, %v4013_v16  ;;  %vm4070_vm12 = vcmp.ge.s32.totalorder %v447_v29, 1  ;;  %vm4082_vm13 = vcmp.ge.s32.totalorder %v449_v33, 1 }
 0x1bc   : > { %1544 = vrot.lane.b32.xlu0 %v1537_v13, %s3835_s27  ;;  %1542 = vrot.lane.b32.xlu1 %v1536_v14, %s3835_s27  ;;  %vm4094_vm14 = vcmp.ge.s32.totalorder %v448_v38, 1  ;;  %vm4100_vm15 = vcmp.ge.s32.totalorder %v450_v39, 1 }
 0x1bd   : > { %vm4116_vm0 = vcmp.ge.s32.totalorder %v443_v43, 1  ;;  %v444_v58 = vand.u32 31, %v4063_v44  ;;  %vm4291_vm6 = vcmp.le.s32.totalorder %v443_v43, 30 }
 0x1bf   : > { %vm4139_vm1 = vcmp.ge.s32.totalorder %v444_v58, 1  ;;  %vm4297_vm7 = vcmp.le.s32.totalorder %v444_v58, 30 }
 0x22a   : > { %v1541_v22 = vpop.permute.xlu0 %1540  ;;  %v1539_v23 = vpop.permute.xlu1 %1538 }
 0x22b   : > { %v1547_v27 = vrot.slane %v1541_v22, 4  ;;  %v1546_v28 = vrot.slane %v1539_v23, 4 }
 0x22d   : > { %v1551_v30 = vsel %vm4993_vm8, %v1546_v28, %v1539_v23  ;;  %v1552_v31 = vsel %vm4999_vm2, %v1546_v28, %v1547_v27 }
 0x22e   : > { %v4046_v34 = vsel %vm4993_vm8, %v1552_v31, %v1541_v22  ;;  %1566 = vst.msk [vmem:[#allocation2] sm:$0xff] %vm1565_vm9, %v1551_v30  ;;  %v1545_v35 = vpop.permute.xlu0 %1544  ;;  %v1543_v36 = vpop.permute.xlu1 %1542  ;;  %vm4994_vm9 = vcmask 523264  }
 0x22f   : > { %1567 = vst [vmem:[#allocation2 + $0x8] sm:$0xff] %v4046_v34  ;;  %v1549_v40 = vrot.slane %v1545_v35, 4  ;;  %v1548_v41 = vrot.slane %v1543_v36, 4  ;;  %v4059_v42 = vcombine.high %v4046_v34, %v4046_v34  ;;  %v1605_v45 = vsel %vm4040_vm10, %v4046_v34, 0.0 }
 0x230   : > { %1613 = vst [vmem:[#allocation3 + $0x10] sm:$0xf] %v1605_v45  ;;  %v2069_v15 = vcombine.low %v4046_v34, %v4046_v34 }
 0x231   : > { %1570 = vst.msk [vmem:[#allocation2 + $0x20] sm:$0xf] %vm1522_vm4, %v1549_v40  ;;  %v1554_v47 = vsel %vm4999_vm2, %v1547_v27, %v1548_v41  ;;  %v1556_v48 = vsel %vm4999_vm2, %v1548_v41, %v1549_v40  ;;  %v1606_v49 = vsel %vm4050_vm11, %v4059_v42, 0.0  ;;  %vm4992_vm4 = vcmask 263168  }
 0x232   : > { %v4087_v51 = vsel %vm4993_vm8, %v1554_v47, %v1543_v36  ;;  %v4090_v52 = vsel %vm4993_vm8, %v1556_v48, %v1545_v35  ;;  %1614 = vst [vmem:[#allocation3 + $0x48] sm:$0xf] %v1606_v49  ;;  %v5032_v48 = vmov 0  ;;  %v5034_v49 = vmov 0 }
 0x233   : > { %1568 = vst [vmem:[#allocation2 + $0x10] sm:$0xff] %v4087_v51  ;;  %1569 = vst [vmem:[#allocation2 + $0x18] sm:$0xff] %v4090_v52  ;;  %v4108_v55 = vcombine.high %v4087_v51, %v4087_v51  ;;  %v4112_v56 = vcombine.high %v4090_v52, %v4090_v52  ;;  %v1607_v59 = vsel %vm4070_vm12, %v4087_v51, 0.0  ;;  %v1609_v60 = vsel %vm4082_vm13, %v4090_v52, 0.0 }
 0x234   : > { %1615 = vst [vmem:[#allocation3 + $0x120] sm:$0xf] %v1607_v59  ;;  %1617 = vst [vmem:[#allocation3 + $0xf8] sm:$0xf] %v1609_v60  ;;  %v2070_v22 = vcombine.low %v4087_v51, %v4087_v51  ;;  %v2071_v40 = vcombine.low %v4090_v52, %v4090_v52  ;;  %v5033_v48 = vsel %vm4291_vm6, 4294967295, %v5032_v48  ;;  %v5035_v49 = vsel %vm4297_vm7, 4294967295, %v5034_v49 }
 0x235   : > { %v2116_v61 = vld [vmem:[#allocation2] sm:$0xff]  ;;  %v1608_v62 = vsel %vm4094_vm14, %v4108_v55, 0.0  ;;  %v1610_v63 = vsel %vm4100_vm15, %v4112_v56, 0.0  ;;  %vm4996_vm8 = vcmask 777216  }
 0x236   : > { %2130 = vrot.lane.b32.xlu1 %v2116_v61, %s3836_s28  ;;  %1918 = vrot.lane.b32.xlu0 %v2116_v61, %s3837_s29  ;;  %v1603_v1 = vsel %vm4116_vm0, %v2116_v61, 0.0  ;;  %1616 = vst [vmem:[#allocation3 + $0x38] sm:$0xf] %v1608_v62  ;;  %1618 = vst [vmem:[#allocation3 + $0x100] sm:$0xf] %v1610_v63  ;;  %v1914_v3 = vcombine.high %v2116_v61, %v2116_v61  ;;  %v2068_v14 = vcombine.low %v2116_v61, %v2116_v61 }
 0x237   : > { %1611 = vst [vmem:[#allocation3 + $0xb0] sm:$0xf] %v1603_v1  ;;  %2569 = vst.msk [vmem:[#allocation2] sm:$0x3] %vm4992_vm4, %v3832_v0  ;;  %v2533_v60 = vld [vmem:[%s4988_s9] sm:$0x3] }
 0x238   : > { %v1604_v5 = vsel %vm4139_vm1, %v1914_v3, 0.0  ;;  %v2120_v6 = vld [vmem:[#allocation2 + $0x20] sm:$0xf]  ;;  %vm4998_vm4 = vcmask 515072  }
 0x239   : > { %1612 = vst [vmem:[#allocation3 + $0xd0] sm:$0xf] %v1604_v5  ;;  %v1908_v7 = vld [vmem:[#allocation2 + $0x20] sm:$0xf] }
 0x23a   : > { %2007 = vrot.lane.b32.xlu1 %v2116_v61, %s3838_s30  ;;  %2075 = vrot.lane.b32.xlu0 %v2116_v61, %s3839_s13  ;;  %v1997_v8 = vld [vmem:[#allocation2 + $0x20] sm:$0xf] }
 0x23b   : > { %v1762_v9 = vld [vmem:[#allocation2 + $0x20] sm:$0xf] }
 0x23c   : > { %v1851_v10 = vld [vmem:[#allocation2 + $0x20] sm:$0xf] }
 0x23d   : > { %v4151_v11 = vld [vmem:[#allocation2 + $0x20] ss:$0 sps:$4 sm:$0xff]  }
 0x23e   : > { %1861 = vrot.lane.b32.xlu0 %v2116_v61, %s3840_s14  ;;  %1772 = vrot.lane.b32.xlu1 %v2116_v61, %s3841_s15  ;;  %v4153_v12 = vld [vmem:[#allocation2 + $0x20] sm:$0xf] }
 0x23f   : > { %v4155_v13 = vld [vmem:[#allocation2 + $0x20] ss:$0 sps:$4 sm:$0xff]  }
 0x240   : > { %2571 = vst.msk [vmem:[#allocation2 + $0x20] sm:$0x3] %vm2570_vm3, %v3832_v0  ;;  %vm5002_vm3 = vcmask 785408  }
 0x242   : > { %1707 = vrot.lane.b32.xlu1 %v2116_v61, %s3842_s16  ;;  %1636 = vrot.lane.b32.xlu0 %v2116_v61, %s3843_s18 }
 0x246   : > { %1922 = vrot.lane.b32.xlu1 %v4046_v34, %s3837_s29  ;;  %2134 = vrot.lane.b32.xlu0 %v4046_v34, %s3836_s28 }
 0x24a   : > { %2011 = vrot.lane.b32.xlu1 %v4046_v34, %s3838_s30  ;;  %2079 = vrot.lane.b32.xlu0 %v4046_v34, %s3839_s13 }
 0x24e   : > { %1776 = vrot.lane.b32.xlu1 %v4046_v34, %s3841_s15  ;;  %1920 = vrot.lane.b32.xlu0 %v1914_v3, %s3837_s29 }
 0x252   : > { %1865 = vrot.lane.b32.xlu1 %v4046_v34, %s3840_s14  ;;  %2009 = vrot.lane.b32.xlu0 %v1914_v3, %s3838_s30 }
 0x256   : > { %1711 = vrot.lane.b32.xlu1 %v4046_v34, %s3842_s16  ;;  %1774 = vrot.lane.b32.xlu0 %v1914_v3, %s3841_s15 }
 0x25a   : > { %1640 = vrot.lane.b32.xlu1 %v4046_v34, %s3843_s18  ;;  %2073 = vrot.lane.b32.xlu0 %v2068_v14, %s3839_s13 }
 0x25e   : > { %2132 = vrot.lane.b32.xlu1 %v1914_v3, %s3836_s28  ;;  %1863 = vrot.lane.b32.xlu0 %v1914_v3, %s3840_s14 }
 0x262   : > { %2077 = vrot.lane.b32.xlu1 %v2069_v15, %s3839_s13  ;;  %1709 = vrot.lane.b32.xlu0 %v1914_v3, %s3842_s16 }
 0x266   : > { %2136 = vrot.lane.b32.xlu1 %v4059_v42, %s3836_s28  ;;  %1634 = vrot.lane.b32.xlu0 %v2068_v14, %s3843_s18 }
 0x26a   : > { %1924 = vrot.lane.b32.xlu1 %v4059_v42, %s3837_s29  ;;  %1778 = vrot.lane.b32.xlu0 %v4059_v42, %s3841_s15 }
 0x26e   : > { %2013 = vrot.lane.b32.xlu1 %v4059_v42, %s3838_s30  ;;  %1867 = vrot.lane.b32.xlu0 %v4059_v42, %s3840_s14 }
 0x272   : > { %1638 = vrot.lane.b32.xlu1 %v2069_v15, %s3843_s18  ;;  %2146 = vrot.lane.b32.xlu0 %v2120_v6, %s3836_s28 }
 0x276   : > { %1713 = vrot.lane.b32.xlu1 %v4059_v42, %s3842_s16  ;;  %1934 = vrot.lane.b32.xlu0 %v1908_v7, %s3837_s29 }
 0x27a   : > { %2023 = vrot.lane.b32.xlu0 %v1997_v8, %s3838_s30  ;;  %1780 = vrot.lane.b32.xlu1 %v4087_v51, %s3841_s15 }
 0x27e   : > { %1788 = vrot.lane.b32.xlu0 %v1762_v9, %s3841_s15  ;;  %1869 = vrot.lane.b32.xlu1 %v4087_v51, %s3840_s14 }
 0x282   : > { %1877 = vrot.lane.b32.xlu0 %v1851_v10, %s3840_s14  ;;  %2083 = vrot.lane.b32.xlu1 %v4087_v51, %s3839_s13 }
 0x286   : > { %2138 = vrot.lane.b32.xlu0 %v4087_v51, %s3836_s28  ;;  %2087 = vrot.lane.b32.xlu1 %v4090_v52, %s3839_s13 }
 0x28a   : > { %1926 = vrot.lane.b32.xlu0 %v4087_v51, %s3837_s29  ;;  %1644 = vrot.lane.b32.xlu1 %v4087_v51, %s3843_s18 }
 0x28e   : > { %2015 = vrot.lane.b32.xlu0 %v4087_v51, %s3838_s30  ;;  %2081 = vrot.lane.b32.xlu1 %v2070_v22, %s3839_s13 }
 0x292   : > { %1715 = vrot.lane.b32.xlu0 %v4087_v51, %s3842_s16  ;;  %2140 = vrot.lane.b32.xlu1 %v4108_v55, %s3836_s28 }
 0x296   : > { %2142 = vrot.lane.b32.xlu0 %v4090_v52, %s3836_s28  ;;  %1928 = vrot.lane.b32.xlu1 %v4108_v55, %s3837_s29 }
 0x29a   : > { %1930 = vrot.lane.b32.xlu0 %v4090_v52, %s3837_s29  ;;  %2017 = vrot.lane.b32.xlu1 %v4108_v55, %s3838_s30 }
 0x29e   : > { %2019 = vrot.lane.b32.xlu0 %v4090_v52, %s3838_s30  ;;  %1782 = vrot.lane.b32.xlu1 %v4108_v55, %s3841_s15 }
 0x2a2   : > { %1784 = vrot.lane.b32.xlu0 %v4090_v52, %s3841_s15  ;;  %2144 = vrot.lane.b32.xlu1 %v4112_v56, %s3836_s28 }
 0x2a6   : > { %1873 = vrot.lane.b32.xlu0 %v4090_v52, %s3840_s14  ;;  %1871 = vrot.lane.b32.xlu1 %v4108_v55, %s3840_s14 }
 0x2a8   : > { %v1919_v23 = vpop.permute.xlu0 %1918  ;;  %v4248_v27 = vpop.permute.xlu1 %2130 }
 0x2aa   : > { %1719 = vrot.lane.b32.xlu0 %v4090_v52, %s3842_s16  ;;  %1717 = vrot.lane.b32.xlu1 %v4108_v55, %s3842_s16 }
 0x2ac   : > { %v4254_v28 = vpop.permute.xlu0 %2075  ;;  %v2008_v30 = vpop.permute.xlu1 %2007 }
 0x2ae   : > { %2089 = vrot.lane.b32.xlu0 %v4151_v11, %s3839_s13  ;;  %1932 = vrot.lane.b32.xlu1 %v4112_v56, %s3837_s29 }
 0x2b0   : > { %v4260_v31 = vpop.permute.xlu0 %1861  ;;  %v1773_v34 = vpop.permute.xlu1 %1772 }
 0x2b2   : > { %2021 = vrot.lane.b32.xlu1 %v4112_v56, %s3838_s30  ;;  %1642 = vrot.lane.b32.xlu0 %v2070_v22, %s3843_s18 }
 0x2b4   : > { %v4265_v35 = vpop.permute.xlu0 %1636  ;;  %v4267_v36 = vpop.permute.xlu1 %1707 }
 0x2b6   : > { %1786 = vrot.lane.b32.xlu1 %v4112_v56, %s3841_s15  ;;  %2085 = vrot.lane.b32.xlu0 %v2071_v40, %s3839_s13 }
 0x2b8   : > { %v4274_v41 = vpop.permute.xlu0 %2134  ;;  %v4276_v42 = vpop.permute.xlu1 %1922 }
 0x2ba   : > { %1875 = vrot.lane.b32.xlu1 %v4112_v56, %s3840_s14  ;;  %1723 = vrot.lane.b32.xlu0 %v4153_v12, %s3842_s16 }
 0x2bc   : > { %v4282_v45 = vpop.permute.xlu0 %2079  ;;  %v4284_v47 = vpop.permute.xlu1 %2011 }
 0x2be   : > { %1721 = vrot.lane.b32.xlu1 %v4112_v56, %s3842_s16  ;;  %1646 = vrot.lane.b32.xlu0 %v2071_v40, %s3843_s18 }
 0x2c0   : > { %v1921_v51 = vpop.permute.xlu0 %1920  ;;  %v4301_v55 = vpop.permute.xlu1 %1776 }
 0x2c1   : > { %v1937_v56 = vsel %vm4995_vm5, %v1919_v23, %v1921_v51  ;;  %v1938_v59 = vsel %vm4995_vm5, %v1921_v51, %v4276_v42  ;;  %vm4997_vm5 = vcmask 1031168  }
 0x2c2   : > { %v1953_v16 = vsel %vm4291_vm6, %v1937_v56, 0.0  ;;  %v1954_v43 = vsel %vm4297_vm7, %v1938_v59, 0.0  ;;  %1648 = vrot.lane.b32.xlu1 %v4090_v52, %s3843_s18  ;;  %1650 = vrot.lane.b32.xlu0 %v4155_v13, %s3843_s18 }
 0x2c3   : > { %v1969_v44 = vrot.slane %v1953_v16, 4  ;;  %v1970_v58 = vrot.slane %v1954_v43, 4 }
 0x2c4   : > { %v2010_v61 = vpop.permute.xlu0 %2009  ;;  %v4317_v62 = vpop.permute.xlu1 %1865 }
 0x2c5   : > { %1985 = vst [vmem:[#allocation3 + $0x128] sm:$0xf0] %v1969_v44  ;;  %1986 = vst [vmem:[#allocation3 + $0x110] sm:$0xf0] %v1970_v58  ;;  %v2026_v63 = vsel %vm4994_vm9, %v2008_v30, %v2010_v61  ;;  %v2027_v52 = vsel %vm4994_vm9, %v2010_v61, %v4284_v47  ;;  %vm5003_vm9 = vcmask 506880  }
 0x2c6   : > { %v2042_v1 = vsel %vm4116_vm0, %v2026_v63, 0.0  ;;  %v2043_v3 = vsel %vm4139_vm1, %v2027_v52, 0.0  ;;  %2536 = vperm.xlu1 %3780, %v2533_v60   ;;  %2548 = vperm.xlu0 %3777, %v2533_v60  }
 0x2c7   : > { %2050 = vst [vmem:[#allocation3 + $0xc0] sm:$0xf] %v2042_v1  ;;  %2051 = vst [vmem:[#allocation3 + $0x118] sm:$0xf] %v2043_v3 }
 0x2c8   : > { %v1775_v5 = vpop.permute.xlu0 %1774  ;;  %v4326_v6 = vpop.permute.xlu1 %1711 }
 0x2c9   : > { %v1791_v7 = vsel %vm5002_vm3, %v1773_v34, %v1775_v5  ;;  %v1792_v8 = vsel %vm5002_vm3, %v1775_v5, %v4301_v55 }
 0x2ca   : > { %v1807_v9 = vsel %vm4116_vm0, %v1791_v7, 0.0  ;;  %v1808_v10 = vsel %vm4139_vm1, %v1792_v8, 0.0  ;;  %3781 = vset.pattern.permute.xlu0 %v3833_v2 }
 0x2cb   : > { %v1823_v11 = vrot.slane %v1807_v9, 4  ;;  %v1824_v12 = vrot.slane %v1808_v10, 4 }
 0x2cc   : > { %v2074_v13 = vpop.permute.xlu0 %2073  ;;  %v4336_v14 = vpop.permute.xlu1 %1640 }
 0x2cd   : > { %1839 = vst [vmem:[#allocation3 + $0x80] sm:$0xf0] %v1823_v11  ;;  %1840 = vst [vmem:[#allocation3 + $0x108] sm:$0xf0] %v1824_v12  ;;  %v2092_v15 = vsel %vm4998_vm4, %v2074_v13, %v4254_v28 }
 0x2ce   : > { %2108 = vst [vmem:[#allocation3 + $0xc0] sm:$0xf0] %v2092_v15 }
 0x2d0   : > { %v1864_v22 = vpop.permute.xlu0 %1863  ;;  %v2133_v23 = vpop.permute.xlu1 %2132 }
 0x2d1   : > { %v1880_v30 = vsel %vm4996_vm8, %v4260_v31, %v1864_v22  ;;  %v1881_v2 = vsel %vm4996_vm8, %v1864_v22, %v4317_v62  ;;  %v2149_v34 = vsel %vm5003_vm9, %v4248_v27, %v2133_v23  ;;  %v2150_v40 = vsel %vm5003_vm9, %v2133_v23, %v4274_v41 }
 0x2d2   : > { %1896 = vst [vmem:[#allocation3 + $0x128] sm:$0xf] %v1880_v30  ;;  %1897 = vst [vmem:[#allocation3 + $0x110] sm:$0xf] %v1881_v2  ;;  %v2165_v51 = vsel %vm4291_vm6, %v2149_v34, 0.0  ;;  %v2166_v56 = vsel %vm4297_vm7, %v2150_v40, 0.0 }
 0x2d3   : > { %2173 = vst [vmem:[#allocation3 + $0x58] sm:$0xf] %v2165_v51  ;;  %2174 = vst [vmem:[#allocation3 + $0x78] sm:$0xf] %v2166_v56  ;;  %vm5000_vm8 = vcmask 1039360  }
 0x2d4   : > { %v1710_v31 = vpop.permute.xlu0 %1709  ;;  %v2078_v59 = vpop.permute.xlu1 %2077 }
 0x2d5   : > { %v1726_v16 = vsel %vm4997_vm5, %v4267_v36, %v1710_v31  ;;  %v1727_v27 = vsel %vm4997_vm5, %v1710_v31, %v4326_v6  ;;  %v2093_v43 = vsel %vm4998_vm4, %v4254_v28, %v2078_v59  ;;  %v2094_v44 = vsel %vm4998_vm4, %v2078_v59, %v4282_v45  ;;  %v2205_v11 = vld [vmem:[#allocation3 + $0xc0] sm:$0xff] }
 0x2d6   : > { %v1742_v58 = vsel %vm4291_vm6, %v1726_v16, 0.0  ;;  %v1743_v60 = vsel %vm4297_vm7, %v1727_v27, 0.0  ;;  %2109 = vst [vmem:[#allocation3 + $0x118] sm:$0xf0] %v2093_v43  ;;  %2110 = vst [vmem:[#allocation3 + $0xd8] sm:$0xf0] %v2094_v44 }
 0x2d7   : > { %1750 = vst [vmem:[#allocation3 + $0x80] sm:$0xf] %v1742_v58  ;;  %1751 = vst [vmem:[#allocation3 + $0x108] sm:$0xf] %v1743_v60  ;;  %vm4366_vm5 = vcmp.le.s32.totalorder %v445_v20, 30  ;;  %v5036_v36 = vmov 0 }
 0x2d8   : > { %v5037_v36 = vsel %vm4366_vm5, 4294967295, %v5036_v36  ;;  %v1635_v28 = vpop.permute.xlu0 %1634  ;;  %v4370_v61 = vpop.permute.xlu1 %2136  ;;  %vm5038_vm4 = vcmask 769024   ;;  %v4419_v60 = vld [vmem:[%s4987_s8] sm:$0x3]  ;;  %vm5069_vm7 = vcmask 785408  }
 0x2d9   : > { %v1653_v63 = vsel %vm5000_vm8, %v1635_v28, %v4265_v35  ;;  %v2151_v52 = vsel %vm5003_vm9, %v4274_v41, %v4370_v61  ;;  %v2198_v15 = vld [vmem:[#allocation3 + $0x110] sm:$0xff]  ;;  %v2197_v23 = vld [vmem:[#allocation3 + $0x128] sm:$0xff] }
 0x2da   : > { %1669 = vst [vmem:[#allocation3 + $0xb0] sm:$0xf0] %v1653_v63  ;;  %v2167_v1 = vsel %vm4366_vm5, %v2151_v52, 0.0  ;;  %v2214_v3 = vld [vmem:[#allocation3 + $0x78] sm:$0xf] }
 0x2db   : > { %v2213_v17 = vld [vmem:[#allocation3 + $0x58] sm:$0xf]  ;;  %2175 = vst [vmem:[#allocation3 + $0x30] sm:$0xf] %v2167_v1  ;;  %3727 = vmatprep.subr.msk.mxu0 %vm4999_vm2, %v2214_v3 }
 0x2dc   : > { %v1779_v20 = vpop.permute.xlu0 %1778  ;;  %3728 = vmatpush1.msk.msra.mxu0 %vm4999_vm2, %v2213_v17  ;;  %v4381_v5 = vpop.permute.xlu1 %1924  ;;  %vm5040_vm2 = vcmask 523264  }
 0x2dd   : > { %v1793_v7 = vsel %vm5002_vm3, %v4301_v55, %v1779_v20  ;;  %v1939_v41 = vsel %vm5038_vm4, %v4276_v42, %v4381_v5  ;;  %v2206_v8 = vld [vmem:[#allocation3 + $0x118] sm:$0xff]  ;;  %vm5039_vm4 = vcmask 777216  }
 0x2de   : > { %v1809_v9 = vsel %vm4040_vm10, %v1793_v7, 0.0  ;;  %v1955_v10 = vsel %vm4366_vm5, %v1939_v41, 0.0  ;;  %2273 = vmatprep.subr.mxu0 %v2206_v8  ;;  %v2190_v2 = vld [vmem:[#allocation3 + $0x108] sm:$0xff]  ;;  %v2189_v40 = vld [vmem:[#allocation3 + $0x80] sm:$0xff]  ;;  %v5043_v7 = vmov 0 }
 0x2df   : > { %v1825_v12 = vrot.slane %v1809_v9, 4  ;;  %v1971_v13 = vrot.slane %v1955_v10, 4  ;;  %2274 = vmatpush1.msra.mxu0 %v2205_v11 }
 0x2e0   : > { %v1868_v22 = vpop.permute.xlu0 %1867  ;;  %2275 = vmatprep.subr.mxu0 %v2198_v15  ;;  %v2014_v55 = vpop.permute.xlu1 %2013 }
 0x2e1   : > { %1841 = vst [vmem:[#allocation3 + $0x138] sm:$0xf0] %v1825_v12  ;;  %1987 = vst [vmem:[#allocation3 + $0x8] sm:$0xf0] %v1971_v13  ;;  %v1882_v42 = vsel %vm5039_vm4, %v4317_v62, %v1868_v22  ;;  %v2028_v30 = vsel %vm5040_vm2, %v4284_v47, %v2014_v55  ;;  %2276 = vmatpush1.msra.mxu0 %v2197_v23  ;;  %vm5041_vm2 = vcmask 1031168   ;;  %vm5001_vm4 = vcmask 293888  }
 0x2e2   : > { %1898 = vst [vmem:[#allocation3 + $0x8] sm:$0xf] %v1882_v42  ;;  %v2044_v34 = vsel %vm4040_vm10, %v2028_v30, 0.0  ;;  %2277 = vmatprep.subr.mxu0 %v2190_v2  ;;  %v2181_v28 = vld [vmem:[#allocation3 + $0xb0] sm:$0xff] }
 0x2e3   : > { %2052 = vst [vmem:[#allocation3 + $0xd8] sm:$0xf] %v2044_v34  ;;  %2278 = vmatpush1.msra.mxu0 %v2189_v40  ;;  %v2215_v2 = vld [vmem:[#allocation3 + $0x30] sm:$0xf] }
 0x2e4   : > { %v4398_v51 = vpop.permute.xlu0 %2146  ;;  %v1639_v56 = vpop.permute.xlu1 %1638 }
 0x2e5   : > { %v1654_v31 = vsel %vm5000_vm8, %v4265_v35, %v1639_v56  ;;  %v1655_v62 = vsel %vm5000_vm8, %v1639_v56, %v4336_v14  ;;  %vm4438_vm8 = vcmp.le.s32.totalorder %v446_v24, 30 }
 0x2e6   : > { %1670 = vst [vmem:[#allocation3 + $0xd0] sm:$0xf0] %v1654_v31  ;;  %1671 = vst [vmem:[#allocation3 + $0x10] sm:$0xf0] %v1655_v62  ;;  %v5044_v7 = vsel %vm4438_vm8, 4294967295, %v5043_v7 }
 0x2e8   : > { %v4404_v47 = vpop.permute.xlu0 %1934  ;;  %v1714_v59 = vpop.permute.xlu1 %1713 }
 0x2e9   : > { %v1728_v16 = vsel %vm5041_vm2, %v4326_v6, %v1714_v59  ;;  %vm5042_vm2 = vcmask 777216  }
 0x2ea   : > { %v1744_v27 = vsel %vm4366_vm5, %v1728_v16, 0.0  ;;  %vm4464_vm5 = vcmp.le.s32.totalorder %v447_v29, 30  ;;  %v5055_v29 = vmov 0  ;;  %v2207_v25 = vld [vmem:[#allocation3 + $0xd8] sm:$0xff] }
 0x2eb   : > { %1752 = vst [vmem:[#allocation3 + $0x138] sm:$0xf] %v1744_v27 }
 0x2ec   : > { %v4410_v43 = vpop.permute.xlu0 %2023  ;;  %v4412_v44 = vpop.permute.xlu1 %1780 }
 0x2ed   : > { %v1794_v35 = vsel %vm5002_vm3, %v1779_v20, %v4412_v44  ;;  %v2182_v58 = vld [vmem:[#allocation3 + $0xd0] sm:$0xff]  ;;  %vm5047_vm3 = vcmask 515072  }
 0x2ee   : > { %v1810_v6 = vsel %vm4050_vm11, %v1794_v35, 0.0  ;;  %2279 = vmatprep.subr.mxu0 %v2182_v58 }
 0x2ef   : > { %v1826_v63 = vrot.slane %v1810_v6, 4  ;;  %2280 = vmatpush1.msra.mxu0 %v2181_v28 }
 0x2f0   : > { %v4423_v52 = vpop.permute.xlu0 %1788  ;;  %3729 = vmatmul.mubr.msk.f32.vlgmr.msra.gmra.mxu0 %vm5001_vm4, %v4419_v60  ;;  %v4427_v1 = vpop.permute.xlu1 %1869  ;;  %vm5046_vm4 = vcmask 523264  }
 0x2f1   : > { %1842 = vst [vmem:[#allocation3 + $0xf0] sm:$0xf0] %v1826_v63  ;;  %v1883_v3 = vsel %vm5042_vm2, %v1868_v22, %v4427_v1  ;;  %2455 = vmatprep.mubr.f32.mxu0 %v3832_v0  ;;  %vm5045_vm2 = vcmask 769024  }
 0x2f2   : > { %1899 = vst [vmem:[#allocation3 + $0x98] sm:$0xf] %v1883_v3 }
 0x2f4   : > { %v4432_v17 = vpop.permute.xlu0 %1877  ;;  %v4434_v20 = vpop.permute.xlu1 %2083 }
 0x2f8   : > { %v2139_v41 = vpop.permute.xlu0 %2138  ;;  %v4442_v8 = vpop.permute.xlu1 %2087 }
 0x2f9   : > { %v2152_v9 = vsel %vm5003_vm9, %v4370_v61, %v2139_v41  ;;  %vm5048_vm9 = vmmov %vm5047_vm3 }
 0x2fa   : > { %v2168_v10 = vsel %vm4438_vm8, %v2152_v9, 0.0 }
 0x2fb   : > { %2176 = vst [vmem:[#allocation3 + $0x40] sm:$0xf] %v2168_v10  ;;  %v2199_v10 = vld [vmem:[#allocation3 + $0x8] sm:$0xff] }
 0x2fc   : > { %v1927_v11 = vpop.permute.xlu0 %1926  ;;  %v4448_v12 = vpop.permute.xlu1 %1644 }
 0x2fd   : > { %v1940_v18 = vsel %vm5045_vm2, %v4381_v5, %v1927_v11  ;;  %vm5049_vm2 = vcmask 1043456  }
 0x2fe   : > { %v1956_v24 = vsel %vm4438_vm8, %v1940_v18, 0.0 }
 0x2ff   : > { %v1972_v13 = vrot.slane %v1956_v24, 4 }
 0x300   : > { %v2016_v15 = vpop.permute.xlu0 %2015  ;;  %v2082_v22 = vpop.permute.xlu1 %2081 }
 0x301   : > { %1988 = vst [vmem:[#allocation3 + $0x98] sm:$0xf0] %v1972_v13  ;;  %v2029_v23 = vsel %vm5046_vm4, %v2014_v55, %v2016_v15  ;;  %v2095_v61 = vsel %vm5047_vm3, %v4282_v45, %v2082_v22  ;;  %v2096_v42 = vsel %vm5048_vm9, %v2082_v22, %v4434_v20  ;;  %v5050_v55 = vmov 0  ;;  %vm5052_vm3 = vmmov %vm5049_vm2  ;;  %v2191_v22 = vld [vmem:[#allocation3 + $0x138] sm:$0xff] }
 0x302   : > { %v2045_v30 = vsel %vm4050_vm11, %v2029_v23, 0.0  ;;  %2111 = vst [vmem:[#allocation3 + $0xa0] sm:$0xf0] %v2095_v61  ;;  %2112 = vst [vmem:[#allocation3 + $0x68] sm:$0xf0] %v2096_v42  ;;  %v5051_v55 = vsel %vm4464_vm5, 4294967295, %v5050_v55 }
 0x303   : > { %v2216_v5 = vld [vmem:[#allocation3 + $0x40] sm:$0xf]  ;;  %2053 = vst [vmem:[#allocation3 + $0xa0] sm:$0xf] %v2045_v30  ;;  %vm5053_vm9 = vcmask 1031168   ;;  %vm5054_vm4 = vcmask 506880  }
 0x304   : > { %3730 = vmatprep.subr.msk.mxu1 %vm5049_vm2, %v2216_v5  ;;  %v4468_v45 = vpop.permute.xlu0 %1715  ;;  %v2141_v34 = vpop.permute.xlu1 %2140  ;;  %vm4480_vm2 = vcmp.le.s32.totalorder %v448_v38, 30 }
 0x305   : > { %3731 = vmatpush1.msk.msra.mxu1 %vm5052_vm3, %v2215_v2  ;;  %v1729_v40 = vsel %vm5053_vm9, %v1714_v59, %v4468_v45  ;;  %v2153_v56 = vsel %vm5054_vm4, %v2139_v41, %v2141_v34  ;;  %v5056_v29 = vsel %vm4480_vm2, 4294967295, %v5055_v29  ;;  %vm5057_vm3 = vmmov %vm5054_vm4  ;;  %vm5058_vm9 = vcmask 769024  }
 0x306   : > { %v1745_v31 = vsel %vm4438_vm8, %v1729_v40, 0.0  ;;  %v2169_v19 = vsel %vm4464_vm5, %v2153_v56, 0.0  ;;  %vm5059_vm4 = vmmov %vm5058_vm9  ;;  %vm4509_vm8 = vcmp.le.s32.totalorder %v449_v33, 30 }
 0x307   : > { %1753 = vst [vmem:[#allocation3 + $0xf0] sm:$0xf] %v1745_v31  ;;  %2177 = vst [vmem:[#allocation3 + $0x28] sm:$0xf] %v2169_v19 }
 0x308   : > { %v2143_v62 = vpop.permute.xlu0 %2142  ;;  %v1929_v16 = vpop.permute.xlu1 %1928  ;;  %v2200_v3 = vld [vmem:[#allocation3 + $0x98] sm:$0xff] }
 0x309   : > { %v2154_v59 = vsel %vm5057_vm3, %v2141_v34, %v2143_v62  ;;  %v1941_v27 = vsel %vm5058_vm9, %v1927_v11, %v1929_v16  ;;  %vm5060_vm3 = vcmask 523264  }
 0x30a   : > { %v2170_v35 = vsel %vm4480_vm2, %v2154_v59, 0.0  ;;  %v1957_v58 = vsel %vm4464_vm5, %v1941_v27, 0.0  ;;  %v2208_v6 = vld [vmem:[#allocation3 + $0xa0] sm:$0xff]  ;;  %vm5061_vm9 = vmmov %vm5060_vm3 }
 0x30b   : > { %2178 = vst [vmem:[#allocation3] sm:$0xf] %v2170_v35  ;;  %v1973_v28 = vrot.slane %v1957_v58, 4  ;;  %2344 = vmatprep.subr.mxu1 %v2208_v6 }
 0x30c   : > { %v4490_v38 = vpop.permute.xlu0 %1930  ;;  %2345 = vmatpush1.msra.mxu1 %v2207_v25  ;;  %v2018_v63 = vpop.permute.xlu1 %2017 }
 0x30d   : > { %1989 = vst [vmem:[#allocation3 + $0xa8] sm:$0xf0] %v1973_v28  ;;  %v1942_v41 = vsel %vm5059_vm4, %v1929_v16, %v4490_v38  ;;  %v2030_v9 = vsel %vm5060_vm3, %v2016_v15, %v2018_v63  ;;  %2346 = vmatprep.subr.mxu1 %v2200_v3  ;;  %vm5062_vm4 = vcmask 785408   ;;  %vm5063_vm3 = vcmask 1043456  }
 0x30e   : > { %v1958_v11 = vsel %vm4480_vm2, %v1942_v41, 0.0  ;;  %v2046_v18 = vsel %vm4070_vm12, %v2030_v9, 0.0  ;;  %2347 = vmatpush1.msra.mxu1 %v2199_v10  ;;  %v2192_v24 = vld [vmem:[#allocation3 + $0xf0] sm:$0xff]  ;;  %v2217_v40 = vld [vmem:[#allocation3 + $0x28] sm:$0xf] }
 0x30f   : > { %v1974_v13 = vrot.slane %v1958_v11, 4  ;;  %2054 = vst [vmem:[#allocation3 + $0x68] sm:$0xf] %v2046_v18  ;;  %2348 = vmatprep.subr.mxu1 %v2192_v24 }
 0x310   : > { %v2020_v23 = vpop.permute.xlu0 %2019  ;;  %2349 = vmatpush1.msra.mxu1 %v2191_v22  ;;  %v1783_v61 = vpop.permute.xlu1 %1782 }
 0x311   : > { %1990 = vst [vmem:[#allocation3 + $0x90] sm:$0xf0] %v1974_v13  ;;  %v2031_v15 = vsel %vm5061_vm9, %v2018_v63, %v2020_v23  ;;  %v1795_v42 = vsel %vm5062_vm4, %v4412_v44, %v1783_v61  ;;  %vm4515_vm9 = vcmp.le.s32.totalorder %v450_v39, 30  ;;  %vm5068_vm4 = vmmov %vm5063_vm3 }
 0x312   : > { %v2047_v30 = vsel %vm4094_vm14, %v2031_v15, 0.0  ;;  %v1811_v5 = vsel %vm4070_vm12, %v1795_v42, 0.0  ;;  %v2218_v2 = vld [vmem:[#allocation3] sm:$0xf] }
 0x313   : > { %2055 = vst [vmem:[#allocation3 + $0x130] sm:$0xf] %v2047_v30  ;;  %v1827_v34 = vrot.slane %v1811_v5, 4  ;;  %3733 = vmatprep.subr.msk.mxu0 %vm5063_vm3, %v2218_v2  ;;  %vm5070_vm3 = vcmask 506880  }
 0x314   : > { %v1785_v31 = vpop.permute.xlu0 %1784  ;;  %3734 = vmatpush1.msk.msra.mxu0 %vm5068_vm4, %v2217_v40  ;;  %v2145_v19 = vpop.permute.xlu1 %2144  ;;  %vm5071_vm6 = vmmov %vm5070_vm3 }
 0x315   : > { %1843 = vst [vmem:[#allocation3 + $0x18] sm:$0xf0] %v1827_v34  ;;  %v1796_v16 = vsel %vm5069_vm7, %v1783_v61, %v1785_v31  ;;  %v2155_v59 = vsel %vm5070_vm3, %v2143_v62, %v2145_v19  ;;  %v2156_v21 = vsel %vm5071_vm6, %v2145_v19, %v4398_v51  ;;  %vm5072_vm7 = vcmask 777216  }
 0x316   : > { %v1812_v33 = vsel %vm4094_vm14, %v1796_v16, 0.0  ;;  %v2171_v26 = vsel %vm4509_vm8, %v2155_v59, 0.0  ;;  %v2172_v39 = vsel %vm4515_vm9, %v2156_v21, 0.0  ;;  %vm5073_vm4 = vmmov %vm5072_vm7  ;;  %vm5074_vm6 = vcmask 1031168  }
 0x317   : > { %v1828_v27 = vrot.slane %v1812_v33, 4  ;;  %2179 = vst [vmem:[#allocation3 + $0xb8] sm:$0xf] %v2171_v26  ;;  %2180 = vst [vmem:[#allocation3 + $0x60] sm:$0xf] %v2172_v39  ;;  %v2183_v39 = vld [vmem:[#allocation3 + $0x10] sm:$0xff] }
 0x318   : > { %v1874_v35 = vpop.permute.xlu0 %1873  ;;  %v1872_v58 = vpop.permute.xlu1 %1871  ;;  %vm5075_vm3 = vmmov %vm5074_vm6 }
 0x319   : > { %1844 = vst [vmem:[#allocation3 + $0xc8] sm:$0xf0] %v1828_v27  ;;  %v1884_v62 = vsel %vm5072_vm7, %v4427_v1, %v1872_v58  ;;  %v1885_v51 = vsel %vm5073_vm4, %v1872_v58, %v1874_v35  ;;  %vm5076_vm7 = vcmask 515072   ;;  %vm5077_vm4 = vcmask 769024  }
 0x31a   : > { %1900 = vst [vmem:[#allocation3 + $0xa8] sm:$0xf] %v1884_v62  ;;  %1901 = vst [vmem:[#allocation3 + $0x90] sm:$0xf] %v1885_v51 }
 0x31c   : > { %v4533_v6 = vpop.permute.xlu0 %1719  ;;  %v1718_v28 = vpop.permute.xlu1 %1717 }
 0x31d   : > { %v1730_v25 = vsel %vm5074_vm6, %v4468_v45, %v1718_v28  ;;  %v1731_v63 = vsel %vm5075_vm3, %v1718_v28, %v4533_v6  ;;  %vm5078_vm6 = vmmov %vm5077_vm4  ;;  %vm5079_vm3 = vcmask 1039360  }
 0x31e   : > { %v1746_v3 = vsel %vm4464_vm5, %v1730_v25, 0.0  ;;  %v1747_v41 = vsel %vm4480_vm2, %v1731_v63, 0.0  ;;  %v2220_v27 = vld [vmem:[#allocation3 + $0x60] sm:$0xf]  ;;  %v2219_v51 = vld [vmem:[#allocation3 + $0xb8] sm:$0xf] }
 0x31f   : > { %1754 = vst [vmem:[#allocation3 + $0x18] sm:$0xf] %v1746_v3  ;;  %1755 = vst [vmem:[#allocation3 + $0xc8] sm:$0xf] %v1747_v41 }
 0x320   : > { %v2090_v1 = vpop.permute.xlu0 %2089  ;;  %v1933_v9 = vpop.permute.xlu1 %1932 }
 0x321   : > { %v2099_v10 = vsel %vm5076_vm7, %v4442_v8, %v2090_v1  ;;  %v1943_v11 = vsel %vm5077_vm4, %v4490_v38, %v1933_v9  ;;  %v1944_v45 = vsel %vm5078_vm6, %v1933_v9, %v4404_v47  ;;  %vm5080_vm7 = vmmov %vm5079_vm3  ;;  %vm5081_vm4 = vcmask 523264  }
 0x322   : > { %2115 = vst [vmem:[#allocation3 + $0xe8] sm:$0xf0] %v2099_v10  ;;  %v1959_v18 = vsel %vm4509_vm8, %v1943_v11, 0.0  ;;  %v1960_v24 = vsel %vm4515_vm9, %v1944_v45, 0.0  ;;  %vm5082_vm6 = vmmov %vm5081_vm4  ;;  %v2201_v11 = vld [vmem:[#allocation3 + $0xa8] sm:$0xff] }
 0x323   : > { %v1975_v13 = vrot.slane %v1959_v18, 4  ;;  %v1976_v22 = vrot.slane %v1960_v24, 4 }
 0x324   : > { %v1643_v61 = vpop.permute.xlu0 %1642  ;;  %v2022_v15 = vpop.permute.xlu1 %2021 }
 0x325   : > { %1991 = vst [vmem:[#allocation3 + $0xe0] sm:$0xf0] %v1975_v13  ;;  %1992 = vst [vmem:[#allocation3 + $0x88] sm:$0xf0] %v1976_v22  ;;  %v1656_v42 = vsel %vm5079_vm3, %v4336_v14, %v1643_v61  ;;  %v1657_v38 = vsel %vm5080_vm7, %v1643_v61, %v4448_v12  ;;  %v2032_v47 = vsel %vm5081_vm4, %v2020_v23, %v2022_v15  ;;  %vm5083_vm3 = vcmask 515072  }
 0x326   : > { %v2033_v30 = vsel %vm5082_vm6, %v2022_v15, %v4410_v43  ;;  %1672 = vst [vmem:[#allocation3 + $0x48] sm:$0xf0] %v1656_v42  ;;  %1673 = vst [vmem:[#allocation3 + $0x120] sm:$0xf0] %v1657_v38  ;;  %v2048_v5 = vsel %vm4082_vm13, %v2032_v47, 0.0  ;;  %vm5085_vm4 = vcmask 785408  }
 0x327   : > { %v2049_v2 = vsel %vm4100_vm15, %v2033_v30, 0.0  ;;  %2056 = vst [vmem:[#allocation3 + $0x50] sm:$0xf] %v2048_v5  ;;  %vm5084_vm7 = vmmov %vm5083_vm3  ;;  %v2194_v24 = vld [vmem:[#allocation3 + $0xc8] sm:$0xff]  ;;  %v2193_v61 = vld [vmem:[#allocation3 + $0x18] sm:$0xff] }
 0x328   : > { %2057 = vst [vmem:[#allocation3 + $0xe8] sm:$0xf] %v2049_v2  ;;  %v2086_v34 = vpop.permute.xlu0 %2085  ;;  %v1787_v14 = vpop.permute.xlu1 %1786  ;;  %vm5086_vm6 = vmmov %vm5085_vm4 }
 0x329   : > { %v2097_v40 = vsel %vm5083_vm3, %v4434_v20, %v2086_v34  ;;  %v2098_v23 = vsel %vm5084_vm7, %v2086_v34, %v4442_v8  ;;  %v1797_v43 = vsel %vm5085_vm4, %v1785_v31, %v1787_v14  ;;  %v1798_v19 = vsel %vm5086_vm6, %v1787_v14, %v4423_v52 }
 0x32a   : > { %2113 = vst [vmem:[#allocation3 + $0x130] sm:$0xf0] %v2097_v40  ;;  %2114 = vst [vmem:[#allocation3 + $0x50] sm:$0xf0] %v2098_v23  ;;  %v1813_v16 = vsel %vm4082_vm13, %v1797_v43, 0.0  ;;  %v1814_v59 = vsel %vm4100_vm15, %v1798_v19, 0.0 }
 0x32b   : > { %v1829_v21 = vrot.slane %v1813_v16, 4  ;;  %v1830_v33 = vrot.slane %v1814_v59, 4  ;;  %vm5087_vm3 = vcmask 777216   ;;  %vm5089_vm4 = vcmask 293888  }
 0x32c   : > { %v1724_v26 = vpop.permute.xlu0 %1723  ;;  %v1876_v20 = vpop.permute.xlu1 %1875  ;;  %vm5088_vm7 = vmmov %vm5087_vm3  ;;  %vm5090_vm6 = vcmask 1043456  }
 0x32d   : > { %1845 = vst [vmem:[#allocation3 + $0x70] sm:$0xf0] %v1829_v21  ;;  %1846 = vst [vmem:[#allocation3 + $0x20] sm:$0xf0] %v1830_v33  ;;  %v1886_v8 = vsel %vm5087_vm3, %v1874_v35, %v1876_v20  ;;  %v1887_v31 = vsel %vm5088_vm7, %v1876_v20, %v4432_v17  ;;  %v2184_v52 = vld [vmem:[#allocation3 + $0x48] sm:$0xff]  ;;  %vm5091_vm3 = vcmask 1039360  }
 0x32e   : > { %1902 = vst [vmem:[#allocation3 + $0xe0] sm:$0xf] %v1886_v8  ;;  %1903 = vst [vmem:[#allocation3 + $0x88] sm:$0xf] %v1887_v31  ;;  %2350 = vmatprep.subr.mxu1 %v2184_v52  ;;  %vm5092_vm7 = vcmask 1031168   ;;  %v2185_v42 = vld [vmem:[#allocation3 + $0x120] sm:$0xff] }
 0x32f   : > { %2351 = vmatpush1.msra.mxu1 %v2183_v39  ;;  %vm5093_vm2 = vmmov %vm5092_vm7  ;;  %v2212_v63 = vld [vmem:[#allocation3 + $0xe8] sm:$0xff] }
 0x330   : > { %v1647_v58 = vpop.permute.xlu0 %1646  ;;  %3732 = vmatmul.mubr.msk.f32.vlgmr.msra.gmra.mxu1 %vm5089_vm4, %v4419_v60  ;;  %3736 = vmatprep.subr.msk.mxu1 %vm5090_vm6, %v2220_v27  ;;  %v1722_v62 = vpop.permute.xlu1 %1721  ;;  %vm5094_vm5 = vmmov %vm5090_vm6 }
 0x331   : > { %v1658_v35 = vsel %vm5091_vm3, %v4448_v12, %v1647_v58  ;;  %v1732_v17 = vsel %vm5092_vm7, %v4533_v6, %v1722_v62  ;;  %v1733_v28 = vsel %vm5093_vm2, %v1722_v62, %v1724_v26  ;;  %3737 = vmatpush1.msk.msra.mxu1 %vm5094_vm5, %v2219_v51  ;;  %v2210_v25 = vld [vmem:[#allocation3 + $0x130] sm:$0xff]  ;;  %2526 = vmatprep.mubr.f32.mxu1 %v3832_v0  ;;  %v2209_v12 = vld [vmem:[#allocation3 + $0x68] sm:$0xff]  ;;  %vm5095_vm5 = vmmov %vm5091_vm3  ;;  %vm2609_vm7 = vcmask 1045508  }
 0x332   : > { %v2211_v3 = vld [vmem:[#allocation3 + $0x50] sm:$0xff]  ;;  %1674 = vst [vmem:[#allocation3 + $0x38] sm:$0xf0] %v1658_v35  ;;  %v1748_v41 = vsel %vm4509_vm8, %v1732_v17, 0.0  ;;  %v1749_v1 = vsel %vm4515_vm9, %v1733_v28, 0.0  ;;  %2415 = vmatprep.subr.mxu0 %v2210_v25  ;;  %2486 = vmatprep.subr.mxu1 %v2212_v63  ;;  %vm5096_vm2 = vmmov %vm5091_vm3  ;;  %vm2608_vm3 = vcmask 1041672  }
 0x333   : > { %1756 = vst [vmem:[#allocation3 + $0x70] sm:$0xf] %v1748_v41  ;;  %1757 = vst [vmem:[#allocation3 + $0x20] sm:$0xf] %v1749_v1  ;;  %2416 = vmatpush1.msra.mxu0 %v2209_v12  ;;  %2487 = vmatpush1.msra.mxu1 %v2211_v3  ;;  %v2202_v6 = vld [vmem:[#allocation3 + $0x90] sm:$0xff] }
 0x334   : > { %v1651_v9 = vpop.permute.xlu0 %1650  ;;  %2417 = vmatprep.subr.mxu0 %v2202_v6  ;;  %v1649_v10 = vpop.permute.xlu1 %1648  ;;  %vm5097_vm6 = vmmov %vm5089_vm4 }
 0x335   : > { %v1659_v45 = vsel %vm5095_vm5, %v1647_v58, %v1649_v10  ;;  %v1660_v18 = vsel %vm5096_vm2, %v1649_v10, %v1651_v9  ;;  %2418 = vmatpush1.msra.mxu0 %v2201_v11  ;;  %v2204_v13 = vld [vmem:[#allocation3 + $0x88] sm:$0xff]  ;;  %v2203_v22 = vld [vmem:[#allocation3 + $0xe0] sm:$0xff]  ;;  %vm2610_vm5 = vmor %vm2609_vm7, %vm2608_vm3  ;;  %vm5098_vm2 = vcmask 269312  }
 0x336   : > { %1675 = vst [vmem:[#allocation3 + $0xf8] sm:$0xf0] %v1659_v45  ;;  %1676 = vst [vmem:[#allocation3 + $0x100] sm:$0xf0] %v1660_v18  ;;  %2419 = vmatprep.subr.mxu0 %v2194_v24  ;;  %2488 = vmatprep.subr.mxu1 %v2204_v13 }
 0x337   : > { %2420 = vmatpush1.msra.mxu0 %v2193_v61  ;;  %2489 = vmatpush1.msra.mxu1 %v2203_v22  ;;  %vm5102_vm7 = vmmov %vm5098_vm2 }
 0x339   : > { %v2186_v15 = vld [vmem:[#allocation3 + $0x38] sm:$0xff] }
 0x33a   : > { %2421 = vmatprep.subr.mxu0 %v2186_v15  ;;  %v2196_v38 = vld [vmem:[#allocation3 + $0x20] sm:$0xff]  ;;  %v2195_v47 = vld [vmem:[#allocation3 + $0x70] sm:$0xff] }
 0x33b   : > { %2422 = vmatpush1.msra.mxu0 %v2185_v42  ;;  %2490 = vmatprep.subr.mxu1 %v2196_v38 }
 0x33c   : > { %3735 = vmatmul.mubr.msk.f32.vlgmr.msra.gmra.mxu0 %vm5089_vm4, %v4419_v60  ;;  %2491 = vmatpush1.msra.mxu1 %v2195_v47  ;;  %vm5099_vm4 = vcmask 1043456  }
 0x33d   : > { %v2188_v30 = vld [vmem:[#allocation3 + $0x100] sm:$0xff]  ;;  %v2187_v5 = vld [vmem:[#allocation3 + $0xf8] sm:$0xff]  ;;  %3373 = vmatprep.mubr.f32.mxu0 %v3832_v0  ;;  %vm5101_vm3 = vmmov %vm5099_vm4 }
 0x33e   : > { %2492 = vmatprep.subr.mxu1 %v2188_v30 }
 0x33f   : > { %2493 = vmatpush1.msra.mxu1 %v2187_v5 }
 0x340   : > { %3738 = vmatmul.mubr.msk.f32.vlgmr.msra.gmra.mxu1 %vm5097_vm6, %v4419_v60  ;;  %vm5100_vm6 = vmmov %vm5098_vm2 }
 0x341   : > { %3444 = vmatprep.mubr.f32.mxu1 %v3832_v0  ;;  %v2537_v2 = vpop.permute.xlu1 %2536  ;;  %v2549_v40 = vpop.permute.xlu0 %2548 }
 0x3b0   : > { %v2315_v34 = vpop.f32.mrf.mxu0 }
 0x3b1   : > { %v2539_v14 = vmul.f32 %v2537_v2, %v2315_v34 }
 0x3b2   : > { %v2317_v23 = vpop.f32.mrf.mxu0 }
 0x3b3   : > { %v2551_v43 = vadd.f32 %v2549_v40, %v2539_v14  ;;  %v2540_v19 = vmul.f32 %v2537_v2, %v2317_v23 }
 0x3b5   : > { %v2552_v16 = vadd.f32 %v2549_v40, %v2540_v19  ;;  %v2559_v59 = vmax.f32 %v2551_v43, 0.0 }
 0x3b7   : > { %v2560_v21 = vmax.f32 %v2552_v16, 0.0 }
 0x3b9   : > { %v2580_v33 = vcombine.low %v2559_v59, %v2560_v21 }
 0x3bb   : > { %2584 = vrot.lane.b32.xlu1 %v2580_v33, %s3835_s27 }
 0x3f0   : > { %v2386_v26 = vpop.f32.mrf.mxu1 }
 0x3f1   : > { %v2541_v20 = vmul.f32 %v2537_v2, %v2386_v26 }
 0x3f2   : > { %v2388_v8 = vpop.f32.mrf.mxu1 }
 0x3f3   : > { %v2553_v31 = vadd.f32 %v2549_v40, %v2541_v20  ;;  %v2542_v60 = vmul.f32 %v2537_v2, %v2388_v8 }
 0x3f5   : > { %v2554_v52 = vadd.f32 %v2549_v40, %v2542_v60  ;;  %v2561_v39 = vmax.f32 %v2553_v31, 0.0 }
 0x3f7   : > { %v2562_v27 = vmax.f32 %v2554_v52, 0.0 }
 0x3f9   : > { %v2581_v58 = vcombine.low %v2561_v39, %v2562_v27 }
 0x3fb   : > { %2586 = vrot.lane.b32.xlu0 %v2581_v58, %s3835_s27 }
 0x3fc   : > { %v2457_v62 = vpop.f32.mrf.mxu0 }
 0x3fd   : > { %v2543_v51 = vmul.f32 %v2537_v2, %v2457_v62 }
 0x3fe   : > { %v2459_v35 = vpop.f32.mrf.mxu0 }
 0x3ff   : > { %v2555_v17 = vadd.f32 %v2549_v40, %v2543_v51  ;;  %v2544_v28 = vmul.f32 %v2537_v2, %v2459_v35 }
 0x400   : > { %v2528_v25 = vpop.f32.mrf.mxu1 }
 0x401   : > { %v2556_v63 = vadd.f32 %v2549_v40, %v2544_v28  ;;  %v2545_v3 = vmul.f32 %v2537_v2, %v2528_v25  ;;  %v2563_v1 = vmax.f32 %v2555_v17, 0.0 }
 0x402   : > { %v2530_v41 = vpop.f32.mrf.mxu1 }
 0x403   : > { %v2564_v12 = vmax.f32 %v2556_v63, 0.0  ;;  %v2557_v6 = vadd.f32 %v2549_v40, %v2545_v3  ;;  %v2546_v9 = vmul.f32 %v2537_v2, %v2530_v41 }
 0x405   : > { %v2558_v10 = vadd.f32 %v2549_v40, %v2546_v9  ;;  %v2582_v11 = vcombine.low %v2563_v1, %v2564_v12  ;;  %v2565_v45 = vmax.f32 %v2557_v6, 0.0 }
 0x407   : > { %v2566_v18 = vmax.f32 %v2558_v10, 0.0  ;;  %2588 = vrot.lane.b32.xlu1 %v2582_v11, %s3835_s27 }
 0x409   : > { %v2583_v24 = vcombine.low %v2565_v45, %v2566_v18 }
 0x40b   : > { %2590 = vrot.lane.b32.xlu0 %v2583_v24, %s3835_s27 }
 0x42d   : > { %v2585_v13 = vpop.permute.xlu1 %2584 }
 0x42e   : > { %v2592_v22 = vrot.slane %v2585_v13, 4 }
 0x430   : > { %v2596_v61 = vsel %vm5098_vm2, %v2592_v22, %v2585_v13  ;;  %vm5104_vm2 = vcmask 263168  }
 0x431   : > { %2611 = vst.msk [vmem:[#allocation2] sm:$0x33] %vm2610_vm5, %v2596_v61  ;;  %vm5103_vm5 = vmmov %vm5101_vm3 }
 0x438   : > { %v3033_v15 = vld [vmem:[#allocation2] sm:$0x33] }
 0x439   : > { %v2945_v42 = vld [vmem:[#allocation2] sm:$0x33]  ;;  %3047 = vrot.lane.b32.xlu0 %v3033_v15, %s3838_s30  ;;  %v3043_v19 = vcombine.high %v3033_v15, %v3033_v15 }
 0x43a   : > { %2959 = vrot.lane.b32.xlu1 %v2945_v42, %s3837_s29  ;;  %v2616_v38 = vld [vmem:[#allocation2] sm:$0x33]  ;;  %v2955_v23 = vcombine.high %v2945_v42, %v2945_v42 }
 0x43b   : > { %v3186_v47 = vld [vmem:[#allocation2] sm:$0x33]  ;;  %v2624_v5 = vcombine.high %v2616_v38, %v2616_v38  ;;  %v2632_v2 = vsel %vm4116_vm0, %v2616_v38, 0.0 }
 0x43c   : > { %v2713_v30 = vld [vmem:[#allocation2] sm:$0x33]  ;;  %2640 = vst [vmem:[#allocation3 + $0xb0] sm:$0x3] %v2632_v2  ;;  %v3196_v59 = vcombine.high %v3186_v47, %v3186_v47 }
 0x43d   : > { %2727 = vrot.lane.b32.xlu0 %v2713_v30, %s3842_s16  ;;  %v2633_v34 = vsel %vm4139_vm1, %v2624_v5, 0.0  ;;  %v2801_v14 = vld [vmem:[#allocation2] sm:$0x33]  ;;  %v2723_v43 = vcombine.high %v2713_v30, %v2713_v30 }
 0x43e   : > { %3200 = vrot.lane.b32.xlu1 %v3186_v47, %s3836_s28  ;;  %2641 = vst [vmem:[#allocation3 + $0xd0] sm:$0x3] %v2633_v34  ;;  %v2889_v40 = vld [vmem:[#allocation2] sm:$0x33]  ;;  %v2811_v16 = vcombine.high %v2801_v14, %v2801_v14 }
 0x43f   : > { %v2899_v21 = vcombine.high %v2889_v40, %v2889_v40  ;;  %v3121_v33 = vld [vmem:[#allocation2] sm:$0x33] }
 0x440   : > { %v2648_v26 = vld [vmem:[#allocation2] sm:$0x33]  ;;  %v3135_v20 = vrot.slane %v3121_v33, 2  ;;  %v3131_v10 = vcombine.high %v3121_v33, %v3121_v33 }
 0x441   : > { %2903 = vrot.lane.b32.xlu0 %v2889_v40, %s3840_s14  ;;  %v2662_v8 = vrot.slane %v2648_v26, 6 }
 0x442   : > { %2815 = vrot.lane.b32.xlu1 %v2801_v14, %s3841_s15  ;;  %v3136_v13 = vrot.slane %v3131_v10, 2 }
 0x445   : > { %2729 = vrot.lane.b32.xlu0 %v2723_v43, %s3842_s16 }
 0x446   : > { %2961 = vrot.lane.b32.xlu1 %v2955_v23, %s3837_s29 }
 0x449   : > { %2817 = vrot.lane.b32.xlu0 %v2811_v16, %s3841_s15 }
 0x44a   : > { %3049 = vrot.lane.b32.xlu1 %v3043_v19, %s3838_s30 }
 0x44d   : > { %2905 = vrot.lane.b32.xlu0 %v2899_v21, %s3840_s14 }
 0x44e   : > { %3202 = vrot.lane.b32.xlu1 %v3196_v59, %s3836_s28 }
 0x451   : > { %2671 = vrot.lane.b32.xlu0 %v2662_v8, %s3843_s18 }
 0x452   : > { %3144 = vrot.lane.b32.xlu1 %v3135_v20, %s3839_s13 }
 0x46d   : > { %v2587_v31 = vpop.permute.xlu0 %2586 }
 0x46e   : > { %v2593_v60 = vrot.slane %v2587_v31, 4 }
 0x470   : > { %v2597_v52 = vsel %vm5099_vm4, %v2592_v22, %v2593_v60  ;;  %vm5105_vm4 = vmmov %vm5100_vm6  ;;  %v2658_v22 = vcombine.high %v2648_v26, %v2648_v26 }
 0x471   : > { %v2598_v39 = vsel %vm5100_vm6, %v2597_v52, %v2587_v31  ;;  %vm5106_vm6 = vcmask 1031168  }
 0x472   : > { %2612 = vst [vmem:[#allocation2 + $0x8] sm:$0x33] %v2598_v39  ;;  %v2663_v15 = vrot.slane %v2658_v22, 6 }
 0x479   : > { %v2589_v27 = vpop.permute.xlu1 %2588  ;;  %v2714_v58 = vld [vmem:[#allocation2 + $0x8] sm:$0x33] }
 0x47a   : > { %v2946_v62 = vld [vmem:[#allocation2 + $0x8] sm:$0x33]  ;;  %v2594_v51 = vrot.slane %v2589_v27, 4  ;;  %2731 = vrot.lane.b32.xlu1 %v2714_v58, %s3842_s16  ;;  %v2724_v42 = vcombine.high %v2714_v58, %v2714_v58 }
 0x47b   : > { %2963 = vrot.lane.b32.xlu0 %v2946_v62, %s3837_s29  ;;  %v2617_v17 = vld [vmem:[#allocation2 + $0x8] sm:$0x33]  ;;  %v2956_v24 = vcombine.high %v2946_v62, %v2946_v62 }
 0x47c   : > { %v2599_v35 = vsel %vm5101_vm3, %v2593_v60, %v2594_v51  ;;  %v2802_v63 = vld [vmem:[#allocation2 + $0x8] sm:$0x33]  ;;  %v2625_v41 = vcombine.high %v2617_v17, %v2617_v17  ;;  %v2634_v12 = vsel %vm4040_vm10, %v2617_v17, 0.0  ;;  %vm5107_vm3 = vcmask 769024  }
 0x47d   : > { %v2600_v28 = vsel %vm5102_vm7, %v2599_v35, %v2589_v27  ;;  %v2591_v25 = vpop.permute.xlu0 %2590  ;;  %v3034_v3 = vld [vmem:[#allocation2 + $0x8] sm:$0x33]  ;;  %2642 = vst [vmem:[#allocation3 + $0x10] sm:$0x3] %v2634_v12  ;;  %v2812_v14 = vcombine.high %v2802_v63, %v2802_v63  ;;  %vm5108_vm7 = vnez %v5033_v48 }
 0x47e   : > { %2613 = vst [vmem:[#allocation2 + $0x10] sm:$0x33] %v2600_v28  ;;  %v2595_v1 = vrot.slane %v2591_v25, 4  ;;  %2819 = vrot.lane.b32.xlu1 %v2802_v63, %s3841_s15  ;;  %v2635_v6 = vsel %vm4050_vm11, %v2625_v41, 0.0  ;;  %v2890_v45 = vld [vmem:[#allocation2 + $0x8] sm:$0x33]  ;;  %v3044_v61 = vcombine.high %v3034_v3, %v3034_v3 }
 0x47f   : > { %3051 = vrot.lane.b32.xlu0 %v3034_v3, %s3838_s30  ;;  %2643 = vst [vmem:[#allocation3 + $0x48] sm:$0x3] %v2635_v6  ;;  %v3187_v18 = vld [vmem:[#allocation2 + $0x8] sm:$0x33]  ;;  %v2900_v21 = vcombine.high %v2890_v45, %v2890_v45 }
 0x480   : > { %v2601_v9 = vsel %vm5103_vm5, %v2594_v51, %v2595_v1  ;;  %2615 = vst.msk [vmem:[#allocation2 + $0x20] sm:$0x3] %vm5104_vm2, %v2595_v1  ;;  %v3197_v38 = vcombine.high %v3187_v18, %v3187_v18  ;;  %v3122_v47 = vld [vmem:[#allocation2 + $0x8] sm:$0x33]  ;;  %vm5109_vm5 = vcmask 785408   ;;  %vm5110_vm2 = vcmask 523264  }
 0x481   : > { %v2602_v11 = vsel %vm5105_vm4, %v2601_v9, %v2591_v25  ;;  %v3137_v40 = vrot.slane %v3122_v47, 2  ;;  %v2649_v19 = vld [vmem:[#allocation2 + $0x8] sm:$0x33]  ;;  %v3132_v26 = vcombine.high %v3122_v47, %v3122_v47  ;;  %vm5111_vm4 = vcmask 777216  }
 0x482   : > { %2614 = vst [vmem:[#allocation2 + $0x18] sm:$0x33] %v2602_v11  ;;  %2907 = vrot.lane.b32.xlu1 %v2890_v45, %s3840_s14  ;;  %v2664_v33 = vrot.slane %v2649_v19, 6  ;;  %v2659_v8 = vcombine.high %v2649_v19, %v2649_v19 }
 0x483   : > { %3204 = vrot.lane.b32.xlu0 %v3187_v18, %s3836_s28  ;;  %v3138_v20 = vrot.slane %v3132_v26, 2 }
 0x484   : > { %v2665_v60 = vrot.slane %v2659_v8, 6 }
 0x485   : > { %v2618_v30 = vld [vmem:[#allocation2 + $0x10] sm:$0x33] }
 0x486   : > { %2965 = vrot.lane.b32.xlu1 %v2956_v24, %s3837_s29  ;;  %v2626_v5 = vcombine.high %v2618_v30, %v2618_v30  ;;  %v2636_v2 = vsel %vm4070_vm12, %v2618_v30, 0.0  ;;  %v2715_v31 = vld [vmem:[#allocation2 + $0x10] sm:$0x33] }
 0x487   : > { %3146 = vrot.lane.b32.xlu0 %v3136_v13, %s3839_s13  ;;  %2644 = vst [vmem:[#allocation3 + $0x120] sm:$0x3] %v2636_v2  ;;  %v2803_v52 = vld [vmem:[#allocation2 + $0x10] sm:$0x33]  ;;  %v2949_v41 = vld [vmem:[#allocation2 + $0x20] sm:$0x3]  ;;  %v2725_v22 = vcombine.high %v2715_v31, %v2715_v31 }
 0x488   : > { %v2637_v16 = vsel %vm4094_vm14, %v2626_v5, 0.0  ;;  %v2947_v39 = vld [vmem:[#allocation2 + $0x10] sm:$0x33]  ;;  %v3037_v9 = vld [vmem:[#allocation2 + $0x20] sm:$0x3] }
 0x489   : > { %v2619_v34 = vld [vmem:[#allocation2 + $0x18] sm:$0x33]  ;;  %2645 = vst [vmem:[#allocation3 + $0x38] sm:$0x3] %v2637_v16  ;;  %v4662_v27 = vld [vmem:[#allocation2 + $0x10] sm:$0x33]  ;;  %v2957_v3 = vcombine.high %v2947_v39, %v2947_v39 }
 0x48a   : > { %3053 = vrot.lane.b32.xlu1 %v3044_v61, %s3838_s30  ;;  %v2627_v23 = vcombine.high %v2619_v34, %v2619_v34  ;;  %v2638_v43 = vsel %vm4082_vm13, %v2619_v34, 0.0  ;;  %v4664_v58 = vld [vmem:[#allocation2 + $0x10] sm:$0x33]  ;;  %v3190_v18 = vld [vmem:[#allocation2 + $0x20] sm:$0x3] }
 0x48b   : > { %2673 = vrot.lane.b32.xlu0 %v2663_v15, %s3843_s18  ;;  %2646 = vst [vmem:[#allocation3 + $0xf8] sm:$0x3] %v2638_v43  ;;  %v3139_v62 = vrot.slane %v4664_v58, 2  ;;  %v3035_v51 = vld [vmem:[#allocation2 + $0x10] sm:$0x33] }
 0x48c   : > { %v2639_v59 = vsel %vm4100_vm15, %v2627_v23, 0.0  ;;  %v4670_v35 = vld [vmem:[#allocation2 + $0x10] sm:$0x33]  ;;  %v3045_v6 = vcombine.high %v3035_v51, %v3035_v51  ;;  %v2717_v47 = vld [vmem:[#allocation2 + $0x20] sm:$0x3] }
 0x48d   : > { %2647 = vst [vmem:[#allocation3 + $0x100] sm:$0x3] %v2639_v59  ;;  %v2666_v17 = vrot.slane %v4670_v35, 6  ;;  %v3188_v28 = vld [vmem:[#allocation2 + $0x10] sm:$0x33] }
 0x48e   : > { %3206 = vrot.lane.b32.xlu1 %v3197_v38, %s3836_s28  ;;  %v3198_v45 = vcombine.high %v3188_v28, %v3188_v28  ;;  %v2805_v16 = vld [vmem:[#allocation2 + $0x20] sm:$0x3] }
 0x48f   : > { %2733 = vrot.lane.b32.xlu0 %v2724_v42, %s3842_s16 }
 0x492   : > { %3148 = vrot.lane.b32.xlu1 %v3137_v40, %s3839_s13 }
 0x493   : > { %2821 = vrot.lane.b32.xlu0 %v2812_v14, %s3841_s15  ;;  %v2813_v14 = vcombine.high %v2803_v52, %v2803_v52 }
 0x496   : > { %2675 = vrot.lane.b32.xlu1 %v2664_v33, %s3843_s18 }
 0x497   : > { %2909 = vrot.lane.b32.xlu0 %v2900_v21, %s3840_s14 }
 0x49a   : > { %2735 = vrot.lane.b32.xlu1 %v2715_v31, %s3842_s16  ;;  %v3133_v31 = vcombine.high %v4664_v58, %v4664_v58 }
 0x49b   : > { %3150 = vrot.lane.b32.xlu0 %v3138_v20, %s3839_s13  ;;  %v2901_v20 = vcombine.high %v4662_v27, %v4662_v27 }
 0x49e   : > { %2823 = vrot.lane.b32.xlu1 %v2803_v52, %s3841_s15  ;;  %v2893_v52 = vld [vmem:[#allocation2 + $0x20] sm:$0x3] }
 0x49f   : > { %2677 = vrot.lane.b32.xlu0 %v2665_v60, %s3843_s18 }
 0x4a2   : > { %2911 = vrot.lane.b32.xlu1 %v4662_v27, %s3840_s14  ;;  %v2660_v27 = vcombine.high %v4670_v35, %v4670_v35 }
 0x4a3   : > { %2967 = vrot.lane.b32.xlu0 %v2947_v39, %s3837_s29  ;;  %v3140_v39 = vrot.slane %v3133_v31, 2 }
 0x4a4   : > { %v2667_v58 = vrot.slane %v2660_v27, 6 }
 0x4a6   : > { %3152 = vrot.lane.b32.xlu1 %v3139_v62, %s3839_s13  ;;  %v2948_v62 = vld [vmem:[#allocation2 + $0x18] sm:$0x33] }
 0x4a7   : > { %3055 = vrot.lane.b32.xlu0 %v3035_v51, %s3838_s30  ;;  %v3036_v51 = vld [vmem:[#allocation2 + $0x18] sm:$0x33]  ;;  %v2958_v48 = vcombine.high %v2948_v62, %v2948_v62 }
 0x4aa   : > { %2679 = vrot.lane.b32.xlu1 %v2666_v17, %s3843_s18  ;;  %v3189_v17 = vld [vmem:[#allocation2 + $0x18] sm:$0x33] }
 0x4ab   : > { %3208 = vrot.lane.b32.xlu0 %v3188_v28, %s3836_s28  ;;  %v3048_v25 = vpop.permute.xlu0 %3047  ;;  %v3046_v28 = vcombine.high %v3036_v51, %v3036_v51  ;;  %v3199_v35 = vcombine.high %v3189_v17, %v3189_v17 }
 0x4ac   : > { %v2960_v63 = vpop.permute.xlu1 %2959 }
 0x4ae   : > { %2969 = vrot.lane.b32.xlu1 %v2957_v3, %s3837_s29 }
 0x4af   : > { %2975 = vrot.lane.b32.xlu0 %v2949_v41, %s3837_s29  ;;  %v2728_v1 = vpop.permute.xlu0 %2727  ;;  %v2892_v41 = vld [vmem:[#allocation2 + $0x18] sm:$0x33] }
 0x4b0   : > { %v3201_v12 = vpop.permute.xlu1 %3200 }
 0x4b2   : > { %3057 = vrot.lane.b32.xlu1 %v3045_v6, %s3838_s30 }
 0x4b3   : > { %3063 = vrot.lane.b32.xlu0 %v3037_v9, %s3838_s30  ;;  %v2904_v10 = vpop.permute.xlu0 %2903  ;;  %v3124_v9 = vld [vmem:[#allocation2 + $0x18] sm:$0x33] }
 0x4b4   : > { %v2816_v11 = vpop.permute.xlu1 %2815 }
 0x4b6   : > { %3210 = vrot.lane.b32.xlu1 %v3198_v45, %s3836_s28  ;;  %v3134_v45 = vcombine.high %v3124_v9, %v3124_v9 }
 0x4b7   : > { %3216 = vrot.lane.b32.xlu0 %v3190_v18, %s3836_s28  ;;  %v4683_v24 = vpop.permute.xlu0 %2729  ;;  %v2651_v18 = vld [vmem:[#allocation2 + $0x18] sm:$0x33] }
 0x4b8   : > { %v4685_v13 = vpop.permute.xlu1 %2961  ;;  %v2745_v61 = vsel %vm5106_vm6, %v2728_v1, %v4683_v24  ;;  %v3125_v1 = vld [vmem:[#allocation2 + $0x20] sm:$0x3]  ;;  %vm5113_vm6 = vmmov %vm5107_vm3 }
 0x4b9   : > { %v2977_v15 = vsel %vm5107_vm3, %v2960_v63, %v4685_v13  ;;  %v2761_v42 = vsel %vm5108_vm7, %v2745_v61, 0.0  ;;  %v2804_v63 = vld [vmem:[#allocation2 + $0x18] sm:$0x33]  ;;  %v3143_v6 = vrot.slane %v3125_v1, 2  ;;  %v3142_v61 = vrot.slane %v3134_v45, 2 }
 0x4ba   : > { %v2993_v38 = vsel %vm5108_vm7, %v2977_v15, 0.0  ;;  %v2777_v30 = vrot.slane %v2761_v42, 4  ;;  %2737 = vrot.lane.b32.xlu1 %v2725_v22, %s3842_s16  ;;  %v2668_v22 = vrot.slane %v2651_v18, 6  ;;  %v2661_v15 = vcombine.high %v2651_v18, %v2651_v18  ;;  %v2652_v42 = vld [vmem:[#allocation2 + $0x20] sm:$0x3] }
 0x4bb   : > { %v3009_v5 = vrot.slane %v2993_v38, 6  ;;  %2743 = vrot.lane.b32.xlu0 %v2717_v47, %s3842_s16  ;;  %v4697_v2 = vpop.permute.xlu0 %2817  ;;  %vm5114_vm3 = vcmask 1031168  }
 0x4bc   : > { %v4699_v34 = vpop.permute.xlu1 %3049  ;;  %2793 = vst [vmem:[#allocation3 + $0xb0] sm:$0x30] %v2777_v30  ;;  %v2833_v40 = vsel %vm5109_vm5, %v2816_v11, %v4697_v2  ;;  %v3141_v11 = vrot.slane %v3124_v9, 2  ;;  %v2670_v30 = vrot.slane %v2652_v42, 6  ;;  %vm5116_vm5 = vmmov %vm5110_vm2 }
 0x4bd   : > { %3025 = vst [vmem:[#allocation3 + $0x80] sm:$0xc] %v3009_v5  ;;  %v3065_v23 = vsel %vm5110_vm2, %v3048_v25, %v4699_v34  ;;  %v2849_v43 = vsel %vm4116_vm0, %v2833_v40, 0.0  ;;  %v2716_v25 = vld [vmem:[#allocation2 + $0x18] sm:$0x33]  ;;  %v2669_v5 = vrot.slane %v2661_v15, 6 }
 0x4be   : > { %v3081_v19 = vsel %vm4116_vm0, %v3065_v23, 0.0  ;;  %v2865_v59 = vrot.slane %v2849_v43, 2  ;;  %2825 = vrot.lane.b32.xlu1 %v2813_v14, %s3841_s15  ;;  %vm5112_vm0 = vcmask 506880   ;;  %v2726_v3 = vcombine.high %v2716_v25, %v2716_v25  ;;  %v3274_v14 = vld [vmem:[%s4990_s11] sm:$0xf] }
 0x4bf   : > { %v3097_v21 = vrot.slane %v3081_v19, 4  ;;  %2831 = vrot.lane.b32.xlu0 %v2805_v16, %s3841_s15  ;;  %v4711_v33 = vpop.permute.xlu0 %2905  ;;  %vm5117_vm2 = vcmask 785408  }
 0x4c0   : > { %v4713_v26 = vpop.permute.xlu1 %3202  ;;  %2881 = vst [vmem:[#allocation3 + $0xb0] sm:$0xc0] %v2865_v59  ;;  %v2921_v57 = vsel %vm5111_vm4, %v2904_v10, %v4711_v33  ;;  %v2902_v10 = vcombine.high %v2892_v41, %v2892_v41  ;;  %vm5118_vm4 = vmmov %vm5112_vm0 }
 0x4c1   : > { %3113 = vst [vmem:[#allocation3 + $0x80] sm:$0x30] %v3097_v21  ;;  %v3218_v8 = vsel %vm5112_vm0, %v3201_v12, %v4713_v26  ;;  %2937 = vst [vmem:[#allocation3 + $0x80] sm:$0x3] %v2921_v57  ;;  %v2814_v12 = vcombine.high %v2804_v63, %v2804_v63  ;;  %vm5119_vm0 = vcmask 777216  }
 0x4c2   : > { %v3234_v60 = vsel %vm5108_vm7, %v3218_v8, 0.0  ;;  %2913 = vrot.lane.b32.xlu1 %v2901_v20, %s3840_s14  ;;  %vm5115_vm7 = vnez %v5035_v49 }
 0x4c3   : > { %3242 = vst [vmem:[#allocation3 + $0x128] sm:$0x3] %v3234_v60  ;;  %2919 = vrot.lane.b32.xlu0 %v2893_v52, %s3840_s14  ;;  %v2672_v38 = vpop.permute.xlu0 %2671 }
 0x4c4   : > { %v3145_v47 = vpop.permute.xlu1 %3144 }
 0x4c6   : > { %3154 = vrot.lane.b32.xlu1 %v3140_v39, %s3839_s13 }
 0x4c7   : > { %2971 = vrot.lane.b32.xlu0 %v2948_v62, %s3837_s29 }
 0x4ca   : > { %2681 = vrot.lane.b32.xlu1 %v2667_v58, %s3843_s18  ;;  %v3266_v1 = vld [vmem:[#allocation3 + $0x128] sm:$0x3] }
 0x4cb   : > { %3059 = vrot.lane.b32.xlu0 %v3036_v51, %s3838_s30 }
 0x4ce   : > { %2973 = vrot.lane.b32.xlu1 %v2958_v48, %s3837_s29 }
 0x4cf   : > { %3212 = vrot.lane.b32.xlu0 %v3189_v17, %s3836_s28 }
 0x4d2   : > { %3061 = vrot.lane.b32.xlu1 %v3046_v28, %s3838_s30 }
 0x4d3   : > { %2739 = vrot.lane.b32.xlu0 %v2716_v25, %s3842_s16 }
 0x4d6   : > { %3214 = vrot.lane.b32.xlu1 %v3199_v35, %s3836_s28 }
 0x4d7   : > { %2827 = vrot.lane.b32.xlu0 %v2804_v63, %s3841_s15 }
 0x4da   : > { %2741 = vrot.lane.b32.xlu1 %v2726_v3, %s3842_s16 }
 0x4db   : > { %2915 = vrot.lane.b32.xlu0 %v2892_v41, %s3840_s14 }
 0x4de   : > { %2829 = vrot.lane.b32.xlu1 %v2814_v12, %s3841_s15 }
 0x4df   : > { %3160 = vrot.lane.b32.xlu0 %v3143_v6, %s3839_s13 }
 0x4e2   : > { %2917 = vrot.lane.b32.xlu1 %v2902_v10, %s3840_s14 }
 0x4e3   : > { %3156 = vrot.lane.b32.xlu0 %v3141_v11, %s3839_s13 }
 0x4e6   : > { %3158 = vrot.lane.b32.xlu1 %v3142_v61, %s3839_s13  ;;  %s433_s13 = scalar_lea.vmem %s4991_s12, %s3753_s17 }
 0x4e7   : > { %2683 = vrot.lane.b32.xlu0 %v2668_v22, %s3843_s18 }
 0x4ea   : > { %2685 = vrot.lane.b32.xlu1 %v2669_v5, %s3843_s18 }
 0x4eb   : > { %2687 = vrot.lane.b32.xlu0 %v2670_v30, %s3843_s18 }
 0x4ec   : > { %v2732_v23 = vpop.permute.xlu1 %2731 }
 0x4ed   : > { %v2964_v40 = vpop.permute.xlu0 %2963  ;;  %v2746_v19 = vsel %vm5114_vm3, %v4683_v24, %v2732_v23  ;;  %vm5121_vm3 = vnez %v5037_v36 }
 0x4ee   : > { %v2978_v43 = vsel %vm5113_vm6, %v4685_v13, %v2964_v40  ;;  %v2762_v59 = vsel %vm5115_vm7, %v2746_v19, 0.0  ;;  %3277 = vperm.xlu1 %3780, %v3274_v14  }
 0x4ef   : > { %v2994_v16 = vsel %vm5115_vm7, %v2978_v43, 0.0  ;;  %v2778_v20 = vrot.slane %v2762_v59, 4 }
 0x4f0   : > { %v3010_v21 = vrot.slane %v2994_v16, 6  ;;  %v2820_v8 = vpop.permute.xlu1 %2819 }
 0x4f1   : > { %v3052_v57 = vpop.permute.xlu0 %3051  ;;  %2794 = vst [vmem:[#allocation3 + $0xd0] sm:$0x30] %v2778_v20  ;;  %v2834_v13 = vsel %vm5117_vm2, %v4697_v2, %v2820_v8  ;;  %vm5123_vm2 = vcmask 523264  }
 0x4f2   : > { %3026 = vst [vmem:[#allocation3 + $0x108] sm:$0xc] %v3010_v21  ;;  %v3066_v31 = vsel %vm5116_vm5, %v4699_v34, %v3052_v57  ;;  %v2850_v60 = vsel %vm4139_vm1, %v2834_v13, 0.0  ;;  %vm3284_vm5 = vcmask 1041408  }
 0x4f3   : > { %v3082_v24 = vsel %vm4139_vm1, %v3066_v31, 0.0  ;;  %v2866_v39 = vrot.slane %v2850_v60, 2  ;;  %vm5120_vm1 = vcmask 515072  }
 0x4f4   : > { %v3098_v52 = vrot.slane %v3082_v24, 4  ;;  %v2908_v62 = vpop.permute.xlu1 %2907  ;;  %v4820_v24 = vld [vmem:[%s4989_s10] sm:$0xf] }
 0x4f5   : > { %v3205_v27 = vpop.permute.xlu0 %3204  ;;  %2882 = vst [vmem:[#allocation3 + $0xd0] sm:$0xc0] %v2866_v39  ;;  %v2922_v34 = vsel %vm5119_vm0, %v4711_v33, %v2908_v62  ;;  %vm5125_vm0 = vcmask 506880  }
 0x4f6   : > { %3114 = vst [vmem:[#allocation3 + $0x108] sm:$0x30] %v3098_v52  ;;  %v3219_v58 = vsel %vm5118_vm4, %v4713_v26, %v3205_v27  ;;  %2938 = vst [vmem:[#allocation3 + $0x108] sm:$0x3] %v2922_v34  ;;  %vm5124_vm4 = vcmask 1031168  }
 0x4f7   : > { %v3235_v2 = vsel %vm5115_vm7, %v3219_v58, 0.0  ;;  %vm5122_vm7 = vcmask 1039360  }
 0x4f8   : > { %3243 = vst [vmem:[#allocation3 + $0x110] sm:$0x3] %v3235_v2  ;;  %v4774_v4 = vpop.permute.xlu1 %2965 }
 0x4f9   : > { %v3147_v51 = vpop.permute.xlu0 %3146  ;;  %v2979_v17 = vsel %vm5113_vm6, %v2964_v40, %v4774_v4  ;;  %vm5127_vm6 = vcmask 515072  }
 0x4fa   : > { %v3162_v48 = vsel %vm5120_vm1, %v3145_v47, %v3147_v51  ;;  %v2995_v26 = vsel %vm5121_vm3, %v2979_v17, 0.0  ;;  %vm5126_vm1 = vcmask 785408  }
 0x4fb   : > { %3178 = vst [vmem:[#allocation3 + $0x80] sm:$0xc0] %v3162_v48  ;;  %v3011_v28 = vrot.slane %v2995_v26, 6 }
 0x4fc   : > { %v4781_v33 = vpop.permute.xlu1 %3053 }
 0x4fd   : > { %v2674_v25 = vpop.permute.xlu0 %2673  ;;  %3027 = vst [vmem:[#allocation3 + $0x138] sm:$0xc] %v3011_v28  ;;  %v3067_v35 = vsel %vm5123_vm2, %v3052_v57, %v4781_v33  ;;  %vm5130_vm2 = vmmov %vm5127_vm6 }
 0x4fe   : > { %v2689_v49 = vsel %vm5122_vm7, %v2672_v38, %v2674_v25  ;;  %v3083_v63 = vsel %vm4040_vm10, %v3067_v35, 0.0  ;;  %vm5128_vm7 = vcmask 777216  }
 0x4ff   : > { %2705 = vst [vmem:[#allocation3 + $0xb0] sm:$0xc] %v2689_v49  ;;  %v3267_v3 = vld [vmem:[#allocation3 + $0x110] sm:$0x3]  ;;  %v3099_v41 = vrot.slane %v3083_v63, 4 }
 0x500   : > { %3739 = vmatprep.subr.msk.mxu0 %vm3284_vm5, %v3267_v3  ;;  %v4790_v6 = vpop.permute.xlu1 %3206 }
 0x501   : > { %v2734_v12 = vpop.permute.xlu0 %2733  ;;  %3740 = vmatpush1.msk.msra.mxu0 %vm3284_vm5, %v3266_v1  ;;  %3115 = vst [vmem:[#allocation3 + $0x138] sm:$0x30] %v3099_v41  ;;  %v3220_v10 = vsel %vm5125_vm0, %v3205_v27, %v4790_v6 }
 0x502   : > { %v2747_v9 = vsel %vm5124_vm4, %v2732_v23, %v2734_v12  ;;  %v3236_v45 = vsel %vm5121_vm3, %v3220_v10, 0.0  ;;  %v3258_v59 = vld [vmem:[#allocation3 + $0x80] sm:$0xff] }
 0x503   : > { %v2763_v11 = vsel %vm5121_vm3, %v2747_v9, 0.0  ;;  %3244 = vst [vmem:[#allocation3 + $0x8] sm:$0x3] %v3236_v45  ;;  %vm5129_vm3 = vcmask 1039360  }
 0x504   : > { %v2779_v18 = vrot.slane %v2763_v11, 4  ;;  %v3149_v61 = vpop.permute.xlu1 %3148  ;;  %vm5132_vm0 = vmmov %vm5129_vm3 }
 0x505   : > { %v2822_v22 = vpop.permute.xlu0 %2821  ;;  %v3163_v42 = vsel %vm5127_vm6, %v3147_v51, %v3149_v61  ;;  %vm3280_vm6 = vcmask 146432  }
 0x506   : > { %2795 = vst [vmem:[#allocation3 + $0x10] sm:$0x30] %v2779_v18  ;;  %v2835_v15 = vsel %vm5126_vm1, %v2820_v8, %v2822_v22  ;;  %3179 = vst [vmem:[#allocation3 + $0x108] sm:$0xc0] %v3163_v42  ;;  %v3250_v52 = vld [vmem:[#allocation3 + $0xb0] sm:$0xff] }
 0x507   : > { %v2851_v38 = vsel %vm4040_vm10, %v2835_v15, 0.0  ;;  %vm5131_vm10 = vnez %v5044_v7 }
 0x508   : > { %v2867_v47 = vrot.slane %v2851_v38, 2  ;;  %v2676_v5 = vpop.permute.xlu1 %2675 }
 0x509   : > { %v2910_v30 = vpop.permute.xlu0 %2909  ;;  %v2690_v14 = vsel %vm5129_vm3, %v2674_v25, %v2676_v5  ;;  %vm5134_vm3 = vcmask 777216  }
 0x50a   : > { %2883 = vst [vmem:[#allocation3 + $0x10] sm:$0xc0] %v2867_v47  ;;  %v2923_v36 = vsel %vm5128_vm7, %v2908_v62, %v2910_v30  ;;  %2706 = vst [vmem:[#allocation3 + $0xd0] sm:$0xc] %v2690_v14  ;;  %vm5133_vm7 = vcmask 769024  }
 0x50b   : > { %2939 = vst [vmem:[#allocation3 + $0x138] sm:$0x3] %v2923_v36 }
 0x50c   : > { %v4805_v23 = vpop.permute.xlu1 %2735 }
 0x50d   : > { %v3151_v40 = vpop.permute.xlu0 %3150  ;;  %v2748_v32 = vsel %vm5124_vm4, %v2734_v12, %v4805_v23  ;;  %v3259_v19 = vld [vmem:[#allocation3 + $0x108] sm:$0xff]  ;;  %vm5136_vm4 = vcmask 515072  }
 0x50e   : > { %v3164_v43 = vsel %vm5130_vm2, %v3149_v61, %v3151_v40  ;;  %v2764_v16 = vsel %vm5131_vm10, %v2748_v32, 0.0  ;;  %3337 = vmatprep.subr.mxu0 %v3259_v19  ;;  %vm5135_vm2 = vcmask 523264  }
 0x50f   : > { %3180 = vst [vmem:[#allocation3 + $0x138] sm:$0xc0] %v3164_v43  ;;  %v2780_v21 = vrot.slane %v2764_v16, 4  ;;  %3338 = vmatpush1.msra.mxu0 %v3258_v59 }
 0x510   : > { %v4812_v57 = vpop.permute.xlu1 %2823 }
 0x511   : > { %v2678_v20 = vpop.permute.xlu0 %2677  ;;  %2796 = vst [vmem:[#allocation3 + $0x48] sm:$0x30] %v2780_v21  ;;  %v2836_v31 = vsel %vm5126_vm1, %v2822_v22, %v4812_v57  ;;  %v3251_v13 = vld [vmem:[#allocation3 + $0xd0] sm:$0xff]  ;;  %vm5138_vm1 = vcmask 1039360   ;;  %v3268_v22 = vld [vmem:[#allocation3 + $0x8] sm:$0x3] }
 0x512   : > { %v2691_v8 = vsel %vm5132_vm0, %v2676_v5, %v2678_v20  ;;  %v2852_v60 = vsel %vm4050_vm11, %v2836_v31, 0.0  ;;  %3339 = vmatprep.subr.mxu0 %v3251_v13  ;;  %vm5137_vm0 = vcmask 506880  }
 0x513   : > { %2707 = vst [vmem:[#allocation3 + $0x10] sm:$0xc] %v2691_v8  ;;  %v2868_v39 = vrot.slane %v2852_v60, 2  ;;  %3340 = vmatpush1.msra.mxu0 %v3250_v52 }
 0x514   : > { %3741 = vmatmul.mubr.msk.f32.vlgmr.msra.gmra.mxu0 %vm3280_vm6, %v4820_v24  ;;  %v4826_v62 = vpop.permute.xlu1 %2911 }
 0x515   : > { %v2968_v27 = vpop.permute.xlu0 %2967  ;;  %2884 = vst [vmem:[#allocation3 + $0x48] sm:$0xc0] %v2868_v39  ;;  %v2924_v34 = vsel %vm5134_vm3, %v2910_v30, %v4826_v62  ;;  %3515 = vmatprep.mubr.f32.mxu0 %v3832_v0  ;;  %vm5141_vm3 = vmmov %vm5135_vm2 }
 0x516   : > { %v2980_v58 = vsel %vm5133_vm7, %v4774_v4, %v2968_v27  ;;  %2940 = vst [vmem:[#allocation3 + $0xf0] sm:$0x3] %v2924_v34  ;;  %v3260_v47 = vld [vmem:[#allocation3 + $0x138] sm:$0xff] }
 0x517   : > { %v2996_v2 = vsel %vm5131_vm10, %v2980_v58, 0.0 }
 0x518   : > { %v3012_v51 = vrot.slane %v2996_v2, 6  ;;  %v4835_v17 = vpop.permute.xlu1 %3152 }
 0x519   : > { %v3056_v48 = vpop.permute.xlu0 %3055  ;;  %v3165_v4 = vsel %vm5136_vm4, %v3151_v40, %v4835_v17  ;;  %vm5144_vm4 = vcmask 785408  }
 0x51a   : > { %3028 = vst [vmem:[#allocation3 + $0xf0] sm:$0xc] %v3012_v51  ;;  %v3068_v26 = vsel %vm5135_vm2, %v4781_v33, %v3056_v48  ;;  %3181 = vst [vmem:[#allocation3 + $0xf0] sm:$0xc0] %v3165_v4  ;;  %v3252_v36 = vld [vmem:[#allocation3 + $0x10] sm:$0xff]  ;;  %vm5143_vm2 = vcmask 1031168  }
 0x51b   : > { %v3084_v28 = vsel %vm4050_vm11, %v3068_v26, 0.0  ;;  %vm5139_vm11 = vmmov %vm5133_vm7  ;;  %vm5140_vm7 = vnez %v5051_v55 }
 0x51c   : > { %v3100_v25 = vrot.slane %v3084_v28, 4  ;;  %v4843_v35 = vpop.permute.xlu1 %2679 }
 0x51d   : > { %v3209_v49 = vpop.permute.xlu0 %3208  ;;  %v2692_v3 = vsel %vm5138_vm1, %v2678_v20, %v4843_v35  ;;  %vm5146_vm1 = vmmov %vm5139_vm11 }
 0x51e   : > { %3116 = vst [vmem:[#allocation3 + $0xf0] sm:$0x30] %v3100_v25  ;;  %v3221_v63 = vsel %vm5137_vm0, %v4790_v6, %v3209_v49  ;;  %2708 = vst [vmem:[#allocation3 + $0x48] sm:$0xc] %v2692_v3 }
 0x51f   : > { %v3237_v33 = vsel %vm5131_vm10, %v3221_v63, 0.0  ;;  %vm5142_vm10 = vmmov %vm5137_vm0  ;;  %vm5145_vm0 = vcmask 777216  }
 0x520   : > { %3245 = vst [vmem:[#allocation3 + $0x98] sm:$0x3] %v3237_v33  ;;  %v2970_v37 = vpop.permute.xlu1 %2969 }
 0x521   : > { %v4851_v41 = vpop.permute.xlu0 %2975  ;;  %v2981_v1 = vsel %vm5139_vm11, %v2968_v27, %v2970_v37  ;;  %vm5147_vm11 = vcmask 515072  }
 0x522   : > { %v2997_v12 = vsel %vm5140_vm7, %v2981_v1, 0.0 }
 0x523   : > { %v3013_v9 = vrot.slane %v2997_v12, 6 }
 0x524   : > { %v3058_v6 = vpop.permute.xlu1 %3057 }
 0x525   : > { %v4856_v10 = vpop.permute.xlu0 %3063  ;;  %3029 = vst [vmem:[#allocation3 + $0x18] sm:$0xc] %v3013_v9  ;;  %v3069_v11 = vsel %vm5141_vm3, %v3056_v48, %v3058_v6  ;;  %v3261_v42 = vld [vmem:[#allocation3 + $0xf0] sm:$0xff]  ;;  %v3253_v5 = vld [vmem:[#allocation3 + $0x48] sm:$0xff] }
 0x526   : > { %v3085_v7 = vsel %vm4070_vm12, %v3069_v11, 0.0 }
 0x527   : > { %v3269_v45 = vld [vmem:[#allocation3 + $0x98] sm:$0x3]  ;;  %v3101_v18 = vrot.slane %v3085_v7, 4 }
 0x528   : > { %3742 = vmatprep.subr.msk.mxu1 %vm3284_vm5, %v3269_v45  ;;  %v3211_v15 = vpop.permute.xlu1 %3210 }
 0x529   : > { %v4862_v61 = vpop.permute.xlu0 %3216  ;;  %3743 = vmatpush1.msk.msra.mxu1 %vm3284_vm5, %v3268_v22  ;;  %3117 = vst [vmem:[#allocation3 + $0x18] sm:$0x30] %v3101_v18  ;;  %v3222_v38 = vsel %vm5142_vm10, %v3209_v49, %v3211_v15 }
 0x52a   : > { %3408 = vmatprep.subr.mxu1 %v3261_v42  ;;  %v3238_v30 = vsel %vm5140_vm7, %v3222_v38, 0.0 }
 0x52b   : > { %3409 = vmatpush1.msra.mxu1 %v3260_v47  ;;  %3246 = vst [vmem:[#allocation3 + $0xa8] sm:$0x3] %v3238_v30 }
 0x52c   : > { %3410 = vmatprep.subr.mxu1 %v3253_v5  ;;  %v2738_v40 = vpop.permute.xlu1 %2737 }
 0x52d   : > { %v4868_v14 = vpop.permute.xlu0 %2743  ;;  %3411 = vmatpush1.msra.mxu1 %v3252_v36  ;;  %v2749_v43 = vsel %vm5143_vm2, %v4805_v23, %v2738_v40  ;;  %vm5151_vm2 = vmmov %vm5146_vm1 }
 0x52e   : > { %3744 = vmatmul.mubr.msk.f32.vlgmr.msra.gmra.mxu1 %vm3280_vm6, %v4820_v24  ;;  %v2765_v32 = vsel %vm5140_vm7, %v2749_v43, 0.0  ;;  %vm5149_vm7 = vmmov %vm5141_vm3  ;;  %vm5150_vm3 = vcmask 1039360  }
 0x52f   : > { %3586 = vmatprep.mubr.f32.mxu1 %v3832_v0  ;;  %v2781_v19 = vrot.slane %v2765_v32, 4 }
 0x530   : > { %v2826_v59 = vpop.permute.xlu1 %2825 }
 0x531   : > { %v4877_v16 = vpop.permute.xlu0 %2831  ;;  %2797 = vst [vmem:[#allocation3 + $0x120] sm:$0x30] %v2781_v19  ;;  %v2837_v21 = vsel %vm5144_vm4, %v4812_v57, %v2826_v59  ;;  %vm5152_vm4 = vmmov %vm5146_vm1 }
 0x532   : > { %v2853_v20 = vsel %vm4070_vm12, %v2837_v21, 0.0  ;;  %vm5148_vm12 = vnez %v5056_v29  ;;  %v3270_v36 = vld [vmem:[#allocation3 + $0xa8] sm:$0x3] }
 0x533   : > { %v2869_v23 = vrot.slane %v2853_v20, 2 }
 0x534   : > { %v4885_v31 = vpop.permute.xlu1 %2913 }
 0x535   : > { %v4883_v8 = vpop.permute.xlu0 %2919  ;;  %2885 = vst [vmem:[#allocation3 + $0x120] sm:$0xc0] %v2869_v23  ;;  %v2925_v0 = vsel %vm5145_vm0, %v4826_v62, %v4885_v31  ;;  %vm5153_vm0 = vcmask 1031168  }
 0x536   : > { %2941 = vst [vmem:[#allocation3 + $0x18] sm:$0x3] %v2925_v0 }
 0x538   : > { %v4890_v13 = vpop.permute.xlu1 %3154 }
 0x539   : > { %v2972_v55 = vpop.permute.xlu0 %2971  ;;  %v3166_v46 = vsel %vm5147_vm11, %v4835_v17, %v4890_v13 }
 0x53a   : > { %v2982_v60 = vsel %vm5146_vm1, %v2970_v37, %v2972_v55  ;;  %3182 = vst [vmem:[#allocation3 + $0x18] sm:$0xc0] %v3166_v46  ;;  %vm5154_vm1 = vmmov %vm5149_vm7 }
 0x53b   : > { %v2998_v57 = vsel %vm5148_vm12, %v2982_v60, 0.0  ;;  %vm5155_vm11 = vmmov %vm5154_vm1 }
 0x53c   : > { %v3014_v52 = vrot.slane %v2998_v57, 6  ;;  %v4898_v27 = vpop.permute.xlu1 %2681 }
 0x53d   : > { %v3060_v39 = vpop.permute.xlu0 %3059  ;;  %v2693_v58 = vsel %vm5150_vm3, %v4843_v35, %v4898_v27  ;;  %vm5157_vm3 = vmmov %vm5142_vm10 }
 0x53e   : > { %3030 = vst [vmem:[#allocation3 + $0xc8] sm:$0xc] %v3014_v52  ;;  %v3070_v62 = vsel %vm5149_vm7, %v3058_v6, %v3060_v39  ;;  %2709 = vst [vmem:[#allocation3 + $0x120] sm:$0xc] %v2693_v58  ;;  %vm5156_vm7 = vcmask 785408  }
 0x53f   : > { %v3086_v34 = vsel %vm4094_vm14, %v3070_v62, 0.0 }
 0x540   : > { %v3102_v2 = vrot.slane %v3086_v34, 4  ;;  %v2974_v48 = vpop.permute.xlu1 %2973 }
 0x541   : > { %v3213_v51 = vpop.permute.xlu0 %3212  ;;  %v2983_v26 = vsel %vm5151_vm2, %v2972_v55, %v2974_v48  ;;  %v2984_v4 = vsel %vm5152_vm4, %v2974_v48, %v4851_v41  ;;  %vm5161_vm2 = vmmov %vm5153_vm0 }
 0x542   : > { %3118 = vst [vmem:[#allocation3 + $0xc8] sm:$0x30] %v3102_v2  ;;  %v3223_v17 = vsel %vm5142_vm10, %v3211_v15, %v3213_v51  ;;  %v2999_v25 = vsel %vm4509_vm8, %v2983_v26, 0.0  ;;  %v3000_v49 = vsel %vm4515_vm9, %v2984_v4, 0.0  ;;  %vm5160_vm10 = vmmov %vm5153_vm0  ;;  %v3262_v4 = vld [vmem:[#allocation3 + $0x18] sm:$0xff] }
 0x543   : > { %v3239_v28 = vsel %vm5148_vm12, %v3223_v17, 0.0  ;;  %v3015_v35 = vrot.slane %v2999_v25, 6  ;;  %v3016_v63 = vrot.slane %v3000_v49, 6  ;;  %vm5162_vm4 = vmmov %vm5156_vm7 }
 0x544   : > { %3247 = vst [vmem:[#allocation3 + $0x90] sm:$0x3] %v3239_v28  ;;  %v3062_v33 = vpop.permute.xlu1 %3061 }
 0x545   : > { %v2740_v3 = vpop.permute.xlu0 %2739  ;;  %3031 = vst [vmem:[#allocation3 + $0x70] sm:$0xc] %v3015_v35  ;;  %3032 = vst [vmem:[#allocation3 + $0x20] sm:$0xc] %v3016_v63  ;;  %v3071_v41 = vsel %vm5154_vm1, %v3060_v39, %v3062_v33  ;;  %v3072_v1 = vsel %vm5155_vm11, %v3062_v33, %v4856_v10  ;;  %v3254_v49 = vld [vmem:[#allocation3 + $0x120] sm:$0xff] }
 0x546   : > { %v2750_v37 = vsel %vm5153_vm0, %v2738_v40, %v2740_v3  ;;  %v3087_v9 = vsel %vm4082_vm13, %v3071_v41, 0.0  ;;  %v3088_v6 = vsel %vm4100_vm15, %v3072_v1, 0.0  ;;  %vm5163_vm0 = vmmov %vm5162_vm4 }
 0x547   : > { %v2766_v12 = vsel %vm5148_vm12, %v2750_v37, 0.0  ;;  %v3103_v7 = vrot.slane %v3087_v9, 4  ;;  %v3104_v45 = vrot.slane %v3088_v6, 4  ;;  %vm5158_vm12 = vmmov %vm5157_vm3 }
 0x548   : > { %v2782_v11 = vrot.slane %v2766_v12, 4  ;;  %v3215_v22 = vpop.permute.xlu1 %3214 }
 0x549   : > { %v2828_v18 = vpop.permute.xlu0 %2827  ;;  %3119 = vst [vmem:[#allocation3 + $0x70] sm:$0x30] %v3103_v7  ;;  %3120 = vst [vmem:[#allocation3 + $0x20] sm:$0x30] %v3104_v45  ;;  %v3224_v10 = vsel %vm5157_vm3, %v3213_v51, %v3215_v22  ;;  %v3225_v29 = vsel %vm5158_vm12, %v3215_v22, %v4862_v61 }
 0x54a   : > { %2798 = vst [vmem:[#allocation3 + $0x38] sm:$0x30] %v2782_v11  ;;  %v2838_v15 = vsel %vm5156_vm7, %v2826_v59, %v2828_v18  ;;  %v3240_v38 = vsel %vm4509_vm8, %v3224_v10, 0.0  ;;  %v3241_v47 = vsel %vm4515_vm9, %v3225_v29, 0.0 }
 0x54b   : > { %v2854_v42 = vsel %vm4094_vm14, %v2838_v15, 0.0  ;;  %v3271_v30 = vld [vmem:[#allocation3 + $0x90] sm:$0x3]  ;;  %3248 = vst [vmem:[#allocation3 + $0xe0] sm:$0x3] %v3240_v38  ;;  %vm5159_vm14 = vcmask 777216  }
 0x54c   : > { %v2870_v5 = vrot.slane %v2854_v42, 2  ;;  %3249 = vst [vmem:[#allocation3 + $0x88] sm:$0x3] %v3241_v47  ;;  %3745 = vmatprep.subr.msk.mxu0 %vm3284_vm5, %v3271_v30  ;;  %v2742_v61 = vpop.permute.xlu1 %2741 }
 0x54d   : > { %v2916_v40 = vpop.permute.xlu0 %2915  ;;  %3746 = vmatpush1.msk.msra.mxu0 %vm3284_vm5, %v3270_v36  ;;  %v2751_v43 = vsel %vm5160_vm10, %v2740_v3, %v2742_v61  ;;  %v2752_v32 = vsel %vm5161_vm2, %v2742_v61, %v4868_v14 }
 0x54e   : > { %2886 = vst [vmem:[#allocation3 + $0x38] sm:$0xc0] %v2870_v5  ;;  %v2926_v53 = vsel %vm5159_vm14, %v4885_v31, %v2916_v40  ;;  %v2767_v19 = vsel %vm4509_vm8, %v2751_v43, 0.0  ;;  %v2768_v59 = vsel %vm4515_vm9, %v2752_v32, 0.0  ;;  %vm5164_vm8 = vcmask 515072   ;;  %vm5165_vm9 = vmmov %vm5159_vm14 }
 0x54f   : > { %2942 = vst [vmem:[#allocation3 + $0xc8] sm:$0x3] %v2926_v53  ;;  %v2783_v21 = vrot.slane %v2767_v19, 4  ;;  %v2784_v20 = vrot.slane %v2768_v59, 4 }
 0x550   : > { %v2830_v0 = vpop.permute.xlu1 %2829 }
 0x551   : > { %v3161_v23 = vpop.permute.xlu0 %3160  ;;  %2799 = vst [vmem:[#allocation3 + $0xf8] sm:$0x30] %v2783_v21  ;;  %2800 = vst [vmem:[#allocation3 + $0x100] sm:$0x30] %v2784_v20  ;;  %v2839_v31 = vsel %vm5162_vm4, %v2828_v18, %v2830_v0  ;;  %v2840_v55 = vsel %vm5163_vm0, %v2830_v0, %v4877_v16 }
 0x552   : > { %v2855_v14 = vsel %vm4082_vm13, %v2839_v31, 0.0  ;;  %v2856_v56 = vsel %vm4100_vm15, %v2840_v55, 0.0  ;;  %v3272_v44 = vld [vmem:[#allocation3 + $0xe0] sm:$0x3]  ;;  %vm5166_vm13 = vmmov %vm5165_vm9  ;;  %vm5167_vm15 = vcmask 1039360  }
 0x553   : > { %v3273_v60 = vld [vmem:[#allocation3 + $0x88] sm:$0x3]  ;;  %v2871_v46 = vrot.slane %v2855_v14, 2  ;;  %v2872_v57 = vrot.slane %v2856_v56, 2  ;;  %vm5170_vm11 = vmmov %vm5167_vm15 }
 0x554   : > { %3748 = vmatprep.subr.msk.mxu1 %vm3284_vm5, %v3273_v60  ;;  %v2918_v39 = vpop.permute.xlu1 %2917  ;;  %vm5171_vm7 = vmmov %vm5170_vm11 }
 0x555   : > { %v3157_v52 = vpop.permute.xlu0 %3156  ;;  %3749 = vmatpush1.msk.msra.mxu1 %vm3284_vm5, %v3272_v44  ;;  %2887 = vst [vmem:[#allocation3 + $0xf8] sm:$0xc0] %v2871_v46  ;;  %2888 = vst [vmem:[#allocation3 + $0x100] sm:$0xc0] %v2872_v57  ;;  %v2927_v50 = vsel %vm5165_vm9, %v2916_v40, %v2918_v39  ;;  %v2928_v54 = vsel %vm5166_vm13, %v2918_v39, %v4883_v8 }
 0x556   : > { %v3167_v16 = vsel %vm5164_vm8, %v4890_v13, %v3157_v52  ;;  %2943 = vst [vmem:[#allocation3 + $0x70] sm:$0x3] %v2927_v50  ;;  %2944 = vst [vmem:[#allocation3 + $0x20] sm:$0x3] %v2928_v54 }
 0x557   : > { %3183 = vst [vmem:[#allocation3 + $0xc8] sm:$0xc0] %v3167_v16  ;;  %vm5168_vm5 = vmmov %vm5164_vm8 }
 0x558   : > { %v3159_v58 = vpop.permute.xlu1 %3158  ;;  %vm5169_vm1 = vmmov %vm5168_vm5 }
 0x559   : > { %v2684_v62 = vpop.permute.xlu0 %2683  ;;  %v3168_v2 = vsel %vm5168_vm5, %v3157_v52, %v3159_v58  ;;  %v3169_v51 = vsel %vm5169_vm1, %v3159_v58, %v3161_v23 }
 0x55a   : > { %v2694_v34 = vsel %vm5167_vm15, %v4898_v27, %v2684_v62  ;;  %3184 = vst [vmem:[#allocation3 + $0x70] sm:$0xc0] %v3168_v2  ;;  %3185 = vst [vmem:[#allocation3 + $0x20] sm:$0xc0] %v3169_v51 }
 0x55b   : > { %2710 = vst [vmem:[#allocation3 + $0x38] sm:$0xc] %v2694_v34 }
 0x55c   : > { %v2686_v48 = vpop.permute.xlu1 %2685 }
 0x55d   : > { %v2688_v13 = vpop.permute.xlu0 %2687  ;;  %v2695_v17 = vsel %vm5170_vm11, %v2684_v62, %v2686_v48 }
 0x55e   : > { %v2696_v8 = vsel %vm5171_vm7, %v2686_v48, %v2688_v13  ;;  %v3263_v26 = vld [vmem:[#allocation3 + $0xc8] sm:$0xff]  ;;  %2711 = vst [vmem:[#allocation3 + $0xf8] sm:$0xc] %v2695_v17 }
 0x55f   : > { %2712 = vst [vmem:[#allocation3 + $0x100] sm:$0xc] %v2696_v8  ;;  %3479 = vmatprep.subr.mxu0 %v3263_v26 }
 0x560   : > { %3480 = vmatpush1.msra.mxu0 %v3262_v4 }
 0x561   : > { %v3265_v28 = vld [vmem:[#allocation3 + $0x20] sm:$0xff]  ;;  %v3264_v25 = vld [vmem:[#allocation3 + $0x70] sm:$0xff] }
 0x562   : > { %v3255_v27 = vld [vmem:[#allocation3 + $0x38] sm:$0xff]  ;;  %3550 = vmatprep.subr.mxu1 %v3265_v28 }
 0x563   : > { %3481 = vmatprep.subr.mxu0 %v3255_v27  ;;  %3551 = vmatpush1.msra.mxu1 %v3264_v25 }
 0x564   : > { %3482 = vmatpush1.msra.mxu0 %v3254_v49 }
 0x565   : > { %3747 = vmatmul.mubr.msk.f32.vlgmr.msra.gmra.mxu0 %vm3280_vm6, %v4820_v24  ;;  %v3256_v63 = vld [vmem:[#allocation3 + $0xf8] sm:$0xff] }
 0x566   : > { %v3257_v35 = vld [vmem:[#allocation3 + $0x100] sm:$0xff] }
 0x567   : > { %3552 = vmatprep.subr.mxu1 %v3257_v35 }
 0x568   : > { %3553 = vmatpush1.msra.mxu1 %v3256_v63 }
 0x569   : > { %3750 = vmatmul.mubr.msk.f32.vlgmr.msra.gmra.mxu1 %vm3280_vm6, %v4820_v24  ;;  %v3278_v33 = vpop.permute.xlu1 %3277 }
 0x5d4   : > { %v3375_v3 = vpop.f32.mrf.mxu0 }
 0x5d5   : > { %v3376_v41 = vadd.f32 %v3375_v3, %v3278_v33 }
 0x5d6   : > { %v3377_v37 = vpop.f32.mrf.mxu0 }
 0x5d7   : > { %v3378_v1 = vadd.f32 %v3377_v37, %v3278_v33 }
 0x5d9   : > { %v3601_v12 = vcombine.low %v3376_v41, %v3378_v1 }
 0x5db   : > { %3609 = vst [vmem:[%s433_s13] sm:$0xff] %v3601_v12 }
 0x5ee   : > { %v3446_v9 = vpop.f32.mrf.mxu1 }
 0x5ef   : > { %v3447_v11 = vadd.f32 %v3446_v9, %v3278_v33 }
 0x5f0   : > { %v3448_v6 = vpop.f32.mrf.mxu1 }
 0x5f1   : > { %v3449_v7 = vadd.f32 %v3448_v6, %v3278_v33 }
 0x5f3   : > { %v3602_v45 = vcombine.low %v3447_v11, %v3449_v7 }
 0x5f5   : > { %3610 = vst [vmem:[%s433_s13 + $0x8] sm:$0xff] %v3602_v45 }
 0x625   : > { %v3517_v18 = vpop.f32.mrf.mxu0 }
 0x626   : > { %v3518_v22 = vadd.f32 %v3517_v18, %v3278_v33 }
 0x627   : > { %v3519_v24 = vpop.f32.mrf.mxu0 }
 0x628   : > { %v3520_v15 = vadd.f32 %v3519_v24, %v3278_v33 }
 0x629   : > { %v3588_v10 = vpop.f32.mrf.mxu1 }
 0x62a   : > { %v3603_v29 = vcombine.low %v3518_v22, %v3520_v15  ;;  %v3589_v38 = vadd.f32 %v3588_v10, %v3278_v33 }
 0x62b   : > { %v3590_v42 = vpop.f32.mrf.mxu1 }
 0x62c   : > { %3611 = vst [vmem:[%s433_s13 + $0x10] sm:$0xff] %v3603_v29  ;;  %v3591_v47 = vadd.f32 %v3590_v42, %v3278_v33 }
 0x62e   : > { %v3604_v30 = vcombine.low %v3589_v38, %v3591_v47 }
 0x630   : > { %3612 = vst [vmem:[%s433_s13 + $0x18] sm:$0xff] %v3604_v30 }
 0x631 PF: > { %s22_s21 = sadd.s32 1, %s3830_s21  }
 0x632   : > { %p19_p4 = scmp.ge.s32.totalorder %s22_s21, 4  }
 0x634   :  { %21 = sbr.rel (!%p19_p4) target bundleno = 1 (0x1), region = 101 }

// kernel: pyramid_forward.9
= control target key start
LH: loop header
LB: loop body
LE: loop exit
PB: predicated region body
PF: predicated region fallthrough
CT: control target
= control target key end

     0   :  { %s448_s15 = smov 0   ;;  %s474_s0 = inlined_call_operand.vmem [shape: f32[2,8,256], index: 0, kind: input, shape index: {}]   ;;  %s475_s1 = inlined_call_operand.vmem [shape: f32[2,4,256], index: 1, kind: input, shape index: {}]   ;;  %s476_s2 = inlined_call_operand.vmem [shape: f32[2,4,256], index: 2, kind: input, shape index: {}]   ;;  %s477_s3 = inlined_call_operand.vmem [shape: f32[2,16,256], index: 3, kind: input, shape index: {}]   ;;  %s478_s4 = inlined_call_operand.vmem [shape: f32[2,16,256], index: 4, kind: output, shape index: {}]  }
   0x1 LB: > { %s383_s16 = sadd.s32 4294967295, %s421_s15   ;;  %p387_p0 = scmp.ge.s32.totalorder %s421_s15, 1  ;;  %s421_s15 = sphi %s448_s15, %s14_s15  }
   0x2   : > { %p192_p1 = scmp.lt.s32.totalorder %s421_s15, 3 }
   0x4   : > { %p193_p2 = pnand %p387_p0, %p192_p1 }
   0x5   : > { %p233_p3 = scmp.lt.s32.totalorder (!%p193_p2), %s383_s16, 1 }
   0x6   : > { %196 = sbr.rel (%p193_p2) target bundleno = 23 (0x17), region = 36 }
   0xb   : > { %s480_s16 = smov (!%p233_p3, %s383_s16), 1 }
   0xc   : > { %s400_s17 = sshll.u32 %s480_s16, 4  ;;  %s403_s18 = sshll.u32 %s480_s16, 5 }
   0xd   : > { %s237_s21 = scalar_lea.vmem %s474_s0, %s400_s17  ;;  %s252_s24 = scalar_lea.vmem %s477_s3, %s403_s18 }
   0xe   : > { %s257_s27 = scalar_lea.vmem %s478_s4, %s403_s18  ;;  %v258_v0 = vld [vmem:[%s237_s21] sm:$0xff]  ;;  %v259_v2 = vld [vmem:[%s237_s21 + $0x8] sm:$0xff]  ;;  %s401_s28 = sshll.u32 %s480_s16, 3  ;;  %v413_v7 = vld [vmem:[%s252_s24 + $0x10] ss:$8 sps:$4 sm:$0xff]  }
   0xf   : > { %v260_v1 = vld [vmem:[%s252_s24] sm:$0xff]  ;;  %v261_v4 = vld [vmem:[%s252_s24 + $0x8] sm:$0xff]  ;;  %s242_s5 = scalar_lea.vmem %s475_s1, %s401_s28  ;;  %s247_s8 = scalar_lea.vmem %s476_s2, %s401_s28  ;;  %v414_v9 = vld [vmem:[%s252_s24 + $0x14] ss:$8 sps:$4 sm:$0xff]  }
  0x10   : > { %v262_v3 = vadd.f32 %v260_v1, %v258_v0  ;;  %v263_v5 = vadd.f32 %v261_v4, %v259_v2  ;;  %v266_v6 = vld [vmem:[%s242_s5] sm:$0xff] }
  0x11   : > { %v279_v8 = vld [vmem:[%s247_s8] sm:$0xff]  ;;  %v273_v10 = vadd.f32 %v413_v7, %v266_v6 }
  0x12   : > { %264 = vst [vmem:[%s257_s27] sm:$0xff] %v262_v3  ;;  %265 = vst [vmem:[%s257_s27 + $0x8] sm:$0xff] %v263_v5  ;;  %v286_v11 = vadd.f32 %v414_v9, %v279_v8 }
  0x13   : > { %277 = vst [vmem:[%s257_s27 + $0x10] sm:$0xf] %v273_v10  ;;  %v275_v12 = vcombine.high %v273_v10, %v273_v10 }
  0x14   : > { %v288_v13 = vcombine.low %v286_v11, %v286_v11  ;;  %291 = vst [vmem:[%s257_s27 + $0x18] sm:$0xf0] %v286_v11 }
  0x15   : > { %278 = vst [vmem:[%s257_s27 + $0x18] sm:$0xf] %v275_v12 }
  0x16   : > { %290 = vst [vmem:[%s257_s27 + $0x10] sm:$0xf0] %v288_v13 }
  0x17 PF: > { %s14_s15 = sadd.s32 1, %s421_s15  }
  0x18   : > { %p11_p4 = scmp.ge.s32.totalorder %s14_s15, 4  }
  0x1a   :  { %13 = sbr.rel (!%p11_p4) target bundleno = 1 (0x1), region = 75 }

</bundles_post_ra>
